<compile_context>
chip_gen: v6e
topology: v6e:2x2x1
jax: 0.10.0
libtpu: 0.0.40
codegen_flags: <defaults>
</compile_context>

<pallas_src>
import functools
import hashlib
import math
from statistics import NormalDist

import jax
import jax.numpy as jnp
import numpy as np
from jax.experimental import pallas as pl
from jax.experimental.pallas import tpu as pltpu


# ---------------------------------------------------------------------------
# Deterministic init_feat buffer (faithful port of deterministic_normal_samples)
# ---------------------------------------------------------------------------
def deterministic_normal_samples(input_ids, num_samples, order):
    nd = NormalDist()
    samples = np.empty((len(input_ids), num_samples), dtype=np.float64)
    for idx in range(num_samples):
        for r, x in enumerate(input_ids):
            s = f"{order}_{int(x)}_{idx + 1}"
            hash_bytes = hashlib.sha256(s.encode("utf-8")).digest()
            integer_value = int.from_bytes(hash_bytes, "big")
            u = integer_value / ((1 << (len(hash_bytes) * 8)) - 1)
            u = min(max(u, 1e-10), 1 - 1e-10)
            samples[r, idx] = nd.inv_cdf(u)  # == erfinv(2u-1)*sqrt(2)
    return samples.astype(np.float32)


# ---------------------------------------------------------------------------
# Pallas kernel: fused (gather + Linear#1) + MLP + 2^order fold + feature reduce
# Everything is feature-major: tensors are (feat, sample) with samples on lanes.
# ---------------------------------------------------------------------------
def elicit_kernel(idx_ref, m_ref, wT_ref, vec_ref, values_ref, out_ref,
                  *, order, num_feats, vocab):
    F = num_feats
    D = order * F
    tile_n = out_ref.shape[-1]

    # ---- fused embedding gather + first Linear: one multi-hot, one MXU push --
    idx = idx_ref[...]                                           # (order, tile_n) int32
    iota = jax.lax.broadcasted_iota(jnp.int32, (vocab, tile_n), 0)   # hoisted
    hot = iota == idx[0:1, :]
    for i in range(1, order):
        hot = hot | (iota == idx[i:i + 1, :])                    # disjoint vocab segments
    z = jnp.dot(m_ref[...], hot.astype(jnp.float32),
                preferred_element_type=jnp.float32)              # (D, tile_n) == W0.T @ feats
    h = z + vec_ref[0]                                           # + b1

    inv_d = 1.0 / D

    def layer_norm(x, l):
        # single-pass statistics: var = E[x^2] - mu^2 (biased, like torch LN)
        s1 = jnp.sum(x, axis=0, keepdims=True)
        s2 = jnp.sum(x * x, axis=0, keepdims=True)
        mu = s1 * inv_d
        var = s2 * inv_d - mu * mu
        return (x - mu) * jax.lax.rsqrt(var + 1e-5) * vec_ref[4 + l] + vec_ref[7 + l]

    # tanh-GELU -> EUP slot (torch default is exact erf; see tolerance note below)
    h = jax.nn.gelu(layer_norm(h, 0), approximate=True)
    for l in (1, 2):
        h = jnp.dot(wT_ref[l - 1], h.astype(jnp.bfloat16),
                    preferred_element_type=jnp.float32) + vec_ref[l]
        h = jax.nn.gelu(layer_norm(h, l), approximate=True)
    prob = jnp.dot(wT_ref[2], h.astype(jnp.bfloat16),
                   preferred_element_type=jnp.float32) + vec_ref[3]   # (D, tile_n)

    # ---- butterfly fold:  sum_{v in {0,1}^order} values[v] * prod_i (0.5 +/- prob_i)
    fpos = [0.5 + prob[i * F:(i + 1) * F, :] for i in range(order)]
    fneg = [0.5 - prob[i * F:(i + 1) * F, :] for i in range(order)]

    def fold(axis, base):
        if axis == order:
            return values_ref[base]                              # (F, 1), broadcasts over lanes
        stride = 1 << (order - 1 - axis)
        return (fpos[axis] * fold(axis + 1, base)
                + fneg[axis] * fold(axis + 1, base + stride))

    acc = fold(0, 0)                                             # (F, tile_n) f32
    # single feature reduction over sublanes -> lane-dense (1, tile_n) store
    out_ref[...] = jnp.sum(acc, axis=0, keepdims=True)


# ---------------------------------------------------------------------------
# Wrapper
# ---------------------------------------------------------------------------
def elicit_forward(idxs, params, *, dims, num_feats, tile_n=None):
    order = len(dims)
    F = num_feats
    D = order * F
    vocab = int(np.sum(dims))
    cumul = np.concatenate([[0], np.cumsum(dims)]).astype(np.int64)
    N = int(idxs[0].shape[0])

    if tile_n is None:
        # Largest tiles (<= 1024 lanes) with an EVEN grid step count >= 2 where
        # possible, so v7x's two TensorCores both get work; on v5e/v6e the same
        # choice just minimizes per-grid-step overhead.
        n128 = -(-N // 128)
        n_tiles_target = 2 * ((n128 + 15) // 16)
        tile_n = 128 * (-(-n128 // n_tiles_target))
    else:
        tile_n = 128 * (-(-int(tile_n) // 128))
    num_tiles = -(-N // tile_n)
    n_pad = num_tiles * tile_n

    # --- pack kernel operands (layout plumbing; production code would pre-pack) ---
    idx_all = jnp.stack([idxs[i].astype(jnp.int32) + jnp.int32(cumul[i])
                         for i in range(order)], axis=0)                  # (order, N)
    idx_all = jnp.pad(idx_all, ((0, 0), (0, n_pad - N)))                  # pad lanes -> row 0 (valid)

    W = params["W"]                                                       # (4, D, D) bf16
    # Pre-fuse Linear #1 with the embedding table (kept in f32: vocab is tiny,
    # and it preserves the reference's bf16 rounding points).
    feat_bf16 = params["init_feat"].astype(jnp.bfloat16)                  # (vocab, F)
    m_segs = [jnp.dot(feat_bf16[int(cumul[i]):int(cumul[i + 1])],
                      W[0, i * F:(i + 1) * F, :],
                      preferred_element_type=jnp.float32).T               # (D, dims[i])
              for i in range(order)]
    m_fused = jnp.concatenate(m_segs, axis=1)                             # (D, vocab) f32
    wT = jnp.stack([W[l].T for l in range(1, 4)])                         # (3, D, D) bf16
    vec_c = params["vec"].reshape(10, D, 1)                               # f32
    values_c = params["values"].reshape(1 << order, F, 1)                 # f32

    kernel = functools.partial(elicit_kernel, order=order, num_feats=F, vocab=vocab)

    cost = pl.CostEstimate(
        flops=int(n_pad * (2 * D * vocab + 6 * D * D + 8 * D)),
        transcendentals=int(n_pad * (3 * D + 3)),
        bytes_accessed=int(4 * (order + 1) * n_pad + 4 * D * vocab
                           + 2 * 3 * D * D + 4 * 10 * D + 4 * (1 << order) * F),
    )

    in_specs = [
        pl.BlockSpec((order, tile_n), lambda i: (0, i)),                  # packed index stream
        # Resident constants (constant index_map).
        # TODO(synk): Buffered(1) / HBM DMA row gather when vocab grows large.
        pl.BlockSpec((D, vocab), lambda i: (0, 0)),
        pl.BlockSpec((3, D, D), lambda i: (0, 0, 0)),
        pl.BlockSpec((10, D, 1), lambda i: (0, 0, 0)),
        pl.BlockSpec((1 << order, F, 1), lambda i: (0, 0, 0)),
    ]

    out = pl.pallas_call(
        kernel,
        out_shape=jax.ShapeDtypeStruct((1, n_pad), jnp.float32),
        grid=(num_tiles,),
        in_specs=in_specs,
        out_specs=pl.BlockSpec((1, tile_n), lambda i: (0, i)),
        compiler_params=pltpu.CompilerParams(dimension_semantics=("parallel",)),
        cost_estimate=cost,
    )(idx_all, m_fused, wT, vec_c, values_c)

    # vals.view(F,-1).sum(0).view(-1, 1)[:, 0]  -> (N,)   (n_neg = 0)
    return out.reshape(-1)[:N]


# ---------------------------------------------------------------------------
# Deterministic parameter init (synthetic, matching module shapes; bf16 weights)
# ---------------------------------------------------------------------------
def init_params(key, dims, num_feats):
    order = len(dims)
    D = num_feats * order
    bound = 1.0 / math.sqrt(D)
    kw, kb, kv = jax.random.split(key, 3)
    W = jax.random.uniform(kw, (4, D, D), jnp.float32, -bound, bound).astype(jnp.bfloat16)
    vec = jnp.zeros((10, D), jnp.float32)
    vec = vec.at[0:4].set(jax.random.uniform(kb, (4, D), jnp.float32, -bound, bound))  # b1..b4
    vec = vec.at[4:7].set(1.0)                                                         # LN gamma
    # rows 7..9 stay 0.0                                                               # LN beta
    scale = 0.01 / math.sqrt(num_feats)
    values = jax.random.truncated_normal(kv, -2.0, 2.0,
                                         (1 << order, num_feats), jnp.float32) * scale
    init_feat = np.concatenate(
        [deterministic_normal_samples(np.arange(dims[i]), num_feats, order=i + 1)
         for i in range(order)], axis=0)
    return {"W": W, "vec": vec, "values": values,
            "init_feat": jnp.asarray(init_feat)}          # (sum(dims), F) f32


# ---------------------------------------------------------------------------
# Pure-JAX reference (mirrors the PyTorch forward: exact-erf GELU, two-pass LN,
# bf16 weights, n_neg = 0)
# ---------------------------------------------------------------------------
def elicit_ref(idxs, params, *, dims, num_feats):
    order = len(dims)
    F = num_feats
    cumul = np.concatenate([[0], np.cumsum(dims)]).astype(np.int64)
    h = jnp.concatenate(
        [params["init_feat"][idxs[i] + int(cumul[i])] for i in range(order)], axis=-1)
    W, vec = params["W"], params["vec"]
    for l in range(3):
        z = jnp.dot(h.astype(jnp.bfloat16), W[l],
                    preferred_element_type=jnp.float32) + vec[l]
        mu = z.mean(-1, keepdims=True)
        var = ((z - mu) ** 2).mean(-1, keepdims=True)
        z = (z - mu) * jax.lax.rsqrt(var + 1e-5) * vec[4 + l] + vec[7 + l]
        h = jax.nn.gelu(z, approximate=False)
    prob = jnp.dot(h.astype(jnp.bfloat16), W[3],
                   preferred_element_type=jnp.float32) + vec[3]
    acc = jnp.zeros((prob.shape[0], F), jnp.float32)
    for v in range(1 << order):
        term = jnp.ones((prob.shape[0], F), jnp.float32)
        for i in range(order):
            sl = prob[:, i * F:(i + 1) * F]
            bit = (v >> (order - 1 - i)) & 1
            term = term * ((0.5 - sl) if bit else (0.5 + sl))
        acc = acc + term * params["values"][v]
    return acc.sum(-1)


if __name__ == "__main__":
    dims = (32, 32)        # per-axis cardinalities -> order = 2, vocab = 64
    num_feats = 64         # D = order * num_feats = 128 (lane-dense)
    N = 500                # queried index tuples (not a tile multiple -> exercises padding)

    key = jax.random.PRNGKey(0)
    k_param, k_i0, k_i1 = jax.random.split(key, 3)
    params = init_params(k_param, dims, num_feats)
    idxs = [jax.random.randint(k_i0, (N,), 0, dims[0]),
            jax.random.randint(k_i1, (N,), 0, dims[1])]

    vals = elicit_forward(idxs, params, dims=dims, num_feats=num_feats)
    vals = jax.block_until_ready(vals)

    ref = elicit_ref(idxs, params, dims=dims, num_feats=num_feats)
    # Tolerance accounts for bf16 weights + tanh-GELU in the kernel vs the
    # exact-erf reference (max per-element GELU deviation ~3e-4 before fold).
    np.testing.assert_allclose(np.asarray(vals), np.asarray(ref), rtol=1e-2, atol=1e-3)
    print("KERNEL_OK")
</pallas_src>

<mosaic_0001>
module attributes {stable_mosaic.version = 11 : i64} {
  func.func @elicit_kernel(%arg0: i32, %arg1: memref<2x256xi32, #tpu.memory_space<vmem>>, %arg2: memref<128x64xf32, #tpu.memory_space<vmem>>, %arg3: memref<3x128x128xbf16, #tpu.memory_space<vmem>>, %arg4: memref<10x128x1xf32, #tpu.memory_space<vmem>>, %arg5: memref<4x64x1xf32, #tpu.memory_space<vmem>>, %arg6: memref<1x256xf32, #tpu.memory_space<vmem>>) attributes {dimension_semantics = [#tpu.dimension_semantics<parallel>], iteration_bounds = array<i64: 2>, scalar_prefetch = 0 : i64, scratch_operands = 0 : i64, tpu.core_type = #tpu.core_type<tc>, window_params = [{transform_indices = @transform_0, window_bounds = array<i64: 2, 256>}, {pipeline_mode = #tpu.pipeline_mode<synchronous>, transform_indices = @transform_1, window_bounds = array<i64: 128, 64>}, {pipeline_mode = #tpu.pipeline_mode<synchronous>, transform_indices = @transform_2, window_bounds = array<i64: 3, 128, 128>}, {pipeline_mode = #tpu.pipeline_mode<synchronous>, transform_indices = @transform_3, window_bounds = array<i64: 10, 128, 1>}, {pipeline_mode = #tpu.pipeline_mode<synchronous>, transform_indices = @transform_4, window_bounds = array<i64: 4, 64, 1>}, {transform_indices = @transform_5, window_bounds = array<i64: 1, 256>}]} {
    %c0 = arith.constant 0 : index
    %c0_0 = arith.constant 0 : index
    %0 = vector.load %arg1[%c0, %c0_0] : memref<2x256xi32, #tpu.memory_space<vmem>>, vector<2x256xi32>
    %1 = tpu.iota {dimensions = array<i32: 0>} : vector<64x256xi32>
    %2 = vector.extract_strided_slice %0 {offsets = [0, 0], sizes = [1, 256], strides = [1, 1]} : vector<2x256xi32> to vector<1x256xi32>
    %3 = vector.broadcast %2 : vector<1x256xi32> to vector<64x256xi32>
    %4 = arith.cmpi eq, %1, %3 : vector<64x256xi32>
    %5 = vector.extract_strided_slice %0 {offsets = [1, 0], sizes = [1, 256], strides = [1, 1]} : vector<2x256xi32> to vector<1x256xi32>
    %6 = vector.broadcast %5 : vector<1x256xi32> to vector<64x256xi32>
    %7 = arith.cmpi eq, %1, %6 : vector<64x256xi32>
    %8 = arith.ori %4, %7 : vector<64x256xi1>
    %c0_1 = arith.constant 0 : index
    %c0_2 = arith.constant 0 : index
    %9 = vector.load %arg2[%c0_1, %c0_2] : memref<128x64xf32, #tpu.memory_space<vmem>>, vector<128x64xf32>
    %10 = arith.extui %8 : vector<64x256xi1> to vector<64x256xi32>
    %11 = arith.sitofp %10 : vector<64x256xi32> to vector<64x256xf32>
    %cst = arith.constant dense<0.000000e+00> : vector<128x256xf32>
    %12 = tpu.matmul %9, %11, %cst {dimension_numbers = #tpu.dot_dimension_numbers<[1], [0], [0], [1], [0, 0, 1, 1], [], []>} : vector<128x64xf32>, vector<64x256xf32>, vector<128x256xf32> -> vector<128x256xf32>
    %c0_3 = arith.constant 0 : index
    %c0_4 = arith.constant 0 : index
    %c0_5 = arith.constant 0 : index
    %13 = vector.load %arg4[%c0_3, %c0_4, %c0_5] : memref<10x128x1xf32, #tpu.memory_space<vmem>>, vector<1x128x1xf32>
    %14 = vector.shape_cast %13 : vector<1x128x1xf32> to vector<128x1xf32>
    %15 = vector.broadcast %14 : vector<128x1xf32> to vector<128x256xf32>
    %16 = arith.addf %12, %15 : vector<128x256xf32>
    %cst_6 = arith.constant dense<0.000000e+00> : vector<256xf32>
    %17 = vector.multi_reduction <add>, %16, %cst_6 [0] : vector<128x256xf32> to vector<256xf32>
    %18 = vector.shape_cast %17 : vector<256xf32> to vector<1x256xf32>
    %19 = arith.mulf %16, %16 : vector<128x256xf32>
    %cst_7 = arith.constant dense<0.000000e+00> : vector<256xf32>
    %20 = vector.multi_reduction <add>, %19, %cst_7 [0] : vector<128x256xf32> to vector<256xf32>
    %21 = vector.shape_cast %20 : vector<256xf32> to vector<1x256xf32>
    %cst_8 = arith.constant 7.812500e-03 : f32
    %22 = vector.broadcast %cst_8 : f32 to vector<1x256xf32>
    %23 = arith.mulf %18, %22 : vector<1x256xf32>
    %cst_9 = arith.constant 7.812500e-03 : f32
    %24 = vector.broadcast %cst_9 : f32 to vector<1x256xf32>
    %25 = arith.mulf %21, %24 : vector<1x256xf32>
    %26 = arith.mulf %23, %23 : vector<1x256xf32>
    %27 = arith.subf %25, %26 : vector<1x256xf32>
    %28 = vector.broadcast %23 : vector<1x256xf32> to vector<128x256xf32>
    %29 = arith.subf %16, %28 : vector<128x256xf32>
    %cst_10 = arith.constant 9.99999974E-6 : f32
    %30 = vector.broadcast %cst_10 : f32 to vector<1x256xf32>
    %31 = arith.addf %27, %30 : vector<1x256xf32>
    %32 = math.rsqrt %31 : vector<1x256xf32>
    %33 = vector.broadcast %32 : vector<1x256xf32> to vector<128x256xf32>
    %34 = arith.mulf %29, %33 : vector<128x256xf32>
    %c4 = arith.constant 4 : index
    %c0_11 = arith.constant 0 : index
    %c0_12 = arith.constant 0 : index
    %35 = vector.load %arg4[%c4, %c0_11, %c0_12] : memref<10x128x1xf32, #tpu.memory_space<vmem>>, vector<1x128x1xf32>
    %36 = vector.shape_cast %35 : vector<1x128x1xf32> to vector<128x1xf32>
    %37 = vector.broadcast %36 : vector<128x1xf32> to vector<128x256xf32>
    %38 = arith.mulf %34, %37 : vector<128x256xf32>
    %c7 = arith.constant 7 : index
    %c0_13 = arith.constant 0 : index
    %c0_14 = arith.constant 0 : index
    %39 = vector.load %arg4[%c7, %c0_13, %c0_14] : memref<10x128x1xf32, #tpu.memory_space<vmem>>, vector<1x128x1xf32>
    %40 = vector.shape_cast %39 : vector<1x128x1xf32> to vector<128x1xf32>
    %41 = vector.broadcast %40 : vector<128x1xf32> to vector<128x256xf32>
    %42 = arith.addf %38, %41 : vector<128x256xf32>
    %43 = arith.mulf %42, %42 : vector<128x256xf32>
    %44 = arith.mulf %42, %43 : vector<128x256xf32>
    %cst_15 = arith.constant 4.471500e-02 : f32
    %45 = vector.broadcast %cst_15 : f32 to vector<128x256xf32>
    %46 = arith.mulf %45, %44 : vector<128x256xf32>
    %47 = arith.addf %42, %46 : vector<128x256xf32>
    %cst_16 = arith.constant 0.797884583 : f32
    %48 = vector.broadcast %cst_16 : f32 to vector<128x256xf32>
    %49 = arith.mulf %48, %47 : vector<128x256xf32>
    %50 = math.tanh %49 : vector<128x256xf32>
    %cst_17 = arith.constant 1.000000e+00 : f32
    %51 = vector.broadcast %cst_17 : f32 to vector<128x256xf32>
    %52 = arith.addf %51, %50 : vector<128x256xf32>
    %cst_18 = arith.constant 5.000000e-01 : f32
    %53 = vector.broadcast %cst_18 : f32 to vector<128x256xf32>
    %54 = arith.mulf %53, %52 : vector<128x256xf32>
    %55 = arith.mulf %42, %54 : vector<128x256xf32>
    %c0_19 = arith.constant 0 : index
    %c0_20 = arith.constant 0 : index
    %c0_21 = arith.constant 0 : index
    %56 = vector.load %arg3[%c0_19, %c0_20, %c0_21] : memref<3x128x128xbf16, #tpu.memory_space<vmem>>, vector<1x128x128xbf16>
    %57 = vector.shape_cast %56 : vector<1x128x128xbf16> to vector<128x128xbf16>
    %58 = arith.truncf %55 : vector<128x256xf32> to vector<128x256xbf16>
    %cst_22 = arith.constant dense<0.000000e+00> : vector<128x256xf32>
    %59 = tpu.matmul %57, %58, %cst_22 {dimension_numbers = #tpu.dot_dimension_numbers<[1], [0], [0], [1], [0, 0, 1, 1], [], []>} : vector<128x128xbf16>, vector<128x256xbf16>, vector<128x256xf32> -> vector<128x256xf32>
    %c1 = arith.constant 1 : index
    %c0_23 = arith.constant 0 : index
    %c0_24 = arith.constant 0 : index
    %60 = vector.load %arg4[%c1, %c0_23, %c0_24] : memref<10x128x1xf32, #tpu.memory_space<vmem>>, vector<1x128x1xf32>
    %61 = vector.shape_cast %60 : vector<1x128x1xf32> to vector<128x1xf32>
    %62 = vector.broadcast %61 : vector<128x1xf32> to vector<128x256xf32>
    %63 = arith.addf %59, %62 : vector<128x256xf32>
    %cst_25 = arith.constant dense<0.000000e+00> : vector<256xf32>
    %64 = vector.multi_reduction <add>, %63, %cst_25 [0] : vector<128x256xf32> to vector<256xf32>
    %65 = vector.shape_cast %64 : vector<256xf32> to vector<1x256xf32>
    %66 = arith.mulf %63, %63 : vector<128x256xf32>
    %cst_26 = arith.constant dense<0.000000e+00> : vector<256xf32>
    %67 = vector.multi_reduction <add>, %66, %cst_26 [0] : vector<128x256xf32> to vector<256xf32>
    %68 = vector.shape_cast %67 : vector<256xf32> to vector<1x256xf32>
    %cst_27 = arith.constant 7.812500e-03 : f32
    %69 = vector.broadcast %cst_27 : f32 to vector<1x256xf32>
    %70 = arith.mulf %65, %69 : vector<1x256xf32>
    %cst_28 = arith.constant 7.812500e-03 : f32
    %71 = vector.broadcast %cst_28 : f32 to vector<1x256xf32>
    %72 = arith.mulf %68, %71 : vector<1x256xf32>
    %73 = arith.mulf %70, %70 : vector<1x256xf32>
    %74 = arith.subf %72, %73 : vector<1x256xf32>
    %75 = vector.broadcast %70 : vector<1x256xf32> to vector<128x256xf32>
    %76 = arith.subf %63, %75 : vector<128x256xf32>
    %cst_29 = arith.constant 9.99999974E-6 : f32
    %77 = vector.broadcast %cst_29 : f32 to vector<1x256xf32>
    %78 = arith.addf %74, %77 : vector<1x256xf32>
    %79 = math.rsqrt %78 : vector<1x256xf32>
    %80 = vector.broadcast %79 : vector<1x256xf32> to vector<128x256xf32>
    %81 = arith.mulf %76, %80 : vector<128x256xf32>
    %c5 = arith.constant 5 : index
    %c0_30 = arith.constant 0 : index
    %c0_31 = arith.constant 0 : index
    %82 = vector.load %arg4[%c5, %c0_30, %c0_31] : memref<10x128x1xf32, #tpu.memory_space<vmem>>, vector<1x128x1xf32>
    %83 = vector.shape_cast %82 : vector<1x128x1xf32> to vector<128x1xf32>
    %84 = vector.broadcast %83 : vector<128x1xf32> to vector<128x256xf32>
    %85 = arith.mulf %81, %84 : vector<128x256xf32>
    %c8 = arith.constant 8 : index
    %c0_32 = arith.constant 0 : index
    %c0_33 = arith.constant 0 : index
    %86 = vector.load %arg4[%c8, %c0_32, %c0_33] : memref<10x128x1xf32, #tpu.memory_space<vmem>>, vector<1x128x1xf32>
    %87 = vector.shape_cast %86 : vector<1x128x1xf32> to vector<128x1xf32>
    %88 = vector.broadcast %87 : vector<128x1xf32> to vector<128x256xf32>
    %89 = arith.addf %85, %88 : vector<128x256xf32>
    %90 = arith.mulf %89, %89 : vector<128x256xf32>
    %91 = arith.mulf %89, %90 : vector<128x256xf32>
    %cst_34 = arith.constant 4.471500e-02 : f32
    %92 = vector.broadcast %cst_34 : f32 to vector<128x256xf32>
    %93 = arith.mulf %92, %91 : vector<128x256xf32>
    %94 = arith.addf %89, %93 : vector<128x256xf32>
    %cst_35 = arith.constant 0.797884583 : f32
    %95 = vector.broadcast %cst_35 : f32 to vector<128x256xf32>
    %96 = arith.mulf %95, %94 : vector<128x256xf32>
    %97 = math.tanh %96 : vector<128x256xf32>
    %cst_36 = arith.constant 1.000000e+00 : f32
    %98 = vector.broadcast %cst_36 : f32 to vector<128x256xf32>
    %99 = arith.addf %98, %97 : vector<128x256xf32>
    %cst_37 = arith.constant 5.000000e-01 : f32
    %100 = vector.broadcast %cst_37 : f32 to vector<128x256xf32>
    %101 = arith.mulf %100, %99 : vector<128x256xf32>
    %102 = arith.mulf %89, %101 : vector<128x256xf32>
    %c1_38 = arith.constant 1 : index
    %c0_39 = arith.constant 0 : index
    %c0_40 = arith.constant 0 : index
    %103 = vector.load %arg3[%c1_38, %c0_39, %c0_40] : memref<3x128x128xbf16, #tpu.memory_space<vmem>>, vector<1x128x128xbf16>
    %104 = vector.shape_cast %103 : vector<1x128x128xbf16> to vector<128x128xbf16>
    %105 = arith.truncf %102 : vector<128x256xf32> to vector<128x256xbf16>
    %cst_41 = arith.constant dense<0.000000e+00> : vector<128x256xf32>
    %106 = tpu.matmul %104, %105, %cst_41 {dimension_numbers = #tpu.dot_dimension_numbers<[1], [0], [0], [1], [0, 0, 1, 1], [], []>} : vector<128x128xbf16>, vector<128x256xbf16>, vector<128x256xf32> -> vector<128x256xf32>
    %c2 = arith.constant 2 : index
    %c0_42 = arith.constant 0 : index
    %c0_43 = arith.constant 0 : index
    %107 = vector.load %arg4[%c2, %c0_42, %c0_43] : memref<10x128x1xf32, #tpu.memory_space<vmem>>, vector<1x128x1xf32>
    %108 = vector.shape_cast %107 : vector<1x128x1xf32> to vector<128x1xf32>
    %109 = vector.broadcast %108 : vector<128x1xf32> to vector<128x256xf32>
    %110 = arith.addf %106, %109 : vector<128x256xf32>
    %cst_44 = arith.constant dense<0.000000e+00> : vector<256xf32>
    %111 = vector.multi_reduction <add>, %110, %cst_44 [0] : vector<128x256xf32> to vector<256xf32>
    %112 = vector.shape_cast %111 : vector<256xf32> to vector<1x256xf32>
    %113 = arith.mulf %110, %110 : vector<128x256xf32>
    %cst_45 = arith.constant dense<0.000000e+00> : vector<256xf32>
    %114 = vector.multi_reduction <add>, %113, %cst_45 [0] : vector<128x256xf32> to vector<256xf32>
    %115 = vector.shape_cast %114 : vector<256xf32> to vector<1x256xf32>
    %cst_46 = arith.constant 7.812500e-03 : f32
    %116 = vector.broadcast %cst_46 : f32 to vector<1x256xf32>
    %117 = arith.mulf %112, %116 : vector<1x256xf32>
    %cst_47 = arith.constant 7.812500e-03 : f32
    %118 = vector.broadcast %cst_47 : f32 to vector<1x256xf32>
    %119 = arith.mulf %115, %118 : vector<1x256xf32>
    %120 = arith.mulf %117, %117 : vector<1x256xf32>
    %121 = arith.subf %119, %120 : vector<1x256xf32>
    %122 = vector.broadcast %117 : vector<1x256xf32> to vector<128x256xf32>
    %123 = arith.subf %110, %122 : vector<128x256xf32>
    %cst_48 = arith.constant 9.99999974E-6 : f32
    %124 = vector.broadcast %cst_48 : f32 to vector<1x256xf32>
    %125 = arith.addf %121, %124 : vector<1x256xf32>
    %126 = math.rsqrt %125 : vector<1x256xf32>
    %127 = vector.broadcast %126 : vector<1x256xf32> to vector<128x256xf32>
    %128 = arith.mulf %123, %127 : vector<128x256xf32>
    %c6 = arith.constant 6 : index
    %c0_49 = arith.constant 0 : index
    %c0_50 = arith.constant 0 : index
    %129 = vector.load %arg4[%c6, %c0_49, %c0_50] : memref<10x128x1xf32, #tpu.memory_space<vmem>>, vector<1x128x1xf32>
    %130 = vector.shape_cast %129 : vector<1x128x1xf32> to vector<128x1xf32>
    %131 = vector.broadcast %130 : vector<128x1xf32> to vector<128x256xf32>
    %132 = arith.mulf %128, %131 : vector<128x256xf32>
    %c9 = arith.constant 9 : index
    %c0_51 = arith.constant 0 : index
    %c0_52 = arith.constant 0 : index
    %133 = vector.load %arg4[%c9, %c0_51, %c0_52] : memref<10x128x1xf32, #tpu.memory_space<vmem>>, vector<1x128x1xf32>
    %134 = vector.shape_cast %133 : vector<1x128x1xf32> to vector<128x1xf32>
    %135 = vector.broadcast %134 : vector<128x1xf32> to vector<128x256xf32>
    %136 = arith.addf %132, %135 : vector<128x256xf32>
    %137 = arith.mulf %136, %136 : vector<128x256xf32>
    %138 = arith.mulf %136, %137 : vector<128x256xf32>
    %cst_53 = arith.constant 4.471500e-02 : f32
    %139 = vector.broadcast %cst_53 : f32 to vector<128x256xf32>
    %140 = arith.mulf %139, %138 : vector<128x256xf32>
    %141 = arith.addf %136, %140 : vector<128x256xf32>
    %cst_54 = arith.constant 0.797884583 : f32
    %142 = vector.broadcast %cst_54 : f32 to vector<128x256xf32>
    %143 = arith.mulf %142, %141 : vector<128x256xf32>
    %144 = math.tanh %143 : vector<128x256xf32>
    %cst_55 = arith.constant 1.000000e+00 : f32
    %145 = vector.broadcast %cst_55 : f32 to vector<128x256xf32>
    %146 = arith.addf %145, %144 : vector<128x256xf32>
    %cst_56 = arith.constant 5.000000e-01 : f32
    %147 = vector.broadcast %cst_56 : f32 to vector<128x256xf32>
    %148 = arith.mulf %147, %146 : vector<128x256xf32>
    %149 = arith.mulf %136, %148 : vector<128x256xf32>
    %c2_57 = arith.constant 2 : index
    %c0_58 = arith.constant 0 : index
    %c0_59 = arith.constant 0 : index
    %150 = vector.load %arg3[%c2_57, %c0_58, %c0_59] : memref<3x128x128xbf16, #tpu.memory_space<vmem>>, vector<1x128x128xbf16>
    %151 = vector.shape_cast %150 : vector<1x128x128xbf16> to vector<128x128xbf16>
    %152 = arith.truncf %149 : vector<128x256xf32> to vector<128x256xbf16>
    %cst_60 = arith.constant dense<0.000000e+00> : vector<128x256xf32>
    %153 = tpu.matmul %151, %152, %cst_60 {dimension_numbers = #tpu.dot_dimension_numbers<[1], [0], [0], [1], [0, 0, 1, 1], [], []>} : vector<128x128xbf16>, vector<128x256xbf16>, vector<128x256xf32> -> vector<128x256xf32>
    %c3 = arith.constant 3 : index
    %c0_61 = arith.constant 0 : index
    %c0_62 = arith.constant 0 : index
    %154 = vector.load %arg4[%c3, %c0_61, %c0_62] : memref<10x128x1xf32, #tpu.memory_space<vmem>>, vector<1x128x1xf32>
    %155 = vector.shape_cast %154 : vector<1x128x1xf32> to vector<128x1xf32>
    %156 = vector.broadcast %155 : vector<128x1xf32> to vector<128x256xf32>
    %157 = arith.addf %153, %156 : vector<128x256xf32>
    %158 = vector.extract_strided_slice %157 {offsets = [0, 0], sizes = [64, 256], strides = [1, 1]} : vector<128x256xf32> to vector<64x256xf32>
    %cst_63 = arith.constant 5.000000e-01 : f32
    %159 = vector.broadcast %cst_63 : f32 to vector<64x256xf32>
    %160 = arith.addf %159, %158 : vector<64x256xf32>
    %161 = vector.extract_strided_slice %157 {offsets = [64, 0], sizes = [64, 256], strides = [1, 1]} : vector<128x256xf32> to vector<64x256xf32>
    %cst_64 = arith.constant 5.000000e-01 : f32
    %162 = vector.broadcast %cst_64 : f32 to vector<64x256xf32>
    %163 = arith.addf %162, %161 : vector<64x256xf32>
    %164 = vector.extract_strided_slice %157 {offsets = [0, 0], sizes = [64, 256], strides = [1, 1]} : vector<128x256xf32> to vector<64x256xf32>
    %cst_65 = arith.constant 5.000000e-01 : f32
    %165 = vector.broadcast %cst_65 : f32 to vector<64x256xf32>
    %166 = arith.subf %165, %164 : vector<64x256xf32>
    %167 = vector.extract_strided_slice %157 {offsets = [64, 0], sizes = [64, 256], strides = [1, 1]} : vector<128x256xf32> to vector<64x256xf32>
    %cst_66 = arith.constant 5.000000e-01 : f32
    %168 = vector.broadcast %cst_66 : f32 to vector<64x256xf32>
    %169 = arith.subf %168, %167 : vector<64x256xf32>
    %c0_67 = arith.constant 0 : index
    %c0_68 = arith.constant 0 : index
    %c0_69 = arith.constant 0 : index
    %170 = vector.load %arg5[%c0_67, %c0_68, %c0_69] : memref<4x64x1xf32, #tpu.memory_space<vmem>>, vector<1x64x1xf32>
    %171 = vector.shape_cast %170 : vector<1x64x1xf32> to vector<64x1xf32>
    %172 = vector.broadcast %171 : vector<64x1xf32> to vector<64x256xf32>
    %173 = arith.mulf %163, %172 : vector<64x256xf32>
    %c1_70 = arith.constant 1 : index
    %c0_71 = arith.constant 0 : index
    %c0_72 = arith.constant 0 : index
    %174 = vector.load %arg5[%c1_70, %c0_71, %c0_72] : memref<4x64x1xf32, #tpu.memory_space<vmem>>, vector<1x64x1xf32>
    %175 = vector.shape_cast %174 : vector<1x64x1xf32> to vector<64x1xf32>
    %176 = vector.broadcast %175 : vector<64x1xf32> to vector<64x256xf32>
    %177 = arith.mulf %169, %176 : vector<64x256xf32>
    %178 = arith.addf %173, %177 : vector<64x256xf32>
    %179 = arith.mulf %160, %178 : vector<64x256xf32>
    %c2_73 = arith.constant 2 : index
    %c0_74 = arith.constant 0 : index
    %c0_75 = arith.constant 0 : index
    %180 = vector.load %arg5[%c2_73, %c0_74, %c0_75] : memref<4x64x1xf32, #tpu.memory_space<vmem>>, vector<1x64x1xf32>
    %181 = vector.shape_cast %180 : vector<1x64x1xf32> to vector<64x1xf32>
    %182 = vector.broadcast %181 : vector<64x1xf32> to vector<64x256xf32>
    %183 = arith.mulf %163, %182 : vector<64x256xf32>
    %c3_76 = arith.constant 3 : index
    %c0_77 = arith.constant 0 : index
    %c0_78 = arith.constant 0 : index
    %184 = vector.load %arg5[%c3_76, %c0_77, %c0_78] : memref<4x64x1xf32, #tpu.memory_space<vmem>>, vector<1x64x1xf32>
    %185 = vector.shape_cast %184 : vector<1x64x1xf32> to vector<64x1xf32>
    %186 = vector.broadcast %185 : vector<64x1xf32> to vector<64x256xf32>
    %187 = arith.mulf %169, %186 : vector<64x256xf32>
    %188 = arith.addf %183, %187 : vector<64x256xf32>
    %189 = arith.mulf %166, %188 : vector<64x256xf32>
    %190 = arith.addf %179, %189 : vector<64x256xf32>
    %cst_79 = arith.constant dense<0.000000e+00> : vector<256xf32>
    %191 = vector.multi_reduction <add>, %190, %cst_79 [0] : vector<64x256xf32> to vector<256xf32>
    %192 = vector.shape_cast %191 : vector<256xf32> to vector<1x256xf32>
    %c0_80 = arith.constant 0 : index
    %c0_81 = arith.constant 0 : index
    %193 = vector.load %arg6[%c0_80, %c0_81] : memref<1x256xf32, #tpu.memory_space<vmem>>, vector<1x256xf32>
    tpu.vector_store %arg6[%c0_80, %c0_81], %192 {strides = array<i32>} : memref<1x256xf32, #tpu.memory_space<vmem>>, vector<1x256xf32>,
    return
  }
  func.func @transform_0(%arg0: i32) -> (i32, i32) {
    %c0_i32 = arith.constant 0 : i32
    %c0_i32_0 = arith.constant 0 : i32
    return %c0_i32, %arg0 : i32, i32
  }
  func.func @transform_1(%arg0: i32) -> (i32, i32) {
    %c0_i32 = arith.constant 0 : i32
    %c0_i32_0 = arith.constant 0 : i32
    %c0_i32_1 = arith.constant 0 : i32
    return %c0_i32, %c0_i32_0 : i32, i32
  }
  func.func @transform_2(%arg0: i32) -> (i32, i32, i32) {
    %c0_i32 = arith.constant 0 : i32
    %c0_i32_0 = arith.constant 0 : i32
    %c0_i32_1 = arith.constant 0 : i32
    %c0_i32_2 = arith.constant 0 : i32
    return %c0_i32, %c0_i32_0, %c0_i32_1 : i32, i32, i32
  }
  func.func @transform_3(%arg0: i32) -> (i32, i32, i32) {
    %c0_i32 = arith.constant 0 : i32
    %c0_i32_0 = arith.constant 0 : i32
    %c0_i32_1 = arith.constant 0 : i32
    %c0_i32_2 = arith.constant 0 : i32
    return %c0_i32, %c0_i32_0, %c0_i32_1 : i32, i32, i32
  }
  func.func @transform_4(%arg0: i32) -> (i32, i32, i32) {
    %c0_i32 = arith.constant 0 : i32
    %c0_i32_0 = arith.constant 0 : i32
    %c0_i32_1 = arith.constant 0 : i32
    %c0_i32_2 = arith.constant 0 : i32
    return %c0_i32, %c0_i32_0, %c0_i32_1 : i32, i32, i32
  }
  func.func @transform_5(%arg0: i32) -> (i32, i32) {
    %c0_i32 = arith.constant 0 : i32
    %c0_i32_0 = arith.constant 0 : i32
    return %c0_i32, %arg0 : i32, i32
  }
}

</mosaic_0001>

<bundles_post_ra>
// kernel: tpu_custom_call.1
= control target key start
LH: loop header
LB: loop body
LE: loop exit
PB: predicated region body
PF: predicated region fallthrough
CT: control target
= control target key end

     0   :  { %10 = vsyncpa [#allocation3], 0  ;;  %s8285_s0 = inlined_call_operand.vmem [shape: s32[2,512], index: 0, kind: input, shape index: {}]   ;;  %s8286_s1 = inlined_call_operand.vmem [shape: f32[128,64], index: 1, kind: input, shape index: {}]   ;;  %s8287_s2 = inlined_call_operand.vmem [shape: bf16[3,128,128], index: 2, kind: input, shape index: {}]   ;;  %s8288_s3 = inlined_call_operand.vmem [shape: f32[10,128,1], index: 3, kind: input, shape index: {}]   ;;  %s8289_s4 = inlined_call_operand.vmem [shape: f32[4,64,1], index: 4, kind: input, shape index: {}]   ;;  %s8290_s5 = inlined_call_operand.hbm [shape: f32[1,512], index: 5, kind: output, shape index: {}]  }
   0x1   :  { %12 = vsyncpa [#allocation3 + $0x1], 0  ;;  %s4954_s18 = smov 0   ;;  %s4956_s19 = smov 0  }
   0x2   :  { %s4958_s20 = smov 0   ;;  %s4960_s21 = smov 0  }
   0x3 LB: > { %s4975_s22 = sadd.s32 4294967295, %s4917_s21   ;;  %s4283_s23 = sadd.s32 4294967294, %s4917_s21   ;;  %s4917_s21 = sphi %s4960_s21, %s8602_s21   ;;  %s4913_s20 = sphi %s4958_s20, %s8601_s20   ;;  %s4909_s19 = sphi %s4956_s19, %s8600_s19   ;;  %s4905_s18 = sphi %s4954_s18, %s8599_s18  }
   0x4   : > { %s4979_s24 = sadd.s32 1, %s4917_s21   ;;  %s135_s25 = sadd.s32 1, %s4913_s20 }
   0x5   : > { %s132_s26 = ssub.s32 %s4917_s21, %s4979_s24  ;;  %p145_p0 = scmp.ne.s32.totalorder %s4913_s20, %s4909_s19 }
   0x6   : > { %p133_p1 = scmp.eq.s32.totalorder %s132_s26, 0  ;;  %p146_p2 = scmp.eq.s32.totalorder %s4975_s22, 1 }
   0x7   : > { %p151_p3 = scmp.ne.s32.totalorder %s4909_s19, %s4905_s18  ;;  %p152_p4 = scmp.eq.s32.totalorder %s4283_s23, 1 }
   0x8   : > { %s4990_s27 = scalar_select %p133_p1, %s4913_s20, %s135_s25  }
   0x9   : > { %p4992_p5 = por %p146_p2, %p145_p0  ;;  %p4996_p6 = por %p152_p4, %p151_p3 }
   0xa   : > { %p4286_p7 = scmp.ge.s32.totalorder %s4917_s21, 1  ;;  %p191_p8 = scmp.lt.s32.totalorder %s4917_s21, 3 }
   0xc   : > { %p192_p9 = pnand %p4286_p7, %p191_p8 }
   0xe   : > { %195 = sbr.rel (%p192_p9) target bundleno = 1616 (0x650), region = 40 }
  0x13   : > { %v367_v0 = vld [vmem:[%s8288_s3 + $0x10] sm:$0xff]  ;;  %v365_v1 = vld [vmem:[%s8288_s3] sm:$0xff]  ;;  %s4288_s9 = sshll.u32 %s4975_s22, 1  ;;  %v8291_v2 = vlaneseq  ;;  %v8292_v3 = vmov 0   ;;  %v368_v5 = vld [vmem:[%s8288_s3 + $0x18] sm:$0xff]  ;;  %v4920_v7 = vmov 0.0  }
  0x14   : > { %4628 = vset.pattern.permute.xlu1 %v8292_v3  ;;  %4627 = vset.pattern.permute.xlu0 %v8292_v3  ;;  %p220_p10 = scmp.lt.s32.totalorder %s4288_s9, 3  ;;  %v366_v6 = vld [vmem:[%s8288_s3 + $0x8] sm:$0xff]  ;;  %v369_v13 = vld [vmem:[%s8288_s3 + $0x20] sm:$0xff]  ;;  %v372_v25 = vld [vmem:[%s8288_s3 + $0x38] sm:$0xff]  ;;  %v4921_v30 = vmov 1.0   ;;  %s216_s10 = sand.u32 1, %s4909_s19  }
  0x15   : > { %393 = vperm.xlu1 %4628, %v367_v0   ;;  %383 = vperm.xlu0 %4627, %v365_v1   ;;  %v5012_v4 = vshrl.u32 %v8291_v2, 7  ;;  %v370_v12 = vld [vmem:[%s8288_s3 + $0x28] sm:$0xff]  ;;  %v371_v26 = vld [vmem:[%s8288_s3 + $0x30] sm:$0xff]  ;;  %v373_v32 = vld [vmem:[%s8288_s3 + $0x40] sm:$0xff]  ;;  %s4287_s11 = sshll.u32 %s216_s10, 1  ;;  %s4567_s12 = sshll.u32 %s4975_s22, 5 }
  0x16   : > { %s8604_s9 = smov (!%p220_p10, %s4288_s9), 3  ;;  %574 = vmatprep.mubr.f32.mxu0 %v4920_v7  ;;  %1618 = vmatprep.mubr.bf16.mxu1 %v8292_v3  ;;  %v374_v31 = vld [vmem:[%s8288_s3 + $0x48] sm:$0xff]  ;;  %v376_v35 = vld [vmem:[%s8288_s3 + $0x58] sm:$0xff]  ;;  %v375_v36 = vld [vmem:[%s8288_s3 + $0x50] sm:$0xff]  ;;  %s218_s13 = scalar_lea.vmem [#allocation2], %s4287_s11 }
  0x17   : > { %8369 = vst [vmem:[#allocation5_spill] sm:$0xff] %v5012_v4  ;;  %v239_v8 = vsub.s32 0, %v5012_v4  ;;  %v243_v9 = vsub.s32 2, %v5012_v4  ;;  %v271_v10 = vsub.s32 1, %v5012_v4  ;;  %s4289_s14 = sshll.u32 %s8604_s9, 1  ;;  %v275_v11 = vsub.s32 3, %v5012_v4 }
  0x18   : > { %s223_s17 = scalar_lea.vmem %s8285_s0, %s4289_s14  ;;  %v236_v15 = vadd.s32 56, %v5012_v4  ;;  %v235_v16 = vadd.s32 48, %v5012_v4  ;;  %v234_v24 = vadd.s32 40, %v5012_v4  ;;  %v233_v28 = vadd.s32 32, %v5012_v4  ;;  %v378_v37 = vld [vmem:[%s8288_s3 + $0x68] sm:$0xff]  ;;  %v377_v38 = vld [vmem:[%s8288_s3 + $0x60] sm:$0xff] }
  0x19   : > { %398 = vperm.xlu1 %4628, %v368_v5   ;;  %388 = vperm.xlu0 %4627, %v366_v6   ;;  %v227_v14 = vld [vmem:[%s223_s17] sm:$0xf]  ;;  %v232_v29 = vadd.s32 24, %v5012_v4  ;;  %v231_v33 = vadd.s32 16, %v5012_v4  ;;  %v230_v34 = vadd.s32 8, %v5012_v4  ;;  %v380_v39 = vld [vmem:[%s8288_s3 + $0x78] sm:$0xff]  ;;  %s4222_s17 = scalar_lea.hbm %s8290_s5, %s4567_s12 }
  0x1a   : > { %v244_v17 = vrot.slane %v227_v14, %v243_v9  ;;  %v276_v18 = vrot.slane %v227_v14, %v275_v11  ;;  %v240_v19 = vrot.slane %v227_v14, %v239_v8  ;;  %v272_v20 = vrot.slane %v227_v14, %v271_v10  ;;  %v379_v40 = vld [vmem:[%s8288_s3 + $0x70] sm:$0xff]  ;;  %v317_v41 = vld [vmem:[%s8286_s1] sm:$0xff]  ;;  %v4353_v42 = vld [vmem:[%s8288_s3 + $0x278] sm:$0xff]  ;;  %s4224_s14 = sshll.u32 %s218_s13, 4  ;;  %s4210_s23 = scalar_lea.sflag [#allocation3], %s216_s10  ;;  %s4225_s14 = int_to_ptr.vmem [resolvable:$true] %s4224_s14 }
  0x1b   : > { %v4352_v43 = vld [vmem:[%s8288_s3 + $0x270] sm:$0xff]  ;;  %v318_v44 = vld [vmem:[%s8286_s1 + $0x8] sm:$0xff]  ;;  %v4369_v45 = vld [vmem:[%s8288_s3 + $0x3f8] sm:$0xff]  ;;  %s4857_s25 = scalar_lea.vmem %s4225_s14, 32  ;;  %s4923_s26 = smov [#allocation2]  }
  0x1c   : > { %v5037_v21 = vrot.slane %v244_v17, %v239_v8  ;;  %v5039_v22 = vrot.slane %v276_v18, %v271_v10  ;;  %v5041_v23 = vrot.slane %v240_v19, %v239_v8  ;;  %v5050_v27 = vrot.slane %v272_v20, %v271_v10  ;;  %v4368_v46 = vld [vmem:[%s8288_s3 + $0x3f0] sm:$0xff]  ;;  %v4351_v48 = vld [vmem:[%s8288_s3 + $0x268] sm:$0xff]  ;;  %v4350_v49 = vld [vmem:[%s8288_s3 + $0x260] sm:$0xff]  ;;  %p4858_p11 = scmp.ne.s32.totalorder %s4225_s14, %s4857_s25  ;;  %s4861_s22 = sshll.u32 %s4923_s26, 4  ;;  %s4862_s22 = int_to_ptr.vmem [resolvable:$false] %s4861_s22 }
  0x1d   : > { %408 = vperm.xlu1 %4628, %v370_v12   ;;  %403 = vperm.xlu0 %4627, %v369_v13   ;;  %v319_v47 = vld [vmem:[%s8286_s1 + $0x10] sm:$0xff]  ;;  %v320_v50 = vld [vmem:[%s8286_s1 + $0x18] sm:$0xff]  ;;  %v4367_v51 = vld [vmem:[%s8288_s3 + $0x3e8] sm:$0xff]  ;;  %s4863_s30 = scalar_lea.vmem %s4862_s22, 64  ;;  %p4864_p0 = scmp.lt.s32.totalorder %s4225_s14, %s4862_s22 }
  0x1e   : > { %vm268_vm0 = vcmp.eq.s32.totalorder %v236_v15, %v5037_v21  ;;  %vm300_vm1 = vcmp.eq.s32.totalorder %v236_v15, %v5039_v22  ;;  %vm267_vm2 = vcmp.eq.s32.totalorder %v236_v15, %v5041_v23  ;;  %vm266_vm3 = vcmp.eq.s32.totalorder %v235_v16, %v5037_v21  ;;  %v4366_v52 = vld [vmem:[%s8288_s3 + $0x3e0] sm:$0xff]  ;;  %v4349_v54 = vld [vmem:[%s8288_s3 + $0x258] sm:$0xff]  ;;  %v4348_v55 = vld [vmem:[%s8288_s3 + $0x250] sm:$0xff]  ;;  %p4859_p12 = pnand %p4858_p11, %p4992_p5  ;;  %p4865_p1 = scmp.lt.s32.totalorder %s4863_s30, %s4857_s25 }
  0x1f   : > { %vm316_vm4 = vmor %vm268_vm0, %vm300_vm1  ;;  %vm299_vm5 = vcmp.eq.s32.totalorder %v236_v15, %v5050_v27  ;;  %vm298_vm6 = vcmp.eq.s32.totalorder %v235_v16, %v5039_v22  ;;  %vm265_vm7 = vcmp.eq.s32.totalorder %v235_v16, %v5041_v23  ;;  %vm297_vm8 = vcmp.eq.s32.totalorder %v235_v16, %v5050_v27  ;;  %v321_v53 = vld [vmem:[%s8286_s1 + $0x20] sm:$0xff]  ;;  %v322_v56 = vld [vmem:[%s8286_s1 + $0x28] sm:$0xff] }
  0x20   : > { %vm315_vm9 = vmor %vm267_vm2, %vm299_vm5  ;;  %vm264_vm10 = vcmp.eq.s32.totalorder %v234_v24, %v5037_v21  ;;  %vm296_vm11 = vcmp.eq.s32.totalorder %v234_v24, %v5039_v22  ;;  %4306 = vmatprep.subr.msk.mxu0 %vm316_vm4, %v4921_v30  ;;  %vm263_vm13 = vcmp.eq.s32.totalorder %v234_v24, %v5041_v23  ;;  %vm295_vm14 = vcmp.eq.s32.totalorder %v234_v24, %v5050_v27  ;;  %v4365_v57 = vld [vmem:[%s8288_s3 + $0x3d8] sm:$0xff]  ;;  %v4364_v58 = vld [vmem:[%s8288_s3 + $0x3d0] sm:$0xff]  ;;  %p4860_p13 = pneg %p4859_p12  ;;  %p4866_p2 = por %p4865_p1, %p4864_p0 }
  0x21   : > { %418 = vperm.xlu1 %4628, %v372_v25   ;;  %413 = vperm.xlu0 %4627, %v371_v26   ;;  %vm314_vm12 = vmor %vm266_vm3, %vm298_vm6  ;;  %vm262_vm0 = vcmp.eq.s32.totalorder %v233_v28, %v5037_v21  ;;  %vm294_vm1 = vcmp.eq.s32.totalorder %v233_v28, %v5039_v22  ;;  %vm261_vm3 = vcmp.eq.s32.totalorder %v233_v28, %v5041_v23  ;;  %v323_v59 = vld [vmem:[%s8286_s1 + $0x30] sm:$0xff]  ;;  %v4347_v60 = vld [vmem:[%s8288_s3 + $0x248] sm:$0xff] }
  0x22   : > { %4307 = vmatpush1.msk.msra.mxu0 %vm315_vm9, %v4921_v30  ;;  %vm313_vm15 = vmor %vm265_vm7, %vm297_vm8  ;;  %vm293_vm4 = vcmp.eq.s32.totalorder %v233_v28, %v5050_v27  ;;  %vm260_vm6 = vcmp.eq.s32.totalorder %v232_v29, %v5037_v21  ;;  %vm292_vm7 = vcmp.eq.s32.totalorder %v232_v29, %v5039_v22  ;;  %vm259_vm9 = vcmp.eq.s32.totalorder %v232_v29, %v5041_v23  ;;  %v4346_v61 = vld [vmem:[%s8288_s3 + $0x240] sm:$0xff]  ;;  %v324_v62 = vld [vmem:[%s8286_s1 + $0x38] sm:$0xff]  ;;  %p4867_p3 = pnand %p4866_p2, %p4860_p13 }
  0x23   : > { %4308 = vmatprep.subr.msk.mxu0 %vm314_vm12, %v4921_v30  ;;  %vm312_vm2 = vmor %vm264_vm10, %vm296_vm11  ;;  %vm291_vm10 = vcmp.eq.s32.totalorder %v232_v29, %v5050_v27  ;;  %vm258_vm12 = vcmp.eq.s32.totalorder %v231_v33, %v5037_v21  ;;  %v4363_v63 = vld [vmem:[%s8288_s3 + $0x3c8] sm:$0xff]  ;;  %v4362_v0 = vld [vmem:[%s8288_s3 + $0x3c0] sm:$0xff] }
  0x24   : > { %4309 = vmatpush1.msk.msra.mxu0 %vm313_vm15, %v4921_v30  ;;  %vm311_vm5 = vmor %vm263_vm13, %vm295_vm14  ;;  %vm290_vm13 = vcmp.eq.s32.totalorder %v231_v33, %v5039_v22  ;;  %vm257_vm15 = vcmp.eq.s32.totalorder %v231_v33, %v5041_v23  ;;  %v325_v1 = vld [vmem:[%s8286_s1 + $0x40] sm:$0xff]  ;;  %v4345_v5 = vld [vmem:[%s8288_s3 + $0x238] sm:$0xff] }
  0x25   : > { %428 = vperm.xlu1 %4628, %v374_v31   ;;  %423 = vperm.xlu0 %4627, %v373_v32   ;;  %vm310_vm8 = vmor %vm262_vm0, %vm294_vm1  ;;  %vm289_vm0 = vcmp.eq.s32.totalorder %v231_v33, %v5050_v27  ;;  %v4344_v6 = vld [vmem:[%s8288_s3 + $0x230] sm:$0xff]  ;;  %v326_v8 = vld [vmem:[%s8286_s1 + $0x48] sm:$0xff] }
  0x26   : > { %4310 = vmatprep.subr.msk.mxu0 %vm312_vm2, %v4921_v30  ;;  %vm309_vm11 = vmor %vm261_vm3, %vm293_vm4  ;;  %vm256_vm2 = vcmp.eq.s32.totalorder %v230_v34, %v5037_v21  ;;  %vm288_vm3 = vcmp.eq.s32.totalorder %v230_v34, %v5039_v22  ;;  %v4361_v9 = vld [vmem:[%s8288_s3 + $0x3b8] sm:$0xff]  ;;  %v4360_v10 = vld [vmem:[%s8288_s3 + $0x3b0] sm:$0xff] }
  0x27   : > { %4311 = vmatpush1.msk.msra.mxu0 %vm311_vm5, %v4921_v30  ;;  %vm308_vm14 = vmor %vm260_vm6, %vm292_vm7  ;;  %vm255_vm5 = vcmp.eq.s32.totalorder %v230_v34, %v5041_v23  ;;  %vm287_vm6 = vcmp.eq.s32.totalorder %v230_v34, %v5050_v27  ;;  %v327_v11 = vld [vmem:[%s8286_s1 + $0x50] sm:$0xff]  ;;  %v4343_v12 = vld [vmem:[%s8288_s3 + $0x228] sm:$0xff] }
  0x28   : > { %4312 = vmatprep.subr.msk.mxu0 %vm310_vm8, %v4921_v30  ;;  %vm307_vm1 = vmor %vm259_vm9, %vm291_vm10  ;;  %vm254_vm8 = vcmp.eq.s32.totalorder %v5012_v4, %v5037_v21  ;;  %vm286_vm9 = vcmp.eq.s32.totalorder %v5012_v4, %v5039_v22  ;;  %v4342_v13 = vld [vmem:[%s8288_s3 + $0x220] sm:$0xff]  ;;  %v328_v14 = vld [vmem:[%s8286_s1 + $0x58] sm:$0xff] }
  0x29   : > { %4313 = vmatpush1.msk.msra.mxu0 %vm309_vm11, %v4921_v30  ;;  %438 = vperm.xlu1 %4628, %v376_v35   ;;  %vm306_vm4 = vmor %vm258_vm12, %vm290_vm13  ;;  %vm253_vm11 = vcmp.eq.s32.totalorder %v5012_v4, %v5041_v23  ;;  %vm285_vm12 = vcmp.eq.s32.totalorder %v5012_v4, %v5050_v27  ;;  %v4359_v15 = vld [vmem:[%s8288_s3 + $0x3a8] sm:$0xff]  ;;  %v4358_v16 = vld [vmem:[%s8288_s3 + $0x3a0] sm:$0xff] }
  0x2a   : > { %433 = vperm.xlu0 %4627, %v375_v36   ;;  %4314 = vmatprep.subr.msk.mxu0 %vm308_vm14, %v4921_v30  ;;  %vm305_vm7 = vmor %vm257_vm15, %vm289_vm0  ;;  %vm461_vm0 = vcmask 523264   ;;  %v329_v17 = vld [vmem:[%s8286_s1 + $0x60] sm:$0xff]  ;;  %v4341_v18 = vld [vmem:[%s8288_s3 + $0x218] sm:$0xff] }
  0x2b   : > { %4315 = vmatpush1.msk.msra.mxu0 %vm307_vm1, %v4921_v30  ;;  %vm304_vm10 = vmor %vm256_vm2, %vm288_vm3  ;;  %v4340_v19 = vld [vmem:[%s8288_s3 + $0x210] sm:$0xff]  ;;  %v330_v20 = vld [vmem:[%s8286_s1 + $0x68] sm:$0xff] }
  0x2c   : > { %4316 = vmatprep.subr.msk.mxu0 %vm306_vm4, %v4921_v30  ;;  %vm303_vm13 = vmor %vm255_vm5, %vm287_vm6  ;;  %v4357_v21 = vld [vmem:[%s8288_s3 + $0x398] sm:$0xff]  ;;  %v4356_v22 = vld [vmem:[%s8288_s3 + $0x390] sm:$0xff] }
  0x2d   : > { %4317 = vmatpush1.msk.msra.mxu0 %vm305_vm7, %v4921_v30  ;;  %448 = vperm.xlu1 %4628, %v378_v37   ;;  %vm302_vm14 = vmor %vm254_vm8, %vm286_vm9  ;;  %v331_v23 = vld [vmem:[%s8286_s1 + $0x70] sm:$0xff]  ;;  %v4339_v24 = vld [vmem:[%s8288_s3 + $0x208] sm:$0xff] }
  0x2e   : > { %443 = vperm.xlu0 %4627, %v377_v38   ;;  %4318 = vmatprep.subr.msk.mxu0 %vm304_vm10, %v4921_v30  ;;  %vm301_vm15 = vmor %vm253_vm11, %vm285_vm12  ;;  %v4338_v25 = vld [vmem:[%s8288_s3 + $0x200] sm:$0xff]  ;;  %v332_v26 = vld [vmem:[%s8286_s1 + $0x78] sm:$0xff] }
  0x2f   : > { %4319 = vmatpush1.msk.msra.mxu0 %vm303_vm13, %v4921_v30  ;;  %v4355_v27 = vld [vmem:[%s8288_s3 + $0x388] sm:$0xff]  ;;  %v4370_v29 = vld [vmem:[%s8288_s3 + $0x80] sm:$0xff]  ;;  %v4372_v31 = vld [vmem:[%s8288_s3 + $0x90] sm:$0xff] }
  0x30   : > { %4320 = vmatprep.subr.msk.mxu0 %vm302_vm14, %v4921_v30  ;;  %v4371_v28 = vld [vmem:[%s8288_s3 + $0x88] sm:$0xff]  ;;  %v4374_v33 = vld [vmem:[%s8288_s3 + $0xa0] sm:$0xff]  ;;  %v4377_v34 = vld [vmem:[%s8288_s3 + $0xb8] sm:$0xff] }
  0x31   : > { %4321 = vmatpush1.msk.msra.mxu0 %vm301_vm15, %v4921_v30  ;;  %458 = vperm.xlu1 %4628, %v380_v39   ;;  %v4373_v30 = vld [vmem:[%s8288_s3 + $0x98] sm:$0xff]  ;;  %v4375_v32 = vld [vmem:[%s8288_s3 + $0xa8] sm:$0xff]  ;;  %v4376_v35 = vld [vmem:[%s8288_s3 + $0xb0] sm:$0xff] }
  0x32   : > { %453 = vperm.xlu0 %4627, %v379_v40   ;;  %4322 = vmatmul.mubr.msk.f32.vlgmr.msra.gmra.mxu0 %vm461_vm0, %v317_v41  ;;  %v4379_v36 = vld [vmem:[%s8288_s3 + $0xc8] sm:$0xff]  ;;  %v4378_v37 = vld [vmem:[%s8288_s3 + $0xc0] sm:$0xff]  ;;  %v4381_v38 = vld [vmem:[%s8288_s3 + $0xd8] sm:$0xff] }
  0x33   : > { %580 = vmatprep.mubr.f32.mxu0 %v4920_v7  ;;  %v4380_v39 = vld [vmem:[%s8288_s3 + $0xd0] sm:$0xff]  ;;  %v4383_v40 = vld [vmem:[%s8288_s3 + $0xe8] sm:$0xff]  ;;  %v4382_v41 = vld [vmem:[%s8288_s3 + $0xe0] sm:$0xff] }
  0x35   : > { %957 = vperm.xlu1 %4628, %v4353_v42   ;;  %v4385_v42 = vld [vmem:[%s8288_s3 + $0xf8] sm:$0xff] }
  0x36   : > { %952 = vperm.xlu0 %4627, %v4352_v43   ;;  %4323 = vmatmul.mubr.msk.f32.gmra.mxu0 %vm461_vm0, %v318_v44  ;;  %v4384_v43 = vld [vmem:[%s8288_s3 + $0xf0] sm:$0xff] }
  0x37   : > { %586 = vmatprep.mubr.f32.mxu0 %v4920_v7 }
  0x39   : > { %1086 = vperm.xlu1 %4628, %v4369_v45  }
  0x3a   : > { %1081 = vperm.xlu0 %4627, %v4368_v46   ;;  %4324 = vmatmul.mubr.msk.f32.gmra.mxu0 %vm461_vm0, %v319_v47  ;;  %v4409_v46 = vld [vmem:[%s8288_s3 + $0x2f8] sm:$0xff]  ;;  %v4408_v47 = vld [vmem:[%s8288_s3 + $0x2f0] sm:$0xff] }
  0x3b   : > { %592 = vmatprep.mubr.f32.mxu0 %v4920_v7 }
  0x3d   : > { %947 = vperm.xlu1 %4628, %v4351_v48  }
  0x3e   : > { %942 = vperm.xlu0 %4627, %v4350_v49   ;;  %4325 = vmatmul.mubr.msk.f32.gmra.mxu0 %vm461_vm0, %v320_v50  ;;  %v4425_v50 = vld [vmem:[%s8288_s3 + $0x478] sm:$0xff] }
  0x3f   : > { %598 = vmatprep.mubr.f32.mxu0 %v4920_v7 }
  0x41   : > { %1076 = vperm.xlu1 %4628, %v4367_v51   ;;  %v4424_v51 = vld [vmem:[%s8288_s3 + $0x470] sm:$0xff] }
  0x42   : > { %1071 = vperm.xlu0 %4627, %v4366_v52   ;;  %4326 = vmatmul.mubr.msk.f32.gmra.mxu0 %vm461_vm0, %v321_v53 }
  0x43   : > { %604 = vmatprep.mubr.f32.mxu0 %v4920_v7 }
  0x45   : > { %937 = vperm.xlu1 %4628, %v4349_v54   ;;  %v4407_v54 = vld [vmem:[%s8288_s3 + $0x2e8] sm:$0xff] }
  0x46   : > { %932 = vperm.xlu0 %4627, %v4348_v55   ;;  %4327 = vmatmul.mubr.msk.f32.gmra.mxu0 %vm461_vm0, %v322_v56  ;;  %v4406_v55 = vld [vmem:[%s8288_s3 + $0x2e0] sm:$0xff] }
  0x47   : > { %610 = vmatprep.mubr.f32.mxu0 %v4920_v7 }
  0x49   : > { %1066 = vperm.xlu1 %4628, %v4365_v57  }
  0x4a   : > { %1061 = vperm.xlu0 %4627, %v4364_v58   ;;  %4328 = vmatmul.mubr.msk.f32.gmra.mxu0 %vm461_vm0, %v323_v59  ;;  %v4423_v58 = vld [vmem:[%s8288_s3 + $0x468] sm:$0xff]  ;;  %v4422_v59 = vld [vmem:[%s8288_s3 + $0x460] sm:$0xff] }
  0x4b   : > { %616 = vmatprep.mubr.f32.mxu0 %v4920_v7 }
  0x4d   : > { %927 = vperm.xlu1 %4628, %v4347_v60  }
  0x4e   : > { %922 = vperm.xlu0 %4627, %v4346_v61   ;;  %4329 = vmatmul.mubr.msk.f32.gmra.mxu0 %vm461_vm0, %v324_v62  ;;  %v4405_v62 = vld [vmem:[%s8288_s3 + $0x2d8] sm:$0xff] }
  0x4f   : > { %622 = vmatprep.mubr.f32.mxu0 %v4920_v7 }
  0x51   : > { %1056 = vperm.xlu1 %4628, %v4363_v63   ;;  %v4404_v63 = vld [vmem:[%s8288_s3 + $0x2d0] sm:$0xff] }
  0x52   : > { %1051 = vperm.xlu0 %4627, %v4362_v0   ;;  %4330 = vmatmul.mubr.msk.f32.gmra.mxu0 %vm461_vm0, %v325_v1 }
  0x53   : > { %628 = vmatprep.mubr.f32.mxu0 %v4920_v7 }
  0x55   : > { %917 = vperm.xlu1 %4628, %v4345_v5   ;;  %v4421_v5 = vld [vmem:[%s8288_s3 + $0x458] sm:$0xff] }
  0x56   : > { %912 = vperm.xlu0 %4627, %v4344_v6   ;;  %4331 = vmatmul.mubr.msk.f32.gmra.mxu0 %vm461_vm0, %v326_v8  ;;  %v4420_v6 = vld [vmem:[%s8288_s3 + $0x450] sm:$0xff] }
  0x57   : > { %634 = vmatprep.mubr.f32.mxu0 %v4920_v7 }
  0x59   : > { %1046 = vperm.xlu1 %4628, %v4361_v9  }
  0x5a   : > { %1041 = vperm.xlu0 %4627, %v4360_v10   ;;  %4332 = vmatmul.mubr.msk.f32.gmra.mxu0 %vm461_vm0, %v327_v11  ;;  %v4403_v10 = vld [vmem:[%s8288_s3 + $0x2c8] sm:$0xff]  ;;  %v4402_v11 = vld [vmem:[%s8288_s3 + $0x2c0] sm:$0xff] }
  0x5b   : > { %640 = vmatprep.mubr.f32.mxu0 %v4920_v7 }
  0x5d   : > { %907 = vperm.xlu1 %4628, %v4343_v12  }
  0x5e   : > { %902 = vperm.xlu0 %4627, %v4342_v13   ;;  %4333 = vmatmul.mubr.msk.f32.gmra.mxu0 %vm461_vm0, %v328_v14  ;;  %v4419_v14 = vld [vmem:[%s8288_s3 + $0x448] sm:$0xff] }
  0x5f   : > { %646 = vmatprep.mubr.f32.mxu0 %v4920_v7 }
  0x61   : > { %1036 = vperm.xlu1 %4628, %v4359_v15   ;;  %v4418_v15 = vld [vmem:[%s8288_s3 + $0x440] sm:$0xff] }
  0x62   : > { %1031 = vperm.xlu0 %4627, %v4358_v16   ;;  %4334 = vmatmul.mubr.msk.f32.gmra.mxu0 %vm461_vm0, %v329_v17 }
  0x63   : > { %652 = vmatprep.mubr.f32.mxu0 %v4920_v7 }
  0x65   : > { %897 = vperm.xlu1 %4628, %v4341_v18   ;;  %v4401_v18 = vld [vmem:[%s8288_s3 + $0x2b8] sm:$0xff] }
  0x66   : > { %892 = vperm.xlu0 %4627, %v4340_v19   ;;  %4335 = vmatmul.mubr.msk.f32.gmra.mxu0 %vm461_vm0, %v330_v20  ;;  %v4400_v19 = vld [vmem:[%s8288_s3 + $0x2b0] sm:$0xff] }
  0x67   : > { %658 = vmatprep.mubr.f32.mxu0 %v4920_v7 }
  0x69   : > { %1026 = vperm.xlu1 %4628, %v4357_v21  }
  0x6a   : > { %1021 = vperm.xlu0 %4627, %v4356_v22   ;;  %4336 = vmatmul.mubr.msk.f32.gmra.mxu0 %vm461_vm0, %v331_v23  ;;  %v4417_v22 = vld [vmem:[%s8288_s3 + $0x438] sm:$0xff]  ;;  %v4416_v23 = vld [vmem:[%s8288_s3 + $0x430] sm:$0xff] }
  0x6b   : > { %664 = vmatprep.mubr.f32.mxu0 %v4920_v7  ;;  %v4354_v7 = vld [vmem:[%s8288_s3 + $0x380] sm:$0xff] }
  0x6d   : > { %887 = vperm.xlu1 %4628, %v4339_v24  }
  0x6e   : > { %882 = vperm.xlu0 %4627, %v4338_v25   ;;  %4337 = vmatmul.mubr.msk.f32.gmra.mxu0 %vm461_vm0, %v332_v26  ;;  %v4399_v26 = vld [vmem:[%s8288_s3 + $0x2a8] sm:$0xff] }
  0x6f   : > { %2647 = vmatprep.mubr.bf16.mxu0 %v8292_v3 }
  0x71   : > { %1016 = vperm.xlu1 %4628, %v4355_v27   ;;  %v4398_v27 = vld [vmem:[%s8288_s3 + $0x2a0] sm:$0xff] }
  0x72   : > { %1011 = vperm.xlu0 %4627, %v4354_v7   ;;  %v4415_v7 = vld [vmem:[%s8288_s3 + $0x428] sm:$0xff] }
  0x75   : > { %1465 = vperm.xlu1 %4628, %v4371_v28  }
  0x76   : > { %1460 = vperm.xlu0 %4627, %v4370_v29   ;;  %v4414_v29 = vld [vmem:[%s8288_s3 + $0x420] sm:$0xff] }
  0x79   : > { %1475 = vperm.xlu1 %4628, %v4373_v30  }
  0x7a   : > { %1470 = vperm.xlu0 %4627, %v4372_v31   ;;  %v4397_v31 = vld [vmem:[%s8288_s3 + $0x298] sm:$0xff] }
  0x7d   : > { %1485 = vperm.xlu1 %4628, %v4375_v32   ;;  %v4396_v32 = vld [vmem:[%s8288_s3 + $0x290] sm:$0xff] }
  0x7e   : > { %1480 = vperm.xlu0 %4627, %v4374_v33  }
  0x81   : > { %1495 = vperm.xlu1 %4628, %v4377_v34  }
  0x82   : > { %1490 = vperm.xlu0 %4627, %v4376_v35   ;;  %v4413_v35 = vld [vmem:[%s8288_s3 + $0x418] sm:$0xff] }
  0x85   : > { %1505 = vperm.xlu1 %4628, %v4379_v36   ;;  %v4412_v36 = vld [vmem:[%s8288_s3 + $0x410] sm:$0xff] }
  0x86   : > { %1500 = vperm.xlu0 %4627, %v4378_v37   ;;  %v4395_v37 = vld [vmem:[%s8288_s3 + $0x288] sm:$0xff] }
  0x89   : > { %1515 = vperm.xlu1 %4628, %v4381_v38  }
  0x8a   : > { %1510 = vperm.xlu0 %4627, %v4380_v39   ;;  %v4394_v39 = vld [vmem:[%s8288_s3 + $0x280] sm:$0xff] }
  0x8d   : > { %1525 = vperm.xlu1 %4628, %v4383_v40  }
  0x8e   : > { %1520 = vperm.xlu0 %4627, %v4382_v41   ;;  %v4411_v41 = vld [vmem:[%s8288_s3 + $0x408] sm:$0xff] }
  0x90   : > { %v5368_v44 = vpop.permute.xlu1 %393  ;;  %v5370_v45 = vpop.permute.xlu0 %383 }
  0x91   : > { %1535 = vperm.xlu1 %4628, %v4385_v42   ;;  %v4410_v42 = vld [vmem:[%s8288_s3 + $0x400] sm:$0xff] }
  0x92   : > { %1530 = vperm.xlu0 %4627, %v4384_v43  }
  0x94   : > { %v5378_v48 = vpop.permute.xlu1 %398  ;;  %v5380_v49 = vpop.permute.xlu0 %388 }
  0x95   : > { %1985 = vperm.xlu1 %4628, %v4409_v46  }
  0x96   : > { %1980 = vperm.xlu0 %4627, %v4408_v47   ;;  %v4443_v47 = vld [vmem:[%s8288_s3 + $0x108] sm:$0xff] }
  0x98   : > { %v5388_v52 = vpop.permute.xlu1 %408  ;;  %v5390_v53 = vpop.permute.xlu0 %403 }
  0x99   : > { %2114 = vperm.xlu1 %4628, %v4425_v50   ;;  %v4442_v50 = vld [vmem:[%s8288_s3 + $0x100] sm:$0xff] }
  0x9a   : > { %2109 = vperm.xlu0 %4627, %v4424_v51   ;;  %v4445_v51 = vld [vmem:[%s8288_s3 + $0x118] sm:$0xff] }
  0x9c   : > { %v5398_v56 = vpop.permute.xlu1 %418  ;;  %v5400_v57 = vpop.permute.xlu0 %413 }
  0x9d   : > { %1975 = vperm.xlu1 %4628, %v4407_v54  }
  0x9e   : > { %1970 = vperm.xlu0 %4627, %v4406_v55   ;;  %v4444_v55 = vld [vmem:[%s8288_s3 + $0x110] sm:$0xff] }
  0xa0   : > { %v5408_v60 = vpop.permute.xlu1 %428  ;;  %v5410_v61 = vpop.permute.xlu0 %423 }
  0xa1   : > { %2104 = vperm.xlu1 %4628, %v4423_v58  }
  0xa2   : > { %2099 = vperm.xlu0 %4627, %v4422_v59   ;;  %v4447_v59 = vld [vmem:[%s8288_s3 + $0x128] sm:$0xff] }
  0xa4   : > { %v5418_v0 = vpop.permute.xlu1 %438 }
  0xa5   : > { %v5420_v1 = vpop.permute.xlu0 %433  ;;  %1965 = vperm.xlu1 %4628, %v4405_v62   ;;  %v4446_v62 = vld [vmem:[%s8288_s3 + $0x120] sm:$0xff] }
  0xa6   : > { %1960 = vperm.xlu0 %4627, %v4404_v63  }
  0xa8   : > { %v5428_v8 = vpop.permute.xlu1 %448 }
  0xa9   : > { %v5430_v9 = vpop.permute.xlu0 %443  ;;  %2094 = vperm.xlu1 %4628, %v4421_v5  }
  0xaa   : > { %2089 = vperm.xlu0 %4627, %v4420_v6   ;;  %v4449_v6 = vld [vmem:[%s8288_s3 + $0x138] sm:$0xff] }
  0xac   : > { %v5438_v12 = vpop.permute.xlu1 %458 }
  0xad   : > { %v5440_v13 = vpop.permute.xlu0 %453  ;;  %1955 = vperm.xlu1 %4628, %v4403_v10   ;;  %v4448_v10 = vld [vmem:[%s8288_s3 + $0x130] sm:$0xff] }
  0xae   : > { %1950 = vperm.xlu0 %4627, %v4402_v11   ;;  %v4451_v11 = vld [vmem:[%s8288_s3 + $0x148] sm:$0xff] }
  0xb0   : > { %v5448_v16 = vpop.permute.xlu1 %957 }
  0xb1   : > { %v5450_v17 = vpop.permute.xlu0 %952  ;;  %2084 = vperm.xlu1 %4628, %v4419_v14  }
  0xb2   : > { %2079 = vperm.xlu0 %4627, %v4418_v15   ;;  %v4450_v15 = vld [vmem:[%s8288_s3 + $0x140] sm:$0xff] }
  0xb4   : > { %v5458_v20 = vpop.permute.xlu1 %1086 }
  0xb5   : > { %v5460_v21 = vpop.permute.xlu0 %1081  ;;  %1945 = vperm.xlu1 %4628, %v4401_v18  }
  0xb6   : > { %1940 = vperm.xlu0 %4627, %v4400_v19   ;;  %v4453_v19 = vld [vmem:[%s8288_s3 + $0x158] sm:$0xff] }
  0xb8   : > { %v5468_v24 = vpop.permute.xlu1 %947 }
  0xb9   : > { %2074 = vperm.xlu1 %4628, %v4417_v22   ;;  %v5470_v25 = vpop.permute.xlu0 %942  ;;  %v4452_v22 = vld [vmem:[%s8288_s3 + $0x150] sm:$0xff] }
  0xba   : > { %2069 = vperm.xlu0 %4627, %v4416_v23  }
  0xbc   : > { %v5481_v28 = vpop.permute.xlu1 %1076 }
  0xbd   : > { %1935 = vperm.xlu1 %4628, %v4399_v26   ;;  %v5486_v30 = vpop.permute.xlu0 %1071 }
  0xbe   : > { %1930 = vperm.xlu0 %4627, %v4398_v27   ;;  %v4455_v27 = vld [vmem:[%s8288_s3 + $0x168] sm:$0xff] }
  0xc0   : > { %v5494_v33 = vpop.permute.xlu1 %937 }
  0xc1   : > { %2064 = vperm.xlu1 %4628, %v4415_v7   ;;  %v5496_v34 = vpop.permute.xlu0 %932  ;;  %v4454_v7 = vld [vmem:[%s8288_s3 + $0x160] sm:$0xff] }
  0xc2   : > { %2059 = vperm.xlu0 %4627, %v4414_v29   ;;  %v4457_v29 = vld [vmem:[%s8288_s3 + $0x178] sm:$0xff] }
  0xc4   : > { %v5507_v38 = vpop.permute.xlu1 %1066 }
  0xc5   : > { %1925 = vperm.xlu1 %4628, %v4397_v31   ;;  %v5512_v40 = vpop.permute.xlu0 %1061 }
  0xc6   : > { %1920 = vperm.xlu0 %4627, %v4396_v32   ;;  %v4456_v32 = vld [vmem:[%s8288_s3 + $0x170] sm:$0xff] }
  0xc8   : > { %v5520_v43 = vpop.permute.xlu1 %927 }
  0xc9   : > { %2054 = vperm.xlu1 %4628, %v4413_v35   ;;  %8370 = vst [vmem:[#allocation6_spill] sm:$0xff] %v5520_v43  ;;  %v5522_v46 = vpop.permute.xlu0 %922 }
  0xca   : > { %2049 = vperm.xlu0 %4627, %v4412_v36   ;;  %8371 = vst [vmem:[#allocation7_spill] sm:$0xff] %v5522_v46 }
  0xcc   : > { %v5533_v54 = vpop.permute.xlu1 %1056 }
  0xcd   : > { %1915 = vperm.xlu1 %4628, %v4395_v37   ;;  %8372 = vst [vmem:[#allocation8_spill] sm:$0xff] %v5533_v54  ;;  %v5538_v58 = vpop.permute.xlu0 %1051  ;;  %v4481_v37 = vld [vmem:[%s8288_s3 + $0x378] sm:$0xff] }
  0xce   : > { %1910 = vperm.xlu0 %4627, %v4394_v39   ;;  %8373 = vst [vmem:[#allocation9_spill] sm:$0xff] %v5538_v58  ;;  %v4480_v39 = vld [vmem:[%s8288_s3 + $0x370] sm:$0xff] }
  0xd0   : > { %v5546_v63 = vpop.permute.xlu1 %917 }
  0xd1   : > { %2044 = vperm.xlu1 %4628, %v4411_v41   ;;  %8374 = vst [vmem:[#allocation10_spill] sm:$0xff] %v5546_v63  ;;  %v5548_v5 = vpop.permute.xlu0 %912 }
  0xd2   : > { %2039 = vperm.xlu0 %4627, %v4410_v42   ;;  %8375 = vst [vmem:[#allocation11_spill] sm:$0xff] %v5548_v5 }
  0xd4   : > { %v5559_v14 = vpop.permute.xlu1 %1046 }
  0xd5   : > { %2494 = vperm.xlu1 %4628, %v4443_v47   ;;  %8376 = vst [vmem:[#allocation12_spill] sm:$0xff] %v5559_v14  ;;  %v5564_v18 = vpop.permute.xlu0 %1041 }
  0xd6   : > { %2489 = vperm.xlu0 %4627, %v4442_v50   ;;  %8377 = vst [vmem:[#allocation13_spill] sm:$0xff] %v5564_v18 }
  0xd8   : > { %v5572_v23 = vpop.permute.xlu1 %907 }
  0xd9   : > { %2504 = vperm.xlu1 %4628, %v4445_v51   ;;  %8378 = vst [vmem:[#allocation14_spill] sm:$0xff] %v5572_v23  ;;  %v5574_v26 = vpop.permute.xlu0 %902  ;;  %v4497_v51 = vld [vmem:[%s8288_s3 + $0x4f8] sm:$0xff] }
  0xda   : > { %2499 = vperm.xlu0 %4627, %v4444_v55   ;;  %8379 = vst [vmem:[#allocation15_spill] sm:$0xff] %v5574_v26  ;;  %v4496_v55 = vld [vmem:[%s8288_s3 + $0x4f0] sm:$0xff] }
  0xdc   : > { %v5585_v31 = vpop.permute.xlu1 %1036 }
  0xdd   : > { %2514 = vperm.xlu1 %4628, %v4447_v59   ;;  %8380 = vst [vmem:[#allocation16_spill] sm:$0xff] %v5585_v31  ;;  %v5590_v35 = vpop.permute.xlu0 %1031 }
  0xde   : > { %2509 = vperm.xlu0 %4627, %v4446_v62   ;;  %8381 = vst [vmem:[#allocation17_spill] sm:$0xff] %v5590_v35 }
  0xe0   : > { %v5598_v42 = vpop.permute.xlu1 %897 }
  0xe1   : > { %2524 = vperm.xlu1 %4628, %v4449_v6   ;;  %8382 = vst [vmem:[#allocation18_spill] sm:$0xff] %v5598_v42  ;;  %v5600_v47 = vpop.permute.xlu0 %892  ;;  %v4479_v6 = vld [vmem:[%s8288_s3 + $0x368] sm:$0xff] }
  0xe2   : > { %2519 = vperm.xlu0 %4627, %v4448_v10   ;;  %8383 = vst [vmem:[#allocation19_spill] sm:$0xff] %v5600_v47 }
  0xe4   : > { %v5611_v10 = vpop.permute.xlu1 %1026 }
  0xe5   : > { %2534 = vperm.xlu1 %4628, %v4451_v11   ;;  %8384 = vst [vmem:[#allocation20_spill] sm:$0xff] %v5611_v10  ;;  %v4478_v11 = vld [vmem:[%s8288_s3 + $0x360] sm:$0xff] }
  0xe6   : > { %2529 = vperm.xlu0 %4627, %v4450_v15   ;;  %v5616_v15 = vpop.permute.xlu0 %1021 }
  0xe7   : > { %8385 = vst [vmem:[#allocation21_spill] sm:$0xff] %v5616_v15  ;;  %v4491_v15 = vld [vmem:[%s8288_s3 + $0x4c8] sm:$0xff] }
  0xe9   : > { %2544 = vperm.xlu1 %4628, %v4453_v19  }
  0xea   : > { %2539 = vperm.xlu0 %4627, %v4452_v22  }
  0xed   : > { %2554 = vperm.xlu1 %4628, %v4455_v27   ;;  %v4495_v27 = vld [vmem:[%s8288_s3 + $0x4e8] sm:$0xff] }
  0xee   : > { %2549 = vperm.xlu0 %4627, %v4454_v7   ;;  %v4494_v7 = vld [vmem:[%s8288_s3 + $0x4e0] sm:$0xff] }
  0xf1   : > { %2564 = vperm.xlu1 %4628, %v4457_v29  }
  0xf2   : > { %2559 = vperm.xlu0 %4627, %v4456_v32   ;;  %v576_v36 = vpop.f32.mrf.mxu0  ;;  %v5624_v32 = vpop.permute.xlu1 %887 }
  0xf3   : > { %8386 = vst [vmem:[#allocation22_spill] sm:$0xff] %v5624_v32  ;;  %v5664_v42 = vadd.f32 %v576_v36, %v5370_v45 }
  0xf4   : > { %v578_v41 = vpop.f32.mrf.mxu0 }
  0xf5   : > { %3014 = vperm.xlu1 %4628, %v4481_v37   ;;  %v5626_v37 = vpop.permute.xlu0 %882 }
  0xf6   : > { %3009 = vperm.xlu0 %4627, %v4480_v39   ;;  %v582_v50 = vpop.f32.mrf.mxu0  ;;  %8387 = vst [vmem:[#allocation23_spill] sm:$0xff] %v5626_v37  ;;  %v5637_v2 = vpop.permute.xlu1 %1016 }
  0xf7   : > { %8388 = vst [vmem:[#allocation24_spill] sm:$0xff] %v5637_v2  ;;  %v5653_v10 = vadd.f32 %v582_v50, %v5380_v49  ;;  %v4490_v50 = vld [vmem:[%s8288_s3 + $0x4c0] sm:$0xff] }
  0xf8   : > { %v584_v59 = vpop.f32.mrf.mxu0 }
  0xf9   : > { %3143 = vperm.xlu1 %4628, %v4497_v51   ;;  %v4477_v51 = vld [vmem:[%s8288_s3 + $0x358] sm:$0xff]  ;;  %v5642_v3 = vpop.permute.xlu0 %1011  ;;  %v671_v47 = vadd.f32 %v5653_v10, %v5664_v42 }
  0xfa   : > { %3138 = vperm.xlu0 %4627, %v4496_v55   ;;  %v588_v62 = vpop.f32.mrf.mxu0  ;;  %v4476_v55 = vld [vmem:[%s8288_s3 + $0x350] sm:$0xff]  ;;  %8389 = vst [vmem:[#allocation25_spill] sm:$0xff] %v5642_v3  ;;  %v5650_v2 = vpop.permute.xlu1 %1465 }
  0xfb   : > { %8390 = vst [vmem:[#allocation26_spill] sm:$0xff] %v5650_v2  ;;  %v5667_v2 = vadd.f32 %v588_v62, %v5368_v44 }
  0xfc   : > { %v590_v19 = vpop.f32.mrf.mxu0 }
  0xfd   : > { %3004 = vperm.xlu1 %4628, %v4479_v6   ;;  %v5655_v3 = vpop.permute.xlu0 %1460  ;;  %v672_v18 = vadd.f32 %v671_v47, %v5667_v2  ;;  %v4488_v47 = vld [vmem:[%s8288_s3 + $0x4b0] sm:$0xff] }
  0xfe   : > { %2999 = vperm.xlu0 %4627, %v4478_v11   ;;  %v594_v22 = vpop.f32.mrf.mxu0  ;;  %8391 = vst [vmem:[#allocation27_spill] sm:$0xff] %v5655_v3 }
  0xff   : > { %v5681_v36 = vadd.f32 %v594_v22, %v5378_v48 }
 0x100   : > { %v596_v29 = vpop.f32.mrf.mxu0 }
 0x101   : > { %3133 = vperm.xlu1 %4628, %v4495_v27   ;;  %v4493_v27 = vld [vmem:[%s8288_s3 + $0x4d8] sm:$0xff]  ;;  %v5686_v3 = vadd.f32 %v596_v29, %v5378_v48  ;;  %v4472_v48 = vld [vmem:[%s8288_s3 + $0x330] sm:$0xff]  ;;  %v719_v26 = vmul.f32 %v5681_v36, %v5681_v36 }
 0x102   : > { %3128 = vperm.xlu0 %4627, %v4494_v7   ;;  %v600_v39 = vpop.f32.mrf.mxu0  ;;  %v4492_v7 = vld [vmem:[%s8288_s3 + $0x4d0] sm:$0xff] }
 0x103   : > { %v5698_v22 = vadd.f32 %v600_v39, %v5390_v53  ;;  %v720_v63 = vmul.f32 %v5686_v3, %v5686_v3 }
 0x104   : > { %v602_v6 = vpop.f32.mrf.mxu0 }
 0x105   : > { %2994 = vperm.xlu1 %4628, %v4477_v51   ;;  %v4475_v51 = vld [vmem:[%s8288_s3 + $0x348] sm:$0xff]  ;;  %v5712_v31 = vadd.f32 %v602_v6, %v5390_v53 }
 0x106   : > { %2989 = vperm.xlu0 %4627, %v4476_v55   ;;  %v606_v11 = vpop.f32.mrf.mxu0  ;;  %v4474_v55 = vld [vmem:[%s8288_s3 + $0x340] sm:$0xff] }
 0x107   : > { %v5719_v14 = vadd.f32 %v606_v11, %v5388_v52  ;;  %v721_v11 = vmul.f32 %v5698_v22, %v5698_v22 }
 0x108   : > { %v608_v4 = vpop.f32.mrf.mxu0 }
 0x109   : > { %3123 = vperm.xlu1 %4628, %v4493_v27   ;;  %v5658_v27 = vadd.f32 %v584_v59, %v5380_v49  ;;  %v5676_v49 = vadd.f32 %v590_v19, %v5368_v44  ;;  %v4473_v44 = vld [vmem:[%s8288_s3 + $0x338] sm:$0xff]  ;;  %v5693_v19 = vpop.permute.xlu1 %1475  ;;  %v5725_v53 = vadd.f32 %v608_v4, %v5388_v52 }
 0x10a   : > { %3118 = vperm.xlu0 %4627, %v4492_v7   ;;  %v612_v32 = vpop.f32.mrf.mxu0  ;;  %8392 = vst [vmem:[#allocation28_spill] sm:$0xff] %v5693_v19 }
 0x10b   : > { %v716_v62 = vmul.f32 %v5658_v27, %v5658_v27  ;;  %v718_v19 = vmul.f32 %v5676_v49, %v5676_v49 }
 0x10c   : > { %v614_v37 = vpop.f32.mrf.mxu0 }
 0x10d   : > { %2984 = vperm.xlu1 %4628, %v4475_v51   ;;  %v5673_v51 = vadd.f32 %v578_v41, %v5370_v45  ;;  %v713_v41 = vmul.f32 %v5664_v42, %v5664_v42  ;;  %v5747_v5 = vadd.f32 %v614_v37, %v5400_v57 }
 0x10e   : > { %2979 = vperm.xlu0 %4627, %v4474_v55   ;;  %v618_v7 = vpop.f32.mrf.mxu0  ;;  %v715_v55 = vmul.f32 %v5653_v10, %v5653_v10 }
 0x10f   : > { %v714_v29 = vmul.f32 %v5673_v51, %v5673_v51  ;;  %v692_v23 = vadd.f32 %v5658_v27, %v5673_v51  ;;  %v5750_v54 = vadd.f32 %v618_v7, %v5398_v56 }
 0x110   : > { %v620_v59 = vpop.f32.mrf.mxu0  ;;  %v745_v35 = vadd.f32 %v715_v55, %v713_v41  ;;  %v4489_v55 = vld [vmem:[%s8288_s3 + $0x4b8] sm:$0xff] }
 0x111   : > { %3113 = vperm.xlu1 %4628, %v4491_v15   ;;  %v717_v15 = vmul.f32 %v5667_v2, %v5667_v2  ;;  %v693_v4 = vadd.f32 %v692_v23, %v5676_v49 }
 0x112   : > { %3108 = vperm.xlu0 %4627, %v4490_v50   ;;  %v624_v45 = vpop.f32.mrf.mxu0  ;;  %v5705_v50 = vpop.permute.xlu0 %1470 }
 0x113   : > { %8393 = vst [vmem:[#allocation29_spill] sm:$0xff] %v5705_v50  ;;  %v766_v50 = vadd.f32 %v716_v62, %v714_v29  ;;  %v746_v41 = vadd.f32 %v745_v35, %v717_v15  ;;  %v5733_v62 = vadd.f32 %v612_v32, %v5400_v57  ;;  %v5742_v35 = vpop.permute.xlu1 %1485  ;;  %v723_v32 = vmul.f32 %v5719_v14, %v5719_v14  ;;  %v4471_v57 = vld [vmem:[%s8288_s3 + $0x328] sm:$0xff] }
 0x114   : > { %v626_v39 = vpop.f32.mrf.mxu0  ;;  %8394 = vst [vmem:[#allocation30_spill] sm:$0xff] %v5742_v35 }
 0x115   : > { %2974 = vperm.xlu1 %4628, %v4473_v44   ;;  %v767_v52 = vadd.f32 %v766_v50, %v718_v19  ;;  %v673_v44 = vadd.f32 %v672_v18, %v5681_v36  ;;  %v747_v15 = vadd.f32 %v746_v41, %v719_v26  ;;  %v694_v18 = vadd.f32 %v693_v4, %v5686_v3  ;;  %v4470_v4 = vld [vmem:[%s8288_s3 + $0x320] sm:$0xff] }
 0x116   : > { %2969 = vperm.xlu0 %4627, %v4472_v48   ;;  %v630_v6 = vpop.f32.mrf.mxu0  ;;  %v722_v48 = vmul.f32 %v5712_v31, %v5712_v31  ;;  %v5752_v23 = vpop.permute.xlu0 %1480  ;;  %v724_v26 = vmul.f32 %v5725_v53, %v5725_v53  ;;  %v725_v7 = vmul.f32 %v5733_v62, %v5733_v62 }
 0x117   : > { %8395 = vst [vmem:[#allocation31_spill] sm:$0xff] %v5752_v23  ;;  %v768_v19 = vadd.f32 %v767_v52, %v720_v63  ;;  %v674_v50 = vadd.f32 %v673_v44, %v5698_v22  ;;  %v748_v37 = vadd.f32 %v747_v15, %v721_v11  ;;  %v5767_v63 = vadd.f32 %v624_v45, %v5410_v61 }
 0x118   : > { %v632_v29 = vpop.f32.mrf.mxu0  ;;  %v726_v15 = vmul.f32 %v5747_v5, %v5747_v5 }
 0x119   : > { %3103 = vperm.xlu1 %4628, %v4489_v55   ;;  %v5764_v55 = vadd.f32 %v620_v59, %v5398_v56  ;;  %v769_v52 = vadd.f32 %v768_v19, %v722_v48  ;;  %v675_v44 = vadd.f32 %v674_v50, %v5719_v14  ;;  %v749_v11 = vadd.f32 %v748_v37, %v723_v32  ;;  %v4487_v32 = vld [vmem:[%s8288_s3 + $0x4a8] sm:$0xff]  ;;  %v5788_v19 = vpop.permute.xlu1 %1495 }
 0x11a   : > { %3098 = vperm.xlu0 %4627, %v4488_v47   ;;  %v636_v41 = vpop.f32.mrf.mxu0  ;;  %v695_v47 = vadd.f32 %v694_v18, %v5712_v31  ;;  %v727_v56 = vmul.f32 %v5750_v54, %v5750_v54  ;;  %v5779_v59 = vadd.f32 %v626_v39, %v5410_v61  ;;  %v5783_v18 = vadd.f32 %v630_v6, %v5408_v60  ;;  %v4486_v6 = vld [vmem:[%s8288_s3 + $0x4a0] sm:$0xff] }
 0x11b   : > { %v770_v23 = vadd.f32 %v769_v52, %v724_v26  ;;  %8396 = vst [vmem:[#allocation32_spill] sm:$0xff] %v5788_v19  ;;  %v676_v50 = vadd.f32 %v675_v44, %v5733_v62  ;;  %v750_v37 = vadd.f32 %v749_v11, %v725_v7  ;;  %v728_v61 = vmul.f32 %v5764_v55, %v5764_v55  ;;  %v5798_v26 = vpop.permute.xlu0 %1490 }
 0x11c   : > { %v638_v35 = vpop.f32.mrf.mxu0  ;;  %v696_v45 = vadd.f32 %v695_v47, %v5725_v53  ;;  %v729_v39 = vmul.f32 %v5767_v63, %v5767_v63  ;;  %8397 = vst [vmem:[#allocation33_spill] sm:$0xff] %v5798_v26  ;;  %v5805_v47 = vadd.f32 %v636_v41, %v5420_v1  ;;  %v730_v19 = vmul.f32 %v5779_v59, %v5779_v59 }
 0x11d   : > { %2964 = vperm.xlu1 %4628, %v4471_v57   ;;  %v771_v52 = vadd.f32 %v770_v23, %v726_v15  ;;  %v677_v44 = vadd.f32 %v676_v50, %v5750_v54  ;;  %v751_v11 = vadd.f32 %v750_v37, %v727_v56  ;;  %v731_v26 = vmul.f32 %v5783_v18, %v5783_v18  ;;  %v4469_v23 = vld [vmem:[%s8288_s3 + $0x318] sm:$0xff] }
 0x11e   : > { %2959 = vperm.xlu0 %4627, %v4470_v4   ;;  %v642_v48 = vpop.f32.mrf.mxu0  ;;  %v697_v57 = vadd.f32 %v696_v45, %v5747_v5  ;;  %v5802_v4 = vadd.f32 %v632_v29, %v5408_v60  ;;  %v5813_v45 = vadd.f32 %v638_v35, %v5420_v1  ;;  %v4468_v1 = vld [vmem:[%s8288_s3 + $0x310] sm:$0xff] }
 0x11f   : > { %v5816_v60 = vadd.f32 %v642_v48, %v5418_v0  ;;  %v772_v15 = vadd.f32 %v771_v52, %v728_v61  ;;  %v678_v56 = vadd.f32 %v677_v44, %v5767_v63  ;;  %v733_v48 = vmul.f32 %v5805_v47, %v5805_v47  ;;  %v5840_v44 = vpop.permute.xlu0 %1500 }
 0x120   : > { %v644_v7 = vpop.f32.mrf.mxu0  ;;  %v698_v41 = vadd.f32 %v697_v57, %v5764_v55  ;;  %v732_v35 = vmul.f32 %v5802_v4, %v5802_v4  ;;  %8399 = vst [vmem:[#allocation35_spill] sm:$0xff] %v5840_v44  ;;  %v734_v58 = vmul.f32 %v5813_v45, %v5813_v45 }
 0x121   : > { %3093 = vperm.xlu1 %4628, %v4487_v32   ;;  %v752_v32 = vadd.f32 %v751_v11, %v729_v39  ;;  %v5831_v50 = vadd.f32 %v644_v7, %v5418_v0  ;;  %v773_v57 = vadd.f32 %v772_v15, %v730_v19  ;;  %v679_v52 = vadd.f32 %v678_v56, %v5783_v18  ;;  %v4485_v19 = vld [vmem:[%s8288_s3 + $0x498] sm:$0xff]  ;;  %v4484_v15 = vld [vmem:[%s8288_s3 + $0x490] sm:$0xff] }
 0x122   : > { %3088 = vperm.xlu0 %4627, %v4486_v6   ;;  %v648_v29 = vpop.f32.mrf.mxu0  ;;  %v5836_v6 = vpop.permute.xlu1 %1505  ;;  %v699_v39 = vadd.f32 %v698_v41, %v5779_v59  ;;  %v735_v0 = vmul.f32 %v5816_v60, %v5816_v60 }
 0x123   : > { %v5834_v37 = vadd.f32 %v648_v29, %v5430_v9  ;;  %8398 = vst [vmem:[#allocation34_spill] sm:$0xff] %v5836_v6  ;;  %v753_v11 = vadd.f32 %v752_v32, %v731_v26  ;;  %v680_v41 = vadd.f32 %v679_v52, %v5805_v47  ;;  %v774_v56 = vadd.f32 %v773_v57, %v732_v35 }
 0x124   : > { %v650_v61 = vpop.f32.mrf.mxu0  ;;  %v736_v32 = vmul.f32 %v5831_v50, %v5831_v50 }
 0x125   : > { %2954 = vperm.xlu1 %4628, %v4469_v23   ;;  %v5847_v7 = vadd.f32 %v650_v61, %v5430_v9  ;;  %v700_v23 = vadd.f32 %v699_v39, %v5802_v4  ;;  %v754_v9 = vadd.f32 %v753_v11, %v733_v48  ;;  %v681_v52 = vadd.f32 %v680_v41, %v5816_v60  ;;  %v4467_v11 = vld [vmem:[%s8288_s3 + $0x308] sm:$0xff]  ;;  %v5886_v41 = vpop.permute.xlu0 %1510 }
 0x126   : > { %2949 = vperm.xlu0 %4627, %v4468_v1   ;;  %v654_v29 = vpop.f32.mrf.mxu0  ;;  %v737_v1 = vmul.f32 %v5834_v37, %v5834_v37  ;;  %v775_v6 = vadd.f32 %v774_v56, %v734_v58  ;;  %8401 = vst [vmem:[#allocation37_spill] sm:$0xff] %v5886_v41 }
 0x127   : > { %v5855_v26 = vadd.f32 %v654_v29, %v5428_v8  ;;  %v701_v39 = vadd.f32 %v700_v23, %v5813_v45  ;;  %v755_v44 = vadd.f32 %v754_v9, %v735_v0  ;;  %v738_v35 = vmul.f32 %v5847_v7, %v5847_v7  ;;  %v5876_v23 = vpop.permute.xlu1 %1515  ;;  %v4466_v0 = vld [vmem:[%s8288_s3 + $0x300] sm:$0xff] }
 0x128   : > { %v656_v61 = vpop.f32.mrf.mxu0  ;;  %8400 = vst [vmem:[#allocation36_spill] sm:$0xff] %v5876_v23 }
 0x129   : > { %v5867_v29 = vadd.f32 %v656_v61, %v5428_v8  ;;  %3083 = vperm.xlu1 %4628, %v4485_v19   ;;  %v739_v48 = vmul.f32 %v5855_v26, %v5855_v26  ;;  %v702_v8 = vadd.f32 %v701_v39, %v5831_v50  ;;  %v682_v19 = vadd.f32 %v681_v52, %v5834_v37 }
 0x12a   : > { %3078 = vperm.xlu0 %4627, %v4484_v15   ;;  %v660_v57 = vpop.f32.mrf.mxu0  ;;  %v776_v15 = vadd.f32 %v775_v6, %v736_v32  ;;  %v756_v56 = vadd.f32 %v755_v44, %v737_v1  ;;  %v4483_v44 = vld [vmem:[%s8288_s3 + $0x488] sm:$0xff] }
 0x12b   : > { %v5881_v58 = vadd.f32 %v660_v57, %v5440_v13  ;;  %v740_v9 = vmul.f32 %v5867_v29, %v5867_v29  ;;  %v703_v23 = vadd.f32 %v702_v8, %v5847_v7  ;;  %v683_v39 = vadd.f32 %v682_v19, %v5855_v26 }
 0x12c   : > { %v662_v61 = vpop.f32.mrf.mxu0  ;;  %v777_v43 = vadd.f32 %v776_v15, %v738_v35  ;;  %v757_v46 = vadd.f32 %v756_v56, %v739_v48 }
 0x12d   : > { %v741_v52 = vmul.f32 %v5881_v58, %v5881_v58  ;;  %v5895_v57 = vadd.f32 %v662_v61, %v5440_v13  ;;  %2944 = vperm.xlu1 %4628, %v4467_v11   ;;  %v704_v32 = vadd.f32 %v703_v23, %v5867_v29  ;;  %v684_v1 = vadd.f32 %v683_v39, %v5881_v58  ;;  %v4482_v13 = vld [vmem:[%s8288_s3 + $0x480] sm:$0xff]  ;;  %v5919_v39 = vpop.permute.xlu0 %1520 }
 0x12e   : > { %2939 = vperm.xlu0 %4627, %v4466_v0   ;;  %v666_v6 = vpop.f32.mrf.mxu0  ;;  %v778_v35 = vadd.f32 %v777_v43, %v740_v9  ;;  %v5910_v0 = vpop.permute.xlu1 %1525  ;;  %8403 = vst [vmem:[#allocation39_spill] sm:$0xff] %v5919_v39  ;;  %v4515_v43 = vld [vmem:[%s8288_s3 + $0x188] sm:$0xff]  ;;  %v4516_v39 = vld [vmem:[%s8288_s3 + $0x190] sm:$0xff] }
 0x12f   : > { %v742_v8 = vmul.f32 %v5895_v57, %v5895_v57  ;;  %v5905_v19 = vadd.f32 %v666_v6, %v5438_v12  ;;  %v758_v48 = vadd.f32 %v757_v46, %v741_v52  ;;  %8402 = vst [vmem:[#allocation38_spill] sm:$0xff] %v5910_v0  ;;  %v705_v15 = vadd.f32 %v704_v32, %v5895_v57 }
 0x130   : > { %v668_v11 = vpop.f32.mrf.mxu0 }
 0x131   : > { %v685_v23 = vadd.f32 %v684_v1, %v5905_v19  ;;  %v743_v56 = vmul.f32 %v5905_v19, %v5905_v19  ;;  %v5917_v61 = vadd.f32 %v668_v11, %v5438_v12  ;;  %3073 = vperm.xlu1 %4628, %v4483_v44   ;;  %v779_v6 = vadd.f32 %v778_v35, %v742_v8  ;;  %v4514_v12 = vld [vmem:[%s8288_s3 + $0x180] sm:$0xff] }
 0x132   : > { %3068 = vperm.xlu0 %4627, %v4482_v13   ;;  %v4517_v13 = vld [vmem:[%s8288_s3 + $0x198] sm:$0xff]  ;;  %v5933_v35 = vpop.permute.xlu1 %1535 }
 0x133   : > { %v686_v46 = vrot.slane %v685_v23, 4  ;;  %v759_v9 = vadd.f32 %v758_v48, %v743_v56  ;;  %v706_v52 = vadd.f32 %v705_v15, %v5917_v61  ;;  %v744_v32 = vmul.f32 %v5917_v61, %v5917_v61  ;;  %8404 = vst [vmem:[#allocation40_spill] sm:$0xff] %v5933_v35 }
 0x135   : > { %v687_v44 = vadd.f32 %v686_v46, %v685_v23  ;;  %v760_v1 = vrot.slane %v759_v9, 4  ;;  %v707_v11 = vrot.slane %v706_v52, 4  ;;  %v780_v8 = vadd.f32 %v779_v6, %v744_v32  ;;  %3523 = vperm.xlu1 %4628, %v4515_v43   ;;  %v5938_v23 = vpop.permute.xlu0 %1530 }
 0x136   : > { %3518 = vperm.xlu0 %4627, %v4514_v12   ;;  %8405 = vst [vmem:[#allocation41_spill] sm:$0xff] %v5938_v23  ;;  %v4519_v12 = vld [vmem:[%s8288_s3 + $0x1a8] sm:$0xff]  ;;  %v5946_v41 = vpop.permute.xlu1 %1985 }
 0x137   : > { %v688_v48 = vrot.slane %v687_v44, 2  ;;  %v761_v15 = vadd.f32 %v760_v1, %v759_v9  ;;  %v708_v56 = vadd.f32 %v707_v11, %v706_v52  ;;  %v781_v0 = vrot.slane %v780_v8, 4  ;;  %v4518_v11 = vld [vmem:[%s8288_s3 + $0x1a0] sm:$0xff]  ;;  %8406 = vst [vmem:[#allocation42_spill] sm:$0xff] %v5946_v41 }
 0x139   : > { %v689_v46 = vadd.f32 %v688_v48, %v687_v44  ;;  %v762_v6 = vrot.slane %v761_v15, 2  ;;  %v709_v43 = vrot.slane %v708_v56, 2  ;;  %v782_v32 = vadd.f32 %v781_v0, %v780_v8  ;;  %3533 = vperm.xlu1 %4628, %v4517_v13   ;;  %v4521_v8 = vld [vmem:[%s8288_s3 + $0x1b8] sm:$0xff] }
 0x13a   : > { %3528 = vperm.xlu0 %4627, %v4516_v39   ;;  %v5948_v39 = vpop.permute.xlu0 %1980 }
 0x13b   : > { %v690_v35 = vrot.slane %v689_v46, 1  ;;  %v763_v9 = vadd.f32 %v762_v6, %v761_v15  ;;  %v710_v52 = vadd.f32 %v709_v43, %v708_v56  ;;  %v783_v1 = vrot.slane %v782_v32, 2  ;;  %8407 = vst [vmem:[#allocation43_spill] sm:$0xff] %v5948_v39 }
 0x13d   : > { %v691_v44 = vadd.f32 %v690_v35, %v689_v46  ;;  %v764_v48 = vrot.slane %v763_v9, 1  ;;  %v711_v23 = vrot.slane %v710_v52, 1  ;;  %v784_v0 = vadd.f32 %v783_v1, %v782_v32  ;;  %3543 = vperm.xlu1 %4628, %v4519_v12   ;;  %v4520_v35 = vld [vmem:[%s8288_s3 + $0x1b0] sm:$0xff]  ;;  %v5965_v1 = vpop.permute.xlu1 %2114 }
 0x13e   : > { %3538 = vperm.xlu0 %4627, %v4518_v11   ;;  %8408 = vst [vmem:[#allocation44_spill] sm:$0xff] %v5965_v1  ;;  %v4522_v11 = vld [vmem:[%s8288_s3 + $0x1c0] sm:$0xff] }
 0x13f   : > { %v765_v13 = vadd.f32 %v764_v48, %v763_v9  ;;  %v5953_v15 = vmul.f32 0.0078125, %v691_v44  ;;  %v712_v56 = vadd.f32 %v711_v23, %v710_v52  ;;  %v785_v6 = vrot.slane %v784_v0, 1  ;;  %v4523_v9 = vld [vmem:[%s8288_s3 + $0x1c8] sm:$0xff]  ;;  %v5970_v44 = vpop.permute.xlu0 %2109 }
 0x140   : > { %8409 = vst [vmem:[#allocation45_spill] sm:$0xff] %v5970_v44 }
 0x141   : > { %v789_v46 = vmul.f32 0.0078125, %v765_v13  ;;  %v791_v43 = vmul.f32 %v5953_v15, %v5953_v15  ;;  %v786_v32 = vadd.f32 %v785_v6, %v784_v0  ;;  %3553 = vperm.xlu1 %4628, %v4521_v8   ;;  %v5960_v12 = vmul.f32 0.0078125, %v712_v56  ;;  %v4525_v13 = vld [vmem:[%s8288_s3 + $0x1d8] sm:$0xff]  ;;  %v4524_v56 = vld [vmem:[%s8288_s3 + $0x1d0] sm:$0xff] }
 0x142   : > { %3548 = vperm.xlu0 %4627, %v4520_v35   ;;  %v5980_v35 = vpop.permute.xlu1 %1975 }
 0x143   : > { %v793_v23 = vsub.f32 %v789_v46, %v791_v43  ;;  %v790_v52 = vmul.f32 0.0078125, %v786_v32  ;;  %v792_v48 = vmul.f32 %v5960_v12, %v5960_v12  ;;  %8410 = vst [vmem:[#allocation46_spill] sm:$0xff] %v5980_v35  ;;  %v5986_v32 = vpop.permute.xlu0 %1970  ;;  %v3824_v46 = vld [vmem:[%s8289_s4 + $0x18] sm:$0xff] }
 0x144   : > { %8411 = vst [vmem:[#allocation47_spill] sm:$0xff] %v5986_v32 }
 0x145   : > { %v827_v0 = vadd.f32 1e-05, %v793_v23  ;;  %3563 = vperm.xlu1 %4628, %v4523_v9   ;;  %v794_v8 = vsub.f32 %v790_v52, %v792_v48  ;;  %v4527_v9 = vld [vmem:[%s8288_s3 + $0x1e8] sm:$0xff]  ;;  %v4526_v23 = vld [vmem:[%s8288_s3 + $0x1e0] sm:$0xff]  ;;  %v825_v52 = vsub.f32 %v5905_v19, %v5953_v15  ;;  %v4529_v48 = vld [vmem:[%s8288_s3 + $0x1f8] sm:$0xff]  ;;  %v817_v19 = vsub.f32 %v5816_v60, %v5953_v15 }
 0x146   : > { %3558 = vperm.xlu0 %4627, %v4522_v11   ;;  %v823_v11 = vsub.f32 %v5881_v58, %v5953_v15  ;;  %v826_v58 = vsub.f32 %v5917_v61, %v5960_v12 }
 0x147   : > { %4653 = vrsqrt.f32 %v827_v0  ;;  %v828_v6 = vadd.f32 1e-05, %v794_v8  ;;  %v819_v0 = vsub.f32 %v5834_v37, %v5953_v15  ;;  %v821_v8 = vsub.f32 %v5855_v26, %v5953_v15 }
 0x148   : > { %v824_v37 = vsub.f32 %v5895_v57, %v5960_v12  ;;  %v820_v26 = vsub.f32 %v5847_v7, %v5960_v12  ;;  %v811_v7 = vsub.f32 %v5767_v63, %v5953_v15 }
 0x149   : > { %3573 = vperm.xlu1 %4628, %v4525_v13   ;;  %4655 = vrsqrt.f32 %v828_v6  ;;  %v815_v13 = vsub.f32 %v5805_v47, %v5953_v15  ;;  %v4528_v6 = vld [vmem:[%s8288_s3 + $0x1f0] sm:$0xff]  ;;  %v822_v47 = vsub.f32 %v5867_v29, %v5960_v12  ;;  %v813_v29 = vsub.f32 %v5783_v18, %v5953_v15 }
 0x14a   : > { %3568 = vperm.xlu0 %4627, %v4524_v56   ;;  %v6009_v56 = vpop.permute.xlu1 %2104 }
 0x14b   : > { %8412 = vst [vmem:[#allocation48_spill] sm:$0xff] %v6009_v56 }
 0x14d   : > { %3583 = vperm.xlu1 %4628, %v4527_v9   ;;  %v6022_v9 = vpop.permute.xlu0 %2099 }
 0x14e   : > { %3578 = vperm.xlu0 %4627, %v4526_v23   ;;  %8413 = vst [vmem:[#allocation49_spill] sm:$0xff] %v6022_v9  ;;  %v3822_v23 = vld [vmem:[%s8289_s4 + $0x8] sm:$0xff]  ;;  %v6072_v60 = vpop.permute.xlu1 %1965 }
 0x14f   : > { %8414 = vst [vmem:[#allocation50_spill] sm:$0xff] %v6072_v60 }
 0x151   : > { %3593 = vperm.xlu1 %4628, %v4529_v48   ;;  %v6078_v9 = vpop.permute.xlu0 %1960 }
 0x152   : > { %3588 = vperm.xlu0 %4627, %v4528_v6   ;;  %v3821_v6 = vld [vmem:[%s8289_s4] sm:$0xff]  ;;  %8415 = vst [vmem:[#allocation51_spill] sm:$0xff] %v6078_v9 }
 0x154   : > { %v6062_v18 = vpop.eup %4653 }
 0x155   : > { %v861_v48 = vmul.f32 %v6062_v18, %v825_v52  ;;  %3836 = vperm.xlu1 %4628, %v3822_v23   ;;  %v859_v63 = vmul.f32 %v6062_v18, %v823_v11  ;;  %v855_v56 = vmul.f32 %v6062_v18, %v819_v0  ;;  %v857_v43 = vmul.f32 %v6062_v18, %v821_v8  ;;  %v3823_v23 = vld [vmem:[%s8289_s4 + $0x10] sm:$0xff] }
 0x156   : > { %3831 = vperm.xlu0 %4627, %v3821_v6   ;;  %v6084_v57 = vmul.f32 %v6062_v18, %v815_v13  ;;  %v6087_v61 = vmul.f32 %v6062_v18, %v817_v19  ;;  %v6090_v52 = vmul.f32 %v6062_v18, %v811_v7  ;;  %v6093_v11 = vmul.f32 %v6062_v18, %v813_v29  ;;  %v6095_v0 = vpop.eup %4655 }
 0x157   : > { %v990_v8 = vmul.f32 %v5448_v16, %v861_v48  ;;  %v988_v13 = vmul.f32 %v5450_v17, %v859_v63  ;;  %v984_v6 = vmul.f32 %v5470_v25, %v855_v56  ;;  %v986_v19 = vmul.f32 %v5468_v24, %v857_v43 }
 0x158   : > { %v862_v7 = vmul.f32 %v6095_v0, %v826_v58  ;;  %v860_v60 = vmul.f32 %v6095_v0, %v824_v37  ;;  %v856_v29 = vmul.f32 %v6095_v0, %v820_v26  ;;  %v858_v9 = vmul.f32 %v6095_v0, %v822_v47  ;;  %v3826_v58 = vld [vmem:[%s8289_s4 + $0x28] sm:$0xff]  ;;  %v6127_v47 = vpop.permute.xlu1 %2094 }
 0x159   : > { %v6109_v48 = vadd.f32 %v5458_v20, %v990_v8  ;;  %3846 = vperm.xlu1 %4628, %v3824_v46   ;;  %v6112_v44 = vadd.f32 %v5460_v21, %v988_v13  ;;  %v6115_v63 = vadd.f32 %v5486_v30, %v984_v6  ;;  %v6118_v43 = vadd.f32 %v5481_v28, %v986_v19  ;;  %v3825_v8 = vld [vmem:[%s8289_s4 + $0x20] sm:$0xff] }
 0x15a   : > { %v991_v56 = vmul.f32 %v5448_v16, %v862_v7  ;;  %3841 = vperm.xlu0 %4627, %v3823_v23   ;;  %v989_v37 = vmul.f32 %v5450_v17, %v860_v60  ;;  %v985_v46 = vmul.f32 %v5470_v25, %v856_v29  ;;  %v987_v26 = vmul.f32 %v5468_v24, %v858_v9  ;;  %v6140_v25 = vpop.permute.xlu0 %2089 }
 0x15b   : > { %8416 = vst [vmem:[#allocation52_spill] sm:$0xff] %v6127_v47  ;;  %v1149_v16 = vmul.f32 %v6112_v44, %v6112_v44  ;;  %v1151_v23 = vmul.f32 %v6109_v48, %v6109_v48  ;;  %v1145_v13 = vmul.f32 %v6115_v63, %v6115_v63  ;;  %v1147_v17 = vmul.f32 %v6118_v43, %v6118_v43 }
 0x15c   : > { %8417 = vst [vmem:[#allocation53_spill] sm:$0xff] %v6140_v25  ;;  %v6143_v24 = vadd.f32 %v5460_v21, %v989_v37  ;;  %v6146_v9 = vadd.f32 %v5458_v20, %v991_v56  ;;  %v6149_v60 = vadd.f32 %v5486_v30, %v985_v46  ;;  %v6152_v6 = vadd.f32 %v5481_v28, %v987_v26  ;;  %v4539_v20 = vld [vmem:[%s8289_s4 + $0x48] sm:$0xff]  ;;  %v4538_v21 = vld [vmem:[%s8289_s4 + $0x40] sm:$0xff]  ;;  %v6180_v1 = vpop.permute.xlu1 %1955 }
 0x15d   : > { %3856 = vperm.xlu1 %4628, %v3826_v58   ;;  %v1181_v19 = vmul.f32 %v1149_v16, %v6112_v44  ;;  %v1183_v7 = vmul.f32 %v1151_v23, %v6109_v48  ;;  %v1177_v29 = vmul.f32 %v1145_v13, %v6115_v63  ;;  %v1179_v47 = vmul.f32 %v1147_v17, %v6118_v43 }
 0x15e   : > { %3851 = vperm.xlu0 %4627, %v3825_v8   ;;  %v1150_v28 = vmul.f32 %v6143_v24, %v6143_v24  ;;  %v1152_v30 = vmul.f32 %v6146_v9, %v6146_v9  ;;  %v1146_v56 = vmul.f32 %v6149_v60, %v6149_v60  ;;  %v1148_v58 = vmul.f32 %v6152_v6, %v6152_v6 }
 0x15f   : > { %v1213_v37 = vmul.f32 0.044715, %v1181_v19  ;;  %v1215_v46 = vmul.f32 0.044715, %v1183_v7  ;;  %v1209_v26 = vmul.f32 0.044715, %v1177_v29  ;;  %v8418_v8 = vsub.f32 %v5813_v45, %v5960_v12 }
 0x160   : > { %v1182_v23 = vmul.f32 %v1150_v28, %v6143_v24  ;;  %v1184_v13 = vmul.f32 %v1152_v30, %v6146_v9  ;;  %v1178_v17 = vmul.f32 %v1146_v56, %v6149_v60  ;;  %v1180_v25 = vmul.f32 %v1148_v58, %v6152_v6  ;;  %8419 = vst [vmem:[#allocation54_spill] sm:$0xff] %v6180_v1  ;;  %v4547_v19 = vld [vmem:[%s8289_s4 + $0x88] sm:$0xff]  ;;  %v4546_v45 = vld [vmem:[%s8289_s4 + $0x80] sm:$0xff]  ;;  %v6191_v56 = vpop.permute.xlu0 %1950 }
 0x161   : > { %v852_v16 = vmul.f32 %v6095_v0, %v8418_v8  ;;  %3901 = vperm.xlu1 %4628, %v4539_v20   ;;  %v1245_v7 = vadd.f32 %v1213_v37, %v6112_v44  ;;  %v1247_v29 = vadd.f32 %v1215_v46, %v6109_v48  ;;  %v1211_v28 = vmul.f32 0.044715, %v1179_v47 }
 0x162   : > { %v1241_v30 = vadd.f32 %v1209_v26, %v6115_v63  ;;  %3896 = vperm.xlu0 %4627, %v4538_v21   ;;  %v1214_v58 = vmul.f32 0.044715, %v1182_v23  ;;  %v1216_v20 = vmul.f32 0.044715, %v1184_v13  ;;  %v1210_v8 = vmul.f32 0.044715, %v1178_v17 }
 0x163   : > { %v8420_v1 = vsub.f32 %v5831_v50, %v5960_v12  ;;  %v1277_v32 = vmul.f32 0.7978846, %v1245_v7  ;;  %v1279_v39 = vmul.f32 0.7978846, %v1247_v29  ;;  %v1212_v41 = vmul.f32 0.044715, %v1180_v25  ;;  %v6206_v29 = vpop.permute.xlu1 %2084 }
 0x164   : > { %v1243_v37 = vadd.f32 %v1211_v28, %v6118_v43  ;;  %v1246_v47 = vadd.f32 %v1214_v58, %v6143_v24  ;;  %v1248_v46 = vadd.f32 %v1216_v20, %v6146_v9  ;;  %v1242_v26 = vadd.f32 %v1210_v8, %v6149_v60  ;;  %v4555_v23 = vld [vmem:[%s8289_s4 + $0xc8] sm:$0xff]  ;;  %8421 = vst [vmem:[#allocation55_spill] sm:$0xff] %v6206_v29 }
 0x165   : > { %v854_v35 = vmul.f32 %v6095_v0, %v8420_v1  ;;  %v1273_v21 = vmul.f32 0.7978846, %v1241_v30  ;;  %3998 = vperm.xlu1 %4628, %v4547_v19   ;;  %4657 = vtanh.f32 %v1277_v32  ;;  %v1244_v50 = vadd.f32 %v1212_v41, %v6152_v6  ;;  %v4554_v19 = vld [vmem:[%s8289_s4 + $0xc0] sm:$0xff]  ;;  %v6215_v30 = vpop.permute.xlu0 %2079 }
 0x166   : > { %v1275_v1 = vmul.f32 0.7978846, %v1243_v37  ;;  %v981_v25 = vmul.f32 %v5496_v34, %v852_v16  ;;  %3993 = vperm.xlu0 %4627, %v4546_v45   ;;  %v1278_v13 = vmul.f32 0.7978846, %v1246_v47  ;;  %v1280_v17 = vmul.f32 0.7978846, %v1248_v46 }
 0x167   : > { %4659 = vtanh.f32 %v1279_v39  ;;  %v1274_v7 = vmul.f32 0.7978846, %v1242_v26  ;;  %v1276_v28 = vmul.f32 0.7978846, %v1244_v50  ;;  %v983_v32 = vmul.f32 %v5494_v33, %v854_v35  ;;  %v8425_v26 = vld [vmem:[#allocation6_spill] sm:$0xff] }
 0x168   : > { %4661 = vtanh.f32 %v1273_v21  ;;  %v6213_v41 = vadd.f32 %v5512_v40, %v981_v25  ;;  %v980_v39 = vmul.f32 %v5496_v34, %v6084_v57  ;;  %v982_v16 = vmul.f32 %v5494_v33, %v6087_v61  ;;  %v4548_v33 = vld [vmem:[%s8289_s4 + $0x90] sm:$0xff]  ;;  %v6258_v25 = vpop.permute.xlu1 %1945 }
 0x169   : > { %4663 = vtanh.f32 %v1278_v13  ;;  %v8422_v45 = vsub.f32 %v5779_v59, %v5960_v12  ;;  %4063 = vperm.xlu1 %4628, %v4555_v23   ;;  %v6226_v35 = vadd.f32 %v5507_v38, %v983_v32  ;;  %v8423_v8 = vsub.f32 %v5802_v4, %v5960_v12  ;;  %v8424_v57 = vld [vmem:[#allocation7_spill] sm:$0xff]  ;;  %v8426_v23 = vld [vmem:[#allocation9_spill] sm:$0xff] }
 0x16a   : > { %4665 = vtanh.f32 %v1280_v17  ;;  %v1142_v20 = vmul.f32 %v6213_v41, %v6213_v41  ;;  %4058 = vperm.xlu0 %4627, %v4554_v19   ;;  %v6238_v59 = vadd.f32 %v5512_v40, %v980_v39  ;;  %v6241_v61 = vadd.f32 %v5507_v38, %v982_v16  ;;  %v4540_v4 = vld [vmem:[%s8289_s4 + $0x50] sm:$0xff]  ;;  %8427 = vst [vmem:[#allocation7_spill] sm:$0xff] %v6258_v25  ;;  %v4541_v32 = vld [vmem:[%s8289_s4 + $0x58] sm:$0xff] }
 0x16b   : > { %v848_v58 = vmul.f32 %v6095_v0, %v8422_v45  ;;  %v850_v34 = vmul.f32 %v6095_v0, %v8423_v8  ;;  %4667 = vtanh.f32 %v1274_v7  ;;  %v1144_v47 = vmul.f32 %v6226_v35, %v6226_v35  ;;  %v8428_v7 = vld [vmem:[#allocation8_spill] sm:$0xff] }
 0x16c   : > { %4669 = vtanh.f32 %v1276_v28  ;;  %v1174_v46 = vmul.f32 %v1142_v20, %v6213_v41  ;;  %v1141_v40 = vmul.f32 %v6238_v59, %v6238_v59  ;;  %v1143_v38 = vmul.f32 %v6241_v61, %v6241_v61  ;;  %v6266_v28 = vpop.permute.xlu0 %1940 }
 0x16d   : > { %v977_v37 = vmul.f32 %v8424_v57, %v848_v58  ;;  %v979_v21 = vmul.f32 %v8425_v26, %v850_v34  ;;  %4671 = vtanh.f32 %v1275_v1  ;;  %4003 = vperm.xlu1 %4628, %v4548_v33   ;;  %v1176_v13 = vmul.f32 %v1144_v47, %v6226_v35  ;;  %8429 = vst [vmem:[#allocation6_spill] sm:$0xff] %v6266_v28 }
 0x16e   : > { %v1206_v17 = vmul.f32 0.044715, %v1174_v46  ;;  %v976_v1 = vmul.f32 %v8424_v57, %v6090_v52  ;;  %3906 = vperm.xlu0 %4627, %v4540_v4   ;;  %v1173_v39 = vmul.f32 %v1141_v40, %v6238_v59  ;;  %v1175_v16 = vmul.f32 %v1143_v38, %v6241_v61  ;;  %v4556_v52 = vld [vmem:[%s8289_s4 + $0xd0] sm:$0xff]  ;;  %v4557_v38 = vld [vmem:[%s8289_s4 + $0xd8] sm:$0xff] }
 0x16f   : > { %v6256_v50 = vadd.f32 %v8426_v23, %v977_v37  ;;  %v6262_v19 = vadd.f32 %v8428_v7, %v979_v21  ;;  %v978_v58 = vmul.f32 %v8425_v26, %v6093_v11  ;;  %v1208_v20 = vmul.f32 0.044715, %v1176_v13 }
 0x170   : > { %v1238_v8 = vadd.f32 %v1206_v17, %v6213_v41  ;;  %v6284_v33 = vadd.f32 %v8426_v23, %v976_v1  ;;  %v1205_v57 = vmul.f32 0.044715, %v1173_v39  ;;  %v1207_v37 = vmul.f32 0.044715, %v1175_v16  ;;  %v4549_v39 = vld [vmem:[%s8289_s4 + $0x98] sm:$0xff] }
 0x171   : > { %v1138_v45 = vmul.f32 %v6256_v50, %v6256_v50  ;;  %v1140_v34 = vmul.f32 %v6262_v19, %v6262_v19  ;;  %v6288_v47 = vadd.f32 %v8428_v7, %v978_v58  ;;  %3911 = vperm.xlu1 %4628, %v4541_v32   ;;  %v1240_v11 = vadd.f32 %v1208_v20, %v6226_v35  ;;  %v6303_v32 = vpop.permute.xlu1 %2074  ;;  %v6308_v20 = vpop.permute.xlu0 %2069 }
 0x172   : > { %v1270_v46 = vmul.f32 0.7978846, %v1238_v8  ;;  %v6294_v21 = vmul.f32 %v6284_v33, %v6284_v33  ;;  %v4658_v40 = vpop.eup %4657  ;;  %4068 = vperm.xlu0 %4627, %v4556_v52   ;;  %v1237_v23 = vadd.f32 %v1205_v57, %v6238_v59  ;;  %v1239_v13 = vadd.f32 %v1207_v37, %v6241_v61  ;;  %8430 = vst [vmem:[#allocation9_spill] sm:$0xff] %v6303_v32 }
 0x173   : > { %v1170_v4 = vmul.f32 %v1138_v45, %v6256_v50  ;;  %v1172_v26 = vmul.f32 %v1140_v34, %v6262_v19  ;;  %v1139_v7 = vmul.f32 %v6288_v47, %v6288_v47  ;;  %v1341_v16 = vadd.f32 1.0, %v4658_v40  ;;  %8431 = vst [vmem:[#allocation8_spill] sm:$0xff] %v6308_v20 }
 0x174   : > { %v4660_v1 = vpop.eup %4659  ;;  %v1272_v45 = vmul.f32 0.7978846, %v1240_v11  ;;  %4673 = vtanh.f32 %v1270_v46  ;;  %v1269_v34 = vmul.f32 0.7978846, %v1237_v23  ;;  %v1271_v57 = vmul.f32 0.7978846, %v1239_v13 }
 0x175   : > { %v1202_v17 = vmul.f32 0.044715, %v1170_v4  ;;  %v1204_v58 = vmul.f32 0.044715, %v1172_v26  ;;  %v4662_v52 = vpop.eup %4661  ;;  %v1343_v8 = vadd.f32 1.0, %v4660_v1  ;;  %4073 = vperm.xlu1 %4628, %v4557_v38   ;;  %v1373_v25 = vmul.f32 0.5, %v1341_v16 }
 0x176   : > { %v4664_v4 = vpop.eup %4663  ;;  %v1337_v32 = vadd.f32 1.0, %v4662_v52  ;;  %4675 = vtanh.f32 %v1272_v45  ;;  %4008 = vperm.xlu0 %4627, %v4549_v39   ;;  %v4550_v11 = vld [vmem:[%s8289_s4 + $0xa0] sm:$0xff] }
 0x177   : > { %v1234_v37 = vadd.f32 %v1202_v17, %v6256_v50  ;;  %v1236_v28 = vadd.f32 %v1204_v58, %v6262_v19  ;;  %v4666_v29 = vpop.eup %4665  ;;  %v1342_v46 = vadd.f32 1.0, %v4664_v4  ;;  %v1375_v26 = vmul.f32 0.5, %v1343_v8  ;;  %v4542_v38 = vld [vmem:[%s8289_s4 + $0x60] sm:$0xff]  ;;  %v6320_v8 = vpop.permute.xlu1 %1935 }
 0x178   : > { %4677 = vtanh.f32 %v1269_v34  ;;  %v4668_v23 = vpop.eup %4667  ;;  %v1344_v13 = vadd.f32 1.0, %v4666_v29  ;;  %v1405_v17 = vmul.f32 %v1373_v25, %v6112_v44  ;;  %v1369_v1 = vmul.f32 0.5, %v1337_v32  ;;  %v6325_v29 = vpop.permute.xlu0 %1930 }
 0x179   : > { %v1266_v40 = vmul.f32 0.7978846, %v1234_v37  ;;  %4679 = vtanh.f32 %v1271_v57  ;;  %v4670_v16 = vpop.eup %4669  ;;  %v1374_v39 = vmul.f32 0.5, %v1342_v46  ;;  %v1407_v45 = vmul.f32 %v1375_v26, %v6109_v48  ;;  %4013 = vperm.xlu1 %4628, %v4550_v11   ;;  %v4543_v48 = vld [vmem:[%s8289_s4 + $0x68] sm:$0xff] }
 0x17a   : > { %v1338_v58 = vadd.f32 1.0, %v4668_v23  ;;  %v1268_v52 = vmul.f32 0.7978846, %v1236_v28  ;;  %v4672_v4 = vpop.eup %4671  ;;  %v1376_v34 = vmul.f32 0.5, %v1344_v13  ;;  %v1340_v37 = vadd.f32 1.0, %v4670_v16  ;;  %3916 = vperm.xlu0 %4627, %v4542_v38   ;;  %v8434_v16 = vld [vmem:[#allocation11_spill] sm:$0xff] }
 0x17b   : > { %v6323_v20 = vmul.f32 %v1369_v1, %v6115_v63  ;;  %4681 = vtanh.f32 %v1266_v40  ;;  %v1406_v44 = vmul.f32 %v1374_v39, %v6143_v24  ;;  %v1439_v25 = vpack.c.bf16 %v1407_v45, %v1405_v17  ;;  %v4558_v63 = vld [vmem:[%s8289_s4 + $0xe0] sm:$0xff] }
 0x17c   : > { %v1370_v28 = vmul.f32 0.5, %v1338_v58  ;;  %v1339_v32 = vadd.f32 1.0, %v4672_v4  ;;  %v1408_v57 = vmul.f32 %v1376_v34, %v6146_v9  ;;  %v1372_v11 = vmul.f32 0.5, %v1340_v37  ;;  %v6357_v58 = vpop.permute.xlu1 %2064  ;;  %v8436_v34 = vld [vmem:[#allocation10_spill] sm:$0xff] }
 0x17d   : > { %4683 = vtanh.f32 %v1268_v52  ;;  %v1169_v46 = vmul.f32 %v6294_v21, %v6284_v33  ;;  %v1171_v40 = vmul.f32 %v1139_v7, %v6288_v47  ;;  %v8432_v23 = vsub.f32 %v5747_v5, %v5960_v12  ;;  %3921 = vperm.xlu1 %4628, %v4543_v48   ;;  %v4551_v52 = vld [vmem:[%s8289_s4 + $0xa8] sm:$0xff]  ;;  %v6368_v48 = vpop.permute.xlu0 %2059 }
 0x17e   : > { %v1402_v24 = vmul.f32 %v1370_v28, %v6149_v60  ;;  %v1371_v26 = vmul.f32 0.5, %v1339_v32  ;;  %v1440_v9 = vpack.c.bf16 %v1408_v57, %v1406_v44  ;;  %v1404_v13 = vmul.f32 %v1372_v11, %v6152_v6  ;;  %4078 = vperm.xlu0 %4627, %v4558_v63   ;;  %v4559_v60 = vld [vmem:[%s8289_s4 + $0xe8] sm:$0xff] }
 0x17f   : > { %v844_v38 = vmul.f32 %v6095_v0, %v8432_v23  ;;  %v1201_v17 = vmul.f32 0.044715, %v1169_v46  ;;  %v8433_v1 = vsub.f32 %v5764_v55, %v5960_v12  ;;  %v1203_v5 = vmul.f32 0.044715, %v1171_v40  ;;  %v8438_v57 = vld [vmem:[#allocation13_spill] sm:$0xff] }
 0x180   : > { %v1403_v7 = vmul.f32 %v1371_v26, %v6118_v43  ;;  %v8435_v45 = vsub.f32 %v5733_v62, %v5953_v15  ;;  %1586 = vmatprep.subr.bf16.mxu1 %v1440_v9  ;;  %v1438_v55 = vpack.c.bf16 %v1404_v13, %v1402_v24  ;;  %v8437_v37 = vsub.f32 %v5750_v54, %v5953_v15  ;;  %v8439_v54 = vld [vmem:[#allocation12_spill] sm:$0xff] }
 0x181   : > { %v846_v21 = vmul.f32 %v6095_v0, %v8433_v1  ;;  %v973_v39 = vmul.f32 %v8434_v16, %v844_v38  ;;  %v1233_v4 = vadd.f32 %v1201_v17, %v6284_v33  ;;  %v4674_v62 = vpop.eup %4673  ;;  %1587 = vmatpush1.bf16.msra.mxu1 %v1439_v25  ;;  %v1235_v32 = vadd.f32 %v1203_v5, %v6288_v47 }
 0x182   : > { %v843_v6 = vmul.f32 %v6062_v18, %v8435_v45  ;;  %v845_v44 = vmul.f32 %v6062_v18, %v8437_v37  ;;  %v1437_v28 = vpack.c.bf16 %v1403_v7, %v6323_v20  ;;  %1588 = vmatprep.subr.bf16.mxu1 %v1438_v55  ;;  %4083 = vperm.xlu1 %4628, %v4559_v60   ;;  %v1334_v46 = vadd.f32 1.0, %v4674_v62  ;;  %v4544_v20 = vld [vmem:[%s8289_s4 + $0x70] sm:$0xff]  ;;  %v6407_v37 = vpop.permute.xlu0 %1920 }
 0x183   : > { %v975_v43 = vmul.f32 %v8436_v34, %v846_v21  ;;  %v6373_v63 = vadd.f32 %v8438_v57, %v973_v39  ;;  %v1265_v24 = vmul.f32 0.7978846, %v1233_v4  ;;  %v4676_v23 = vpop.eup %4675  ;;  %4018 = vperm.xlu0 %4627, %v4551_v52   ;;  %v1267_v25 = vmul.f32 0.7978846, %v1235_v32  ;;  %v3827_v7 = vld [vmem:[%s8289_s4 + $0x30] sm:$0xff]  ;;  %8442 = vst [vmem:[#allocation10_spill] sm:$0xff] %v6407_v37 }
 0x184   : > { %v972_v11 = vmul.f32 %v8434_v16, %v843_v6  ;;  %v974_v40 = vmul.f32 %v8436_v34, %v845_v44  ;;  %v8440_v13 = vsub.f32 %v5712_v31, %v5960_v12  ;;  %v1336_v21 = vadd.f32 1.0, %v4676_v23  ;;  %v6403_v6 = vpop.permute.xlu1 %1925  ;;  %v4560_v62 = vld [vmem:[%s8289_s4 + $0xf0] sm:$0xff] }
 0x185   : > { %v6377_v26 = vadd.f32 %v8439_v54, %v975_v43  ;;  %v1134_v38 = vmul.f32 %v6373_v63, %v6373_v63  ;;  %v4678_v1 = vpop.eup %4677  ;;  %v1366_v60 = vmul.f32 0.5, %v1334_v46  ;;  %4685 = vtanh.f32 %v1265_v24  ;;  %1589 = vmatpush1.bf16.msra.mxu1 %v1437_v28  ;;  %8441 = vst [vmem:[#allocation11_spill] sm:$0xff] %v6403_v6  ;;  %v4552_v24 = vld [vmem:[%s8289_s4 + $0xb0] sm:$0xff] }
 0x186   : > { %v6386_v9 = vadd.f32 %v8438_v57, %v972_v11  ;;  %v6392_v17 = vmul.f32 %v6095_v0, %v8440_v13  ;;  %v4680_v16 = vpop.eup %4679  ;;  %v1333_v39 = vadd.f32 1.0, %v4678_v1  ;;  %4687 = vtanh.f32 %v1267_v25  ;;  %3926 = vperm.xlu1 %4628, %v4544_v20  }
 0x187   : > { %v1136_v5 = vmul.f32 %v6377_v26, %v6377_v26  ;;  %v1166_v31 = vmul.f32 %v1134_v38, %v6373_v63  ;;  %v6401_v45 = vadd.f32 %v8439_v54, %v974_v40  ;;  %v1368_v55 = vmul.f32 0.5, %v1336_v21  ;;  %3861 = vperm.xlu0 %4627, %v3827_v7  }
 0x188   : > { %v1398_v52 = vmul.f32 %v1366_v60, %v6213_v41  ;;  %v1335_v4 = vadd.f32 1.0, %v4680_v16  ;;  %v4682_v43 = vpop.eup %4681  ;;  %v1365_v44 = vmul.f32 0.5, %v1333_v39  ;;  %v1133_v32 = vmul.f32 %v6386_v9, %v6386_v9  ;;  %v4545_v60 = vld [vmem:[%s8289_s4 + $0x78] sm:$0xff]  ;;  %v6429_v39 = vpop.permute.xlu1 %2054 }
 0x189   : > { %v1168_v34 = vmul.f32 %v1136_v5, %v6377_v26  ;;  %v1198_v28 = vmul.f32 0.044715, %v1166_v31  ;;  %v1135_v41 = vmul.f32 %v6401_v45, %v6401_v45  ;;  %v1400_v57 = vmul.f32 %v1368_v55, %v6226_v35  ;;  %8443 = vst [vmem:[#allocation13_spill] sm:$0xff] %v6429_v39 }
 0x18a   : > { %v1367_v11 = vmul.f32 0.5, %v1335_v4  ;;  %v1330_v46 = vadd.f32 1.0, %v4682_v43  ;;  %v4684_v40 = vpop.eup %4683  ;;  %v1397_v23 = vmul.f32 %v1365_v44, %v6238_v59  ;;  %v1165_v25 = vmul.f32 %v1133_v32, %v6386_v9  ;;  %4088 = vperm.xlu1 %4628, %v4560_v62   ;;  %v6439_v43 = vpop.permute.xlu0 %2049  ;;  %v8446_v32 = vld [vmem:[#allocation15_spill] sm:$0xff] }
 0x18b   : > { %v1200_v54 = vmul.f32 0.044715, %v1168_v34  ;;  %v1230_v20 = vadd.f32 %v1198_v28, %v6373_v63  ;;  %v1167_v38 = vmul.f32 %v1135_v41, %v6401_v45  ;;  %v1436_v13 = vpack.c.bf16 %v1400_v57, %v1398_v52  ;;  %4023 = vperm.xlu0 %4627, %v4552_v24   ;;  %v3828_v52 = vld [vmem:[%s8289_s4 + $0x38] sm:$0xff]  ;;  %8445 = vst [vmem:[#allocation12_spill] sm:$0xff] %v6439_v43  ;;  %v8447_v57 = vld [vmem:[#allocation14_spill] sm:$0xff] }
 0x18c   : > { %v1399_v1 = vmul.f32 %v1367_v11, %v6241_v61  ;;  %v1332_v35 = vadd.f32 1.0, %v4684_v40  ;;  %v1362_v21 = vmul.f32 0.5, %v1330_v46  ;;  %v1197_v5 = vmul.f32 0.044715, %v1165_v25  ;;  %v4561_v24 = vld [vmem:[%s8289_s4 + $0xf8] sm:$0xff] }
 0x18d   : > { %v1232_v7 = vadd.f32 %v1200_v54, %v6377_v26  ;;  %v1262_v59 = vmul.f32 0.7978846, %v1230_v20  ;;  %v1199_v16 = vmul.f32 0.044715, %v1167_v38  ;;  %1590 = vmatprep.subr.bf16.mxu1 %v1436_v13  ;;  %v8444_v4 = vsub.f32 %v5725_v53, %v5960_v12  ;;  %v4553_v38 = vld [vmem:[%s8289_s4 + $0xb8] sm:$0xff] }
 0x18e   : > { %v1435_v31 = vpack.c.bf16 %v1399_v1, %v1397_v23  ;;  %v1364_v55 = vmul.f32 0.5, %v1332_v35  ;;  %v1394_v61 = vmul.f32 %v1362_v21, %v6256_v50  ;;  %v1229_v62 = vadd.f32 %v1197_v5, %v6386_v9  ;;  %3931 = vperm.xlu1 %4628, %v4545_v60   ;;  %v8449_v23 = vld [vmem:[#allocation17_spill] sm:$0xff] }
 0x18f   : > { %v842_v34 = vmul.f32 %v6095_v0, %v8444_v4  ;;  %v1264_v44 = vmul.f32 0.7978846, %v1232_v7  ;;  %4689 = vtanh.f32 %v1262_v59  ;;  %v1231_v28 = vadd.f32 %v1199_v16, %v6401_v45  ;;  %3866 = vperm.xlu0 %4627, %v3828_v52   ;;  %v6476_v16 = vpop.permute.xlu1 %1915  ;;  %v8456_v4 = vld [vmem:[#allocation19_spill] sm:$0xff] }
 0x190   : > { %1591 = vmatpush1.bf16.msra.mxu1 %v1435_v31  ;;  %v1396_v50 = vmul.f32 %v1364_v55, %v6262_v19  ;;  %v969_v41 = vmul.f32 %v8446_v32, %v6392_v17  ;;  %v1261_v53 = vmul.f32 0.7978846, %v1229_v62  ;;  %v8448_v54 = vsub.f32 %v5698_v22, %v5953_v15  ;;  %v8450_v17 = vld [vmem:[#allocation16_spill] sm:$0xff]  ;;  %8454 = vst [vmem:[#allocation15_spill] sm:$0xff] %v6476_v16 }
 0x191   : > { %v971_v11 = vmul.f32 %v8447_v57, %v842_v34  ;;  %4691 = vtanh.f32 %v1264_v44  ;;  %v1263_v46 = vmul.f32 0.7978846, %v1231_v28  ;;  %v8451_v13 = vsub.f32 %v5719_v14, %v5953_v15 }
 0x192   : > { %v839_v40 = vmul.f32 %v6062_v18, %v8448_v54  ;;  %v1434_v19 = vpack.c.bf16 %v1396_v50, %v1394_v61  ;;  %v6455_v20 = vadd.f32 %v8449_v23, %v969_v41  ;;  %v4686_v35 = vpop.eup %4685  ;;  %4693 = vtanh.f32 %v1261_v53  ;;  %4093 = vperm.xlu1 %4628, %v4561_v24   ;;  %v8457_v50 = vld [vmem:[#allocation18_spill] sm:$0xff] }
 0x193   : > { %v6458_v25 = vadd.f32 %v8450_v17, %v971_v11  ;;  %v841_v1 = vmul.f32 %v6062_v18, %v8451_v13  ;;  %v8452_v21 = vsub.f32 %v5676_v49, %v5960_v12  ;;  %v8453_v7 = vsub.f32 %v5686_v3, %v5960_v12  ;;  %v4688_v5 = vpop.eup %4687  ;;  %v6482_v49 = vpop.permute.xlu0 %1910  ;;  %4028 = vperm.xlu0 %4627, %v4553_v38  }
 0x194   : > { %v968_v22 = vmul.f32 %v8446_v32, %v839_v40  ;;  %1592 = vmatprep.subr.bf16.mxu1 %v1434_v19  ;;  %v1329_v14 = vadd.f32 1.0, %v4686_v35  ;;  %4695 = vtanh.f32 %v1263_v46  ;;  %v1130_v31 = vmul.f32 %v6455_v20, %v6455_v20  ;;  %8455 = vst [vmem:[#allocation14_spill] sm:$0xff] %v6482_v49  ;;  %v8459_v19 = vld [vmem:[#allocation20_spill] sm:$0xff] }
 0x195   : > { %v836_v60 = vmul.f32 %v6095_v0, %v8452_v21  ;;  %v838_v59 = vmul.f32 %v6095_v0, %v8453_v7  ;;  %v1132_v55 = vmul.f32 %v6458_v25, %v6458_v25  ;;  %v1331_v61 = vadd.f32 1.0, %v4688_v5 }
 0x196   : > { %v970_v3 = vmul.f32 %v8447_v57, %v841_v1  ;;  %v6486_v52 = vadd.f32 %v8449_v23, %v968_v22  ;;  %v1361_v44 = vmul.f32 0.5, %v1329_v14  ;;  %v1162_v62 = vmul.f32 %v1130_v31, %v6455_v20  ;;  %v8458_v57 = vld [vmem:[#allocation21_spill] sm:$0xff] }
 0x197   : > { %v965_v34 = vmul.f32 %v8456_v4, %v836_v60  ;;  %v1164_v28 = vmul.f32 %v1132_v55, %v6458_v25  ;;  %v967_v32 = vmul.f32 %v8457_v50, %v838_v59  ;;  %v1363_v41 = vmul.f32 0.5, %v1331_v61 }
 0x198   : > { %v6493_v11 = vadd.f32 %v8450_v17, %v970_v3  ;;  %v1129_v53 = vmul.f32 %v6486_v52, %v6486_v52  ;;  %v1393_v24 = vmul.f32 %v1361_v44, %v6284_v33  ;;  %v1194_v54 = vmul.f32 0.044715, %v1162_v62 }
 0x199   : > { %v6498_v46 = vadd.f32 %v8458_v57, %v965_v34  ;;  %v1196_v40 = vmul.f32 0.044715, %v1164_v28  ;;  %v6502_v23 = vadd.f32 %v8459_v19, %v967_v32  ;;  %v1395_v38 = vmul.f32 %v1363_v41, %v6288_v47 }
 0x19a   : > { %v1131_v13 = vmul.f32 %v6493_v11, %v6493_v11  ;;  %v1161_v17 = vmul.f32 %v1129_v53, %v6486_v52  ;;  %v1226_v35 = vadd.f32 %v1194_v54, %v6455_v20  ;;  %v8460_v21 = vsub.f32 %v5667_v2, %v5953_v15 }
 0x19b   : > { %v1126_v1 = vmul.f32 %v6498_v46, %v6498_v46  ;;  %v1228_v22 = vadd.f32 %v1196_v40, %v6458_v25  ;;  %v1128_v33 = vmul.f32 %v6502_v23, %v6502_v23  ;;  %v1433_v60 = vpack.c.bf16 %v1395_v38, %v1393_v24 }
 0x19c   : > { %v835_v47 = vmul.f32 %v6062_v18, %v8460_v21  ;;  %v1163_v7 = vmul.f32 %v1131_v13, %v6493_v11  ;;  %v1193_v59 = vmul.f32 0.044715, %v1161_v17  ;;  %v4690_v14 = vpop.eup %4689  ;;  %v1258_v31 = vmul.f32 0.7978846, %v1226_v35 }
 0x19d   : > { %v1158_v5 = vmul.f32 %v1126_v1, %v6498_v46  ;;  %v1260_v55 = vmul.f32 0.7978846, %v1228_v22  ;;  %v1160_v61 = vmul.f32 %v1128_v33, %v6502_v23  ;;  %v8461_v3 = vsub.f32 %v5681_v36, %v5953_v15  ;;  %1593 = vmatpush1.bf16.msra.mxu1 %v1433_v60 }
 0x19e   : > { %v1326_v2 = vadd.f32 1.0, %v4690_v14  ;;  %v1195_v44 = vmul.f32 0.044715, %v1163_v7  ;;  %v1225_v62 = vadd.f32 %v1193_v59, %v6486_v52  ;;  %v4692_v32 = vpop.eup %4691  ;;  %4697 = vtanh.f32 %v1258_v31 }
 0x19f   : > { %v837_v34 = vmul.f32 %v6062_v18, %v8461_v3  ;;  %v1190_v28 = vmul.f32 0.044715, %v1158_v5  ;;  %v1192_v41 = vmul.f32 0.044715, %v1160_v61  ;;  %v964_v53 = vmul.f32 %v8456_v4, %v835_v47  ;;  %v4694_v38 = vpop.eup %4693 }
 0x1a0   : > { %v1328_v54 = vadd.f32 1.0, %v4692_v32  ;;  %v1358_v40 = vmul.f32 0.5, %v1326_v2  ;;  %4699 = vtanh.f32 %v1260_v55  ;;  %v1227_v36 = vadd.f32 %v1195_v44, %v6493_v11 }
 0x1a1   : > { %v966_v24 = vmul.f32 %v8457_v50, %v837_v34  ;;  %v1257_v13 = vmul.f32 0.7978846, %v1225_v62  ;;  %v1222_v17 = vadd.f32 %v1190_v28, %v6498_v46  ;;  %v1224_v1 = vadd.f32 %v1192_v41, %v6502_v23  ;;  %v4696_v22 = vpop.eup %4695  ;;  %v8464_v62 = vld [vmem:[#allocation23_spill] sm:$0xff] }
 0x1a2   : > { %v6532_v35 = vadd.f32 %v8458_v57, %v964_v53  ;;  %v1360_v33 = vmul.f32 0.5, %v1328_v54  ;;  %v1390_v4 = vmul.f32 %v1358_v40, %v6373_v63  ;;  %v1325_v21 = vadd.f32 1.0, %v4694_v38 }
 0x1a3   : > { %v1259_v50 = vmul.f32 0.7978846, %v1227_v36  ;;  %v1327_v47 = vadd.f32 1.0, %v4696_v22  ;;  %4701 = vtanh.f32 %v1257_v13  ;;  %v1254_v60 = vmul.f32 0.7978846, %v1222_v17  ;;  %v8469_v13 = vld [vmem:[#allocation24_spill] sm:$0xff] }
 0x1a4   : > { %v1256_v7 = vmul.f32 0.7978846, %v1224_v1  ;;  %v1392_v59 = vmul.f32 %v1360_v33, %v6377_v26  ;;  %v1357_v5 = vmul.f32 0.5, %v1325_v21  ;;  %v6537_v14 = vadd.f32 %v8459_v19, %v966_v24 }
 0x1a5   : > { %4703 = vtanh.f32 %v1259_v50  ;;  %v1359_v31 = vmul.f32 0.5, %v1327_v47  ;;  %v1125_v57 = vmul.f32 %v6532_v35, %v6532_v35  ;;  %v8462_v63 = vsub.f32 %v5673_v51, %v5960_v12 }
 0x1a6   : > { %4705 = vtanh.f32 %v1254_v60  ;;  %v1432_v61 = vpack.c.bf16 %v1392_v59, %v1390_v4  ;;  %v1389_v3 = vmul.f32 %v1357_v5, %v6386_v9  ;;  %v1127_v26 = vmul.f32 %v6537_v14, %v6537_v14 }
 0x1a7   : > { %v832_v55 = vmul.f32 %v6095_v0, %v8462_v63  ;;  %4707 = vtanh.f32 %v1256_v7  ;;  %v1391_v19 = vmul.f32 %v1359_v31, %v6401_v45  ;;  %v1157_v34 = vmul.f32 %v1125_v57, %v6532_v35 }
 0x1a8   : > { %v8463_v2 = vsub.f32 %v5658_v27, %v5960_v12  ;;  %1594 = vmatprep.subr.bf16.mxu1 %v1432_v61  ;;  %v1159_v28 = vmul.f32 %v1127_v26, %v6537_v14  ;;  %v8465_v9 = vsub.f32 %v5664_v42, %v5953_v15  ;;  %v8466_v45 = vsub.f32 %v5653_v10, %v5953_v15  ;;  %v8467_v27 = vld [vmem:[#allocation22_spill] sm:$0xff] }
 0x1a9   : > { %v961_v51 = vmul.f32 %v8464_v62, %v832_v55  ;;  %v1431_v53 = vpack.c.bf16 %v1391_v19, %v1389_v3  ;;  %v1189_v24 = vmul.f32 0.044715, %v1157_v34 }
 0x1aa   : > { %v834_v44 = vmul.f32 %v6095_v0, %v8463_v2  ;;  %v831_v32 = vmul.f32 %v6062_v18, %v8465_v9  ;;  %v833_v41 = vmul.f32 %v6062_v18, %v8466_v45  ;;  %v8468_v0 = vld [vmem:[#allocation25_spill] sm:$0xff]  ;;  %v1191_v40 = vmul.f32 0.044715, %v1159_v28 }
 0x1ab   : > { %v6566_v54 = vadd.f32 %v8468_v0, %v961_v51  ;;  %1595 = vmatpush1.bf16.msra.mxu1 %v1431_v53  ;;  %v1221_v42 = vadd.f32 %v1189_v24, %v6532_v35  ;;  %v4698_v15 = vpop.eup %4697 }
 0x1ac   : > { %v963_v12 = vmul.f32 %v8467_v27, %v834_v44  ;;  %v960_v36 = vmul.f32 %v8464_v62, %v831_v32  ;;  %v962_v38 = vmul.f32 %v8467_v27, %v833_v41  ;;  %v1223_v18 = vadd.f32 %v1191_v40, %v6537_v14 }
 0x1ad   : > { %v1122_v10 = vmul.f32 %v6566_v54, %v6566_v54  ;;  %v4700_v33 = vpop.eup %4699  ;;  %v1322_v4 = vadd.f32 1.0, %v4698_v15  ;;  %v1253_v21 = vmul.f32 0.7978846, %v1221_v42 }
 0x1ae   : > { %v6572_v17 = vadd.f32 %v8469_v13, %v963_v12  ;;  %v6578_v1 = vadd.f32 %v8468_v0, %v960_v36  ;;  %v6581_v22 = vadd.f32 %v8469_v13, %v962_v38  ;;  %v1324_v60 = vadd.f32 1.0, %v4700_v33 }
 0x1af   : > { %v1154_v47 = vmul.f32 %v1122_v10, %v6566_v54  ;;  %v1255_v7 = vmul.f32 0.7978846, %v1223_v18  ;;  %v1354_v31 = vmul.f32 0.5, %v1322_v4  ;;  %4709 = vtanh.f32 %v1253_v21 }
 0x1b0   : > { %v1124_v50 = vmul.f32 %v6572_v17, %v6572_v17  ;;  %v1121_v59 = vmul.f32 %v6578_v1, %v6578_v1  ;;  %v1123_v5 = vmul.f32 %v6581_v22, %v6581_v22  ;;  %v4702_v55 = vpop.eup %4701  ;;  %v1356_v61 = vmul.f32 0.5, %v1324_v60 }
 0x1b1   : > { %v1186_v63 = vmul.f32 0.044715, %v1154_v47  ;;  %4711 = vtanh.f32 %v1255_v7  ;;  %v1386_v34 = vmul.f32 %v1354_v31, %v6455_v20  ;;  %v1321_v2 = vadd.f32 1.0, %v4702_v55 }
 0x1b2   : > { %v1156_v57 = vmul.f32 %v1124_v50, %v6572_v17  ;;  %v1153_v3 = vmul.f32 %v1121_v59, %v6578_v1  ;;  %v1155_v26 = vmul.f32 %v1123_v5, %v6581_v22  ;;  %v4704_v19 = vpop.eup %4703  ;;  %v1388_v28 = vmul.f32 %v1356_v61, %v6458_v25 }
 0x1b3   : > { %v1218_v62 = vadd.f32 %v1186_v63, %v6566_v54  ;;  %v4706_v51 = vpop.eup %4705  ;;  %v1323_v9 = vadd.f32 1.0, %v4704_v19  ;;  %v1353_v53 = vmul.f32 0.5, %v1321_v2 }
 0x1b4   : > { %v1188_v44 = vmul.f32 0.044715, %v1156_v57  ;;  %v1185_v32 = vmul.f32 0.044715, %v1153_v3  ;;  %v1187_v45 = vmul.f32 0.044715, %v1155_v26  ;;  %v4708_v41 = vpop.eup %4707  ;;  %v1430_v0 = vpack.c.bf16 %v1388_v28, %v1386_v34 }
 0x1b5   : > { %v1318_v24 = vadd.f32 1.0, %v4706_v51  ;;  %v1250_v12 = vmul.f32 0.7978846, %v1218_v62  ;;  %v1355_v40 = vmul.f32 0.5, %v1323_v9  ;;  %v1320_v36 = vadd.f32 1.0, %v4708_v41  ;;  %v4629_v41 = vld [vmem:[%s8287_s2] sm:$0xff]  }
 0x1b6   : > { %v1220_v27 = vadd.f32 %v1188_v44, %v6572_v17  ;;  %v1217_v20 = vadd.f32 %v1185_v32, %v6578_v1  ;;  %v1385_v38 = vmul.f32 %v1353_v53, %v6486_v52  ;;  %1596 = vmatprep.subr.bf16.mxu1 %v1430_v0  ;;  %v1219_v15 = vadd.f32 %v1187_v45, %v6581_v22 }
 0x1b7   : > { %v1350_v42 = vmul.f32 0.5, %v1318_v24  ;;  %4713 = vtanh.f32 %v1250_v12  ;;  %v1387_v25 = vmul.f32 %v1355_v40, %v6493_v11  ;;  %v1352_v10 = vmul.f32 0.5, %v1320_v36  ;;  %v4634_v24 = vld [vmem:[%s8287_s2 + $0x28] sm:$0xff]   ;;  %v4636_v12 = vld [vmem:[%s8287_s2 + $0x38] sm:$0xff]  }
 0x1b8   : > { %v1252_v13 = vmul.f32 0.7978846, %v1220_v27  ;;  %v1249_v18 = vmul.f32 0.7978846, %v1217_v20  ;;  %v1251_v50 = vmul.f32 0.7978846, %v1219_v15 }
 0x1b9   : > { %v1382_v33 = vmul.f32 %v1350_v42, %v6498_v46  ;;  %v1429_v4 = vpack.c.bf16 %v1387_v25, %v1385_v38  ;;  %v1384_v21 = vmul.f32 %v1352_v10, %v6502_v23  ;;  %v8470_v53 = vmov 0   ;;  %v4635_v27 = vld [vmem:[%s8287_s2 + $0x30] sm:$0xff]  }
 0x1ba   : > { %4715 = vtanh.f32 %v1252_v13 }
 0x1bb   : > { %4717 = vtanh.f32 %v1249_v18  ;;  %1597 = vmatpush1.bf16.msra.mxu1 %v1429_v4  ;;  %v1428_v52 = vpack.c.bf16 %v1384_v21, %v1382_v33 }
 0x1bc   : > { %4719 = vtanh.f32 %v1251_v50  ;;  %v4710_v47 = vpop.eup %4709  ;;  %v8471_v50 = vld [vmem:[#allocation26_spill] sm:$0xff] }
 0x1bd   : > { %1598 = vmatprep.subr.bf16.mxu1 %v1428_v52  ;;  %v1317_v7 = vadd.f32 1.0, %v4710_v47 }
 0x1be   : > { %v4712_v60 = vpop.eup %4711 }
 0x1bf   : > { %v1319_v11 = vadd.f32 1.0, %v4712_v60  ;;  %v1349_v59 = vmul.f32 0.5, %v1317_v7  ;;  %v8473_v7 = vld [vmem:[#allocation27_spill] sm:$0xff] }
 0x1c1   : > { %v1351_v5 = vmul.f32 0.5, %v1319_v11  ;;  %v1381_v31 = vmul.f32 %v1349_v59, %v6532_v35  ;;  %v8475_v59 = vld [vmem:[#allocation29_spill] sm:$0xff] }
 0x1c3   : > { %v1383_v46 = vmul.f32 %v1351_v5, %v6537_v14 }
 0x1c4   : > { %v4714_v57 = vpop.eup %4713 }
 0x1c5   : > { %v1314_v63 = vadd.f32 1.0, %v4714_v57  ;;  %v1427_v23 = vpack.c.bf16 %v1383_v46, %v1381_v31 }
 0x1c7   : > { %v4716_v55 = vpop.eup %4715  ;;  %v1346_v26 = vmul.f32 0.5, %v1314_v63  ;;  %1599 = vmatpush1.bf16.msra.mxu1 %v1427_v23 }
 0x1c8   : > { %v4718_v61 = vpop.eup %4717  ;;  %v1316_v3 = vadd.f32 1.0, %v4716_v55  ;;  %v8476_v55 = vld [vmem:[#allocation28_spill] sm:$0xff] }
 0x1c9   : > { %v1313_v19 = vadd.f32 1.0, %v4718_v61  ;;  %v4720_v34 = vpop.eup %4719  ;;  %v1378_v44 = vmul.f32 %v1346_v26, %v6566_v54  ;;  %v4630_v54 = vld [vmem:[%s8287_s2 + $0x8] sm:$0xff]  }
 0x1ca   : > { %v1348_v2 = vmul.f32 0.5, %v1316_v3  ;;  %v1315_v62 = vadd.f32 1.0, %v4720_v34 }
 0x1cb   : > { %v1345_v51 = vmul.f32 0.5, %v1313_v19 }
 0x1cc   : > { %v1380_v28 = vmul.f32 %v1348_v2, %v6572_v17  ;;  %v1347_v35 = vmul.f32 0.5, %v1315_v62  ;;  %v4631_v17 = vld [vmem:[%s8287_s2 + $0x10] sm:$0xff]  }
 0x1cd   : > { %v1377_v9 = vmul.f32 %v1345_v51, %v6578_v1  ;;  %v4632_v1 = vld [vmem:[%s8287_s2 + $0x18] sm:$0xff]  }
 0x1ce   : > { %v1426_v14 = vpack.c.bf16 %v1380_v28, %v1378_v44  ;;  %v1379_v32 = vmul.f32 %v1347_v35, %v6581_v22  ;;  %v4633_v22 = vld [vmem:[%s8287_s2 + $0x20] sm:$0xff]   ;;  %v8477_v2 = vld [vmem:[#allocation31_spill] sm:$0xff] }
 0x1d0   : > { %1600 = vmatprep.subr.bf16.mxu1 %v1426_v14  ;;  %v1425_v45 = vpack.c.bf16 %v1379_v32, %v1377_v9 }
 0x1d2   : > { %1601 = vmatpush1.bf16.msra.mxu1 %v1425_v45 }
 0x1d5   : > { %1619 = vmatmul.mubr.bf16.vlgmr.msra.gmra.mxu1 %v4629_v41  ;;  %v8478_v41 = vld [vmem:[#allocation30_spill] sm:$0xff] }
 0x1d6   : > { %1628 = vmatprep.mubr.bf16.mxu1 %v8470_v53 }
 0x1dd   : > { %1629 = vmatmul.mubr.bf16.gmra.mxu1 %v4630_v54 }
 0x1de   : > { %1638 = vmatprep.mubr.bf16.mxu1 %v8470_v53 }
 0x1e5   : > { %1639 = vmatmul.mubr.bf16.gmra.mxu1 %v4631_v17 }
 0x1e6   : > { %1648 = vmatprep.mubr.bf16.mxu1 %v8470_v53 }
 0x1ed   : > { %1649 = vmatmul.mubr.bf16.gmra.mxu1 %v4632_v1 }
 0x1ee   : > { %1658 = vmatprep.mubr.bf16.mxu1 %v8470_v53 }
 0x1f5   : > { %1659 = vmatmul.mubr.bf16.gmra.mxu1 %v4633_v22 }
 0x1f6   : > { %1668 = vmatprep.mubr.bf16.mxu1 %v8470_v53 }
 0x1fd   : > { %1669 = vmatmul.mubr.bf16.gmra.mxu1 %v4634_v24 }
 0x1fe   : > { %1678 = vmatprep.mubr.bf16.mxu1 %v8470_v53 }
 0x205   : > { %1679 = vmatmul.mubr.bf16.gmra.mxu1 %v4635_v27 }
 0x206   : > { %1688 = vmatprep.mubr.bf16.mxu1 %v8470_v53 }
 0x20d   : > { %1689 = vmatmul.mubr.bf16.gmra.mxu1 %v4636_v12 }
 0x20e   : > { %3686 = vmatprep.mubr.bf16.mxu1 %v8470_v53 }
 0x295   : > { %v1620_v0 = vpop.f32.mrf.mxu1 }
 0x296   : > { %v6648_v11 = vadd.f32 %v1620_v0, %v8473_v7 }
 0x297   : > { %v1622_v40 = vpop.f32.mrf.mxu1 }
 0x298   : > { %8474 = vst [vmem:[#allocation16_spill] sm:$0xff] %v6648_v11  ;;  %v6654_v31 = vadd.f32 %v1622_v40, %v8473_v7  ;;  %v1741_v19 = vmul.f32 %v6648_v11, %v6648_v11  ;;  %v8479_v40 = vld [vmem:[#allocation33_spill] sm:$0xff] }
 0x299   : > { %v1624_v36 = vpop.f32.mrf.mxu1 }
 0x29a   : > { %v6642_v52 = vadd.f32 %v1624_v36, %v8471_v50  ;;  %v1742_v62 = vmul.f32 %v6654_v31, %v6654_v31 }
 0x29b   : > { %v1626_v20 = vpop.f32.mrf.mxu1 }
 0x29c   : > { %8472 = vst [vmem:[#allocation17_spill] sm:$0xff] %v6642_v52  ;;  %v6645_v47 = vadd.f32 %v1626_v20, %v8471_v50  ;;  %v1743_v63 = vmul.f32 %v6642_v52, %v6642_v52  ;;  %v1699_v51 = vadd.f32 %v6642_v52, %v6648_v11 }
 0x29d   : > { %v1630_v38 = vpop.f32.mrf.mxu1 }
 0x29e   : > { %v6651_v5 = vadd.f32 %v1630_v38, %v8475_v59  ;;  %v1744_v61 = vmul.f32 %v6645_v47, %v6645_v47  ;;  %v1773_v14 = vadd.f32 %v1743_v63, %v1741_v19  ;;  %v1720_v32 = vadd.f32 %v6645_v47, %v6654_v31 }
 0x29f   : > { %v1632_v42 = vpop.f32.mrf.mxu1 }
 0x2a0   : > { %v6657_v57 = vadd.f32 %v1632_v42, %v8475_v59  ;;  %v1745_v34 = vmul.f32 %v6651_v5, %v6651_v5  ;;  %v1794_v17 = vadd.f32 %v1744_v61, %v1742_v62  ;;  %v1700_v1 = vadd.f32 %v1699_v51, %v6651_v5 }
 0x2a1   : > { %v1634_v13 = vpop.f32.mrf.mxu1 }
 0x2a2   : > { %v6662_v23 = vadd.f32 %v1634_v13, %v8476_v55  ;;  %v1746_v28 = vmul.f32 %v6657_v57, %v6657_v57  ;;  %v1774_v12 = vadd.f32 %v1773_v14, %v1745_v34  ;;  %v1721_v20 = vadd.f32 %v1720_v32, %v6657_v57 }
 0x2a3   : > { %v1636_v25 = vpop.f32.mrf.mxu1 }
 0x2a4   : > { %v6667_v3 = vadd.f32 %v1636_v25, %v8476_v55  ;;  %v1747_v45 = vmul.f32 %v6662_v23, %v6662_v23  ;;  %v1795_v38 = vadd.f32 %v1794_v17, %v1746_v28  ;;  %v1701_v42 = vadd.f32 %v1700_v1, %v6662_v23  ;;  %v8482_v17 = vld [vmem:[#allocation34_spill] sm:$0xff] }
 0x2a5   : > { %v1640_v10 = vpop.f32.mrf.mxu1 }
 0x2a6   : > { %v6674_v44 = vadd.f32 %v1640_v10, %v8477_v2  ;;  %v1748_v22 = vmul.f32 %v6667_v3, %v6667_v3  ;;  %v1775_v10 = vadd.f32 %v1774_v12, %v1747_v45 }
 0x2a7   : > { %v1642_v15 = vpop.f32.mrf.mxu1 }
 0x2a8   : > { %v6683_v35 = vadd.f32 %v1642_v15, %v8477_v2  ;;  %v1749_v0 = vmul.f32 %v6674_v44, %v6674_v44  ;;  %v1796_v7 = vadd.f32 %v1795_v38, %v1748_v22  ;;  %v1702_v59 = vadd.f32 %v1701_v42, %v6674_v44  ;;  %v8483_v42 = vld [vmem:[#allocation37_spill] sm:$0xff] }
 0x2a9   : > { %v1644_v18 = vpop.f32.mrf.mxu1 }
 0x2aa   : > { %v6690_v54 = vadd.f32 %v1644_v18, %v8478_v41  ;;  %v1750_v13 = vmul.f32 %v6683_v35, %v6683_v35  ;;  %v1776_v61 = vadd.f32 %v1775_v10, %v1749_v0 }
 0x2ab   : > { %v1646_v33 = vpop.f32.mrf.mxu1 }
 0x2ac   : > { %v6696_v24 = vadd.f32 %v1646_v33, %v8478_v41  ;;  %v1751_v15 = vmul.f32 %v6690_v54, %v6690_v54  ;;  %v8480_v33 = vld [vmem:[#allocation32_spill] sm:$0xff]  ;;  %v1797_v62 = vadd.f32 %v1796_v7, %v1750_v13  ;;  %v1703_v51 = vadd.f32 %v1702_v59, %v6690_v54 }
 0x2ad   : > { %v1650_v4 = vpop.f32.mrf.mxu1 }
 0x2ae   : > { %v6701_v36 = vadd.f32 %v1650_v4, %v8479_v40  ;;  %v1722_v4 = vadd.f32 %v1721_v20, %v6667_v3  ;;  %v1752_v63 = vmul.f32 %v6696_v24, %v6696_v24  ;;  %v1777_v14 = vadd.f32 %v1776_v61, %v1751_v15 }
 0x2af   : > { %v1652_v21 = vpop.f32.mrf.mxu1 }
 0x2b0   : > { %v6710_v18 = vadd.f32 %v1652_v21, %v8479_v40  ;;  %v1753_v19 = vmul.f32 %v6701_v36, %v6701_v36  ;;  %v8481_v21 = vld [vmem:[#allocation35_spill] sm:$0xff]  ;;  %v1704_v12 = vadd.f32 %v1703_v51, %v6701_v36 }
 0x2b1   : > { %v1654_v60 = vpop.f32.mrf.mxu1 }
 0x2b2   : > { %v6713_v50 = vadd.f32 %v1654_v60, %v8480_v33  ;;  %v1723_v60 = vadd.f32 %v1722_v4, %v6683_v35  ;;  %v1754_v32 = vmul.f32 %v6710_v18, %v6710_v18  ;;  %v1778_v0 = vadd.f32 %v1777_v14, %v1753_v19 }
 0x2b3   : > { %v1656_v46 = vpop.f32.mrf.mxu1 }
 0x2b4   : > { %v6722_v34 = vadd.f32 %v1656_v46, %v8480_v33  ;;  %v1755_v45 = vmul.f32 %v6713_v50, %v6713_v50  ;;  %v1724_v46 = vadd.f32 %v1723_v60, %v6696_v24  ;;  %v1705_v15 = vadd.f32 %v1704_v12, %v6713_v50 }
 0x2b5   : > { %v1660_v26 = vpop.f32.mrf.mxu1 }
 0x2b6   : > { %v6725_v2 = vadd.f32 %v1660_v26, %v8481_v21  ;;  %v1798_v26 = vadd.f32 %v1797_v62, %v1752_v63  ;;  %v1756_v40 = vmul.f32 %v6722_v34, %v6722_v34  ;;  %v1725_v38 = vadd.f32 %v1724_v46, %v6710_v18  ;;  %v8484_v63 = vld [vmem:[#allocation36_spill] sm:$0xff] }
 0x2b7   : > { %v1662_v9 = vpop.f32.mrf.mxu1  ;;  %v1779_v33 = vadd.f32 %v1778_v0, %v1755_v45 }
 0x2b8   : > { %v6734_v41 = vadd.f32 %v1662_v9, %v8481_v21  ;;  %v1757_v20 = vmul.f32 %v6725_v2, %v6725_v2  ;;  %v1799_v10 = vadd.f32 %v1798_v26, %v1754_v32  ;;  %v1706_v21 = vadd.f32 %v1705_v15, %v6725_v2 }
 0x2b9   : > { %v1664_v27 = vpop.f32.mrf.mxu1 }
 0x2ba   : > { %v6738_v1 = vadd.f32 %v1664_v27, %v8482_v17  ;;  %v1758_v4 = vmul.f32 %v6734_v41, %v6734_v41  ;;  %v1800_v19 = vadd.f32 %v1799_v10, %v1756_v40  ;;  %v1780_v60 = vadd.f32 %v1779_v33, %v1757_v20 }
 0x2bb   : > { %v1666_v25 = vpop.f32.mrf.mxu1 }
 0x2bc   : > { %v6747_v9 = vadd.f32 %v1666_v25, %v8482_v17  ;;  %v1759_v7 = vmul.f32 %v6738_v1, %v6738_v1  ;;  %v1801_v26 = vadd.f32 %v1800_v19, %v1758_v4  ;;  %v1707_v17 = vadd.f32 %v1706_v21, %v6738_v1 }
 0x2bd   : > { %v1670_v55 = vpop.f32.mrf.mxu1 }
 0x2be   : > { %v6750_v13 = vadd.f32 %v1670_v55, %v8483_v42  ;;  %v1726_v55 = vadd.f32 %v1725_v38, %v6722_v34  ;;  %v1760_v62 = vmul.f32 %v6747_v9, %v6747_v9 }
 0x2bf   : > { %v1672_v28 = vpop.f32.mrf.mxu1 }
 0x2c0   : > { %v6758_v59 = vadd.f32 %v1672_v28, %v8483_v42  ;;  %v1761_v51 = vmul.f32 %v6750_v13, %v6750_v13  ;;  %v8485_v28 = vld [vmem:[#allocation39_spill] sm:$0xff]  ;;  %v1727_v46 = vadd.f32 %v1726_v55, %v6734_v41  ;;  %v1708_v42 = vadd.f32 %v1707_v17, %v6750_v13 }
 0x2c1   : > { %v1674_v22 = vpop.f32.mrf.mxu1  ;;  %v1802_v15 = vadd.f32 %v1801_v26, %v1760_v62  ;;  %v8487_v26 = vld [vmem:[#allocation41_spill] sm:$0xff] }
 0x2c2   : > { %v6761_v25 = vadd.f32 %v1674_v22, %v8484_v63  ;;  %v1781_v22 = vadd.f32 %v1780_v60, %v1759_v7  ;;  %v1762_v12 = vmul.f32 %v6758_v59, %v6758_v59  ;;  %v1728_v38 = vadd.f32 %v1727_v46, %v6747_v9 }
 0x2c3   : > { %v1676_v27 = vpop.f32.mrf.mxu1 }
 0x2c4   : > { %v6770_v14 = vadd.f32 %v1676_v27, %v8484_v63  ;;  %v1763_v0 = vmul.f32 %v6761_v25, %v6761_v25  ;;  %v8486_v27 = vld [vmem:[#allocation38_spill] sm:$0xff]  ;;  %v1782_v33 = vadd.f32 %v1781_v22, %v1761_v51  ;;  %v1709_v55 = vadd.f32 %v1708_v42, %v6761_v25 }
 0x2c5   : > { %v1680_v61 = vpop.f32.mrf.mxu1  ;;  %v1803_v21 = vadd.f32 %v1802_v15, %v1762_v12 }
 0x2c6   : > { %v6773_v32 = vadd.f32 %v1680_v61, %v8485_v28  ;;  %v1764_v4 = vmul.f32 %v6770_v14, %v6770_v14  ;;  %v1729_v61 = vadd.f32 %v1728_v38, %v6758_v59  ;;  %v1783_v60 = vadd.f32 %v1782_v33, %v1763_v0 }
 0x2c7   : > { %v1682_v45 = vpop.f32.mrf.mxu1 }
 0x2c8   : > { %v6782_v40 = vadd.f32 %v1682_v45, %v8485_v28  ;;  %v1765_v7 = vmul.f32 %v6773_v32, %v6773_v32  ;;  %v1730_v45 = vadd.f32 %v1729_v61, %v6770_v14  ;;  %v1710_v46 = vadd.f32 %v1709_v55, %v6773_v32 }
 0x2c9   : > { %v1684_v20 = vpop.f32.mrf.mxu1  ;;  %v1804_v22 = vadd.f32 %v1803_v21, %v1764_v4  ;;  %v8488_v21 = vld [vmem:[#allocation40_spill] sm:$0xff] }
 0x2ca   : > { %v6787_v10 = vadd.f32 %v1684_v20, %v8486_v27  ;;  %v1766_v62 = vmul.f32 %v6782_v40, %v6782_v40  ;;  %v1784_v20 = vadd.f32 %v1783_v60, %v1765_v7  ;;  %v1731_v38 = vadd.f32 %v1730_v45, %v6782_v40 }
 0x2cb   : > { %v1686_v63 = vpop.f32.mrf.mxu1 }
 0x2cc   : > { %v6796_v19 = vadd.f32 %v1686_v63, %v8486_v27  ;;  %v1767_v51 = vmul.f32 %v6787_v10, %v6787_v10  ;;  %v1711_v42 = vadd.f32 %v1710_v46, %v6787_v10  ;;  %v1805_v33 = vadd.f32 %v1804_v22, %v1766_v62 }
 0x2cd   : > { %v1690_v28 = vpop.f32.mrf.mxu1 }
 0x2ce   : > { %v6805_v17 = vadd.f32 %v1690_v28, %v8487_v26  ;;  %v1768_v12 = vmul.f32 %v6796_v19, %v6796_v19  ;;  %v1785_v63 = vadd.f32 %v1784_v20, %v1767_v51  ;;  %v1732_v4 = vadd.f32 %v1731_v38, %v6796_v19 }
 0x2cf   : > { %v1692_v0 = vpop.f32.mrf.mxu1 }
 0x2d0   : > { %v1769_v27 = vmul.f32 %v6805_v17, %v6805_v17  ;;  %v6814_v15 = vadd.f32 %v1692_v0, %v8487_v26  ;;  %v1712_v7 = vadd.f32 %v1711_v42, %v6805_v17  ;;  %v1806_v28 = vadd.f32 %v1805_v33, %v1768_v12 }
 0x2d1   : > { %v1694_v61 = vpop.f32.mrf.mxu1 }
 0x2d2   : > { %v1770_v55 = vmul.f32 %v6814_v15, %v6814_v15  ;;  %v6821_v60 = vadd.f32 %v1694_v61, %v8488_v21  ;;  %v1786_v45 = vadd.f32 %v1785_v63, %v1769_v27  ;;  %v1733_v53 = vadd.f32 %v1732_v4, %v6814_v15 }
 0x2d3   : > { %v1696_v46 = vpop.f32.mrf.mxu1 }
 0x2d4   : > { %v1713_v26 = vadd.f32 %v1712_v7, %v6821_v60  ;;  %v1771_v62 = vmul.f32 %v6821_v60, %v6821_v60  ;;  %v6828_v51 = vadd.f32 %v1696_v46, %v8488_v21  ;;  %v1807_v22 = vadd.f32 %v1806_v28, %v1770_v55 }
 0x2d6   : > { %v1714_v20 = vrot.slane %v1713_v26, 4  ;;  %v1787_v0 = vadd.f32 %v1786_v45, %v1771_v62  ;;  %v1734_v38 = vadd.f32 %v1733_v53, %v6828_v51  ;;  %v1772_v12 = vmul.f32 %v6828_v51, %v6828_v51 }
 0x2d8   : > { %v1715_v42 = vadd.f32 %v1714_v20, %v1713_v26  ;;  %v1788_v27 = vrot.slane %v1787_v0, 4  ;;  %v1735_v33 = vrot.slane %v1734_v38, 4  ;;  %v1808_v63 = vadd.f32 %v1807_v22, %v1772_v12 }
 0x2da   : > { %v1716_v61 = vrot.slane %v1715_v42, 2  ;;  %v1789_v4 = vadd.f32 %v1788_v27, %v1787_v0  ;;  %v1736_v7 = vadd.f32 %v1735_v33, %v1734_v38  ;;  %v1809_v16 = vrot.slane %v1808_v63, 4 }
 0x2dc   : > { %v1717_v49 = vadd.f32 %v1716_v61, %v1715_v42  ;;  %v1790_v39 = vrot.slane %v1789_v4, 2  ;;  %v1737_v21 = vrot.slane %v1736_v7, 2  ;;  %v1810_v46 = vadd.f32 %v1809_v16, %v1808_v63  ;;  %v8492_v61 = vld [vmem:[#allocation46_spill] sm:$0xff] }
 0x2de   : > { %v1718_v55 = vrot.slane %v1717_v49, 1  ;;  %v1791_v28 = vadd.f32 %v1790_v39, %v1789_v4  ;;  %v1738_v45 = vadd.f32 %v1737_v21, %v1736_v7  ;;  %v1811_v62 = vrot.slane %v1810_v46, 2 }
 0x2e0   : > { %v1719_v53 = vadd.f32 %v1718_v55, %v1717_v49  ;;  %v1792_v43 = vrot.slane %v1791_v28, 1  ;;  %v1739_v6 = vrot.slane %v1738_v45, 1  ;;  %v1812_v37 = vadd.f32 %v1811_v62, %v1810_v46 }
 0x2e2   : > { %v1793_v26 = vadd.f32 %v1792_v43, %v1791_v28  ;;  %v6833_v20 = vmul.f32 0.0078125, %v1719_v53  ;;  %v1740_v22 = vadd.f32 %v1739_v6, %v1738_v45  ;;  %v1813_v12 = vrot.slane %v1812_v37, 1  ;;  %v8494_v53 = vld [vmem:[#allocation45_spill] sm:$0xff] }
 0x2e4   : > { %v1817_v0 = vmul.f32 0.0078125, %v1793_v26  ;;  %v1819_v38 = vmul.f32 %v6833_v20, %v6833_v20  ;;  %v1814_v42 = vadd.f32 %v1813_v12, %v1812_v37  ;;  %v6837_v27 = vmul.f32 0.0078125, %v1740_v22  ;;  %v8490_v22 = vld [vmem:[#allocation43_spill] sm:$0xff] }
 0x2e5   : > { %v1853_v37 = vsub.f32 %v6821_v60, %v6833_v20  ;;  %v1851_v4 = vsub.f32 %v6805_v17, %v6833_v20  ;;  %v1847_v7 = vsub.f32 %v6773_v32, %v6833_v20  ;;  %v1849_v21 = vsub.f32 %v6787_v10, %v6833_v20 }
 0x2e6   : > { %v1821_v16 = vsub.f32 %v1817_v0, %v1819_v38  ;;  %v1818_v39 = vmul.f32 0.0078125, %v1814_v42  ;;  %v1820_v49 = vmul.f32 %v6837_v27, %v6837_v27  ;;  %v1843_v46 = vsub.f32 %v6750_v13, %v6833_v20 }
 0x2e7   : > { %v1845_v55 = vsub.f32 %v6761_v25, %v6833_v20  ;;  %v1854_v28 = vsub.f32 %v6828_v51, %v6837_v27  ;;  %v1852_v60 = vsub.f32 %v6814_v15, %v6837_v27  ;;  %v1848_v17 = vsub.f32 %v6782_v40, %v6837_v27 }
 0x2e8   : > { %v1855_v33 = vadd.f32 1e-05, %v1821_v16  ;;  %v1822_v63 = vsub.f32 %v1818_v39, %v1820_v49  ;;  %v1850_v32 = vsub.f32 %v6796_v19, %v6837_v27  ;;  %v1844_v10 = vsub.f32 %v6758_v59, %v6837_v27 }
 0x2e9   : > { %v1846_v13 = vsub.f32 %v6770_v14, %v6837_v27  ;;  %v1839_v15 = vsub.f32 %v6725_v2, %v6833_v20  ;;  %v1841_v40 = vsub.f32 %v6738_v1, %v6833_v20  ;;  %v8491_v1 = vld [vmem:[#allocation47_spill] sm:$0xff] }
 0x2ea   : > { %4721 = vrsqrt.f32 %v1855_v33  ;;  %v1856_v43 = vadd.f32 1e-05, %v1822_v63 }
 0x2ec   : > { %4723 = vrsqrt.f32 %v1856_v43 }
 0x2f7   : > { %v6897_v38 = vpop.eup %4721 }
 0x2f8   : > { %v1889_v33 = vmul.f32 %v6897_v38, %v1853_v37  ;;  %v1887_v63 = vmul.f32 %v6897_v38, %v1851_v4  ;;  %v1883_v43 = vmul.f32 %v6897_v38, %v1847_v7  ;;  %v1885_v0 = vmul.f32 %v6897_v38, %v1849_v21  ;;  %v8489_v37 = vld [vmem:[#allocation42_spill] sm:$0xff] }
 0x2f9   : > { %v6912_v12 = vmul.f32 %v6897_v38, %v1843_v46  ;;  %v6915_v42 = vmul.f32 %v6897_v38, %v1845_v55  ;;  %v6918_v16 = vmul.f32 %v6897_v38, %v1839_v15  ;;  %v6921_v39 = vmul.f32 %v6897_v38, %v1841_v40  ;;  %v6923_v49 = vpop.eup %4723  ;;  %v8493_v40 = vld [vmem:[#allocation44_spill] sm:$0xff] }
 0x2fa   : > { %v2018_v4 = vmul.f32 %v8489_v37, %v1889_v33  ;;  %v2016_v7 = vmul.f32 %v8490_v22, %v1887_v63  ;;  %v2012_v21 = vmul.f32 %v8491_v1, %v1883_v43  ;;  %v2014_v46 = vmul.f32 %v8492_v61, %v1885_v0  ;;  %v8495_v33 = vld [vmem:[#allocation49_spill] sm:$0xff]  ;;  %v8496_v43 = vld [vmem:[#allocation48_spill] sm:$0xff] }
 0x2fb   : > { %v1890_v2 = vmul.f32 %v6923_v49, %v1854_v28  ;;  %v1888_v55 = vmul.f32 %v6923_v49, %v1852_v60  ;;  %v1884_v15 = vmul.f32 %v6923_v49, %v1848_v17  ;;  %v1886_v6 = vmul.f32 %v6923_v49, %v1850_v32 }
 0x2fc   : > { %v6934_v26 = vadd.f32 %v8493_v40, %v2018_v4  ;;  %v6937_v62 = vadd.f32 %v8494_v53, %v2016_v7  ;;  %v6940_v63 = vadd.f32 %v8495_v33, %v2012_v21  ;;  %v6943_v45 = vadd.f32 %v8496_v43, %v2014_v46 }
 0x2fd   : > { %v2019_v28 = vmul.f32 %v8489_v37, %v1890_v2  ;;  %v2017_v60 = vmul.f32 %v8490_v22, %v1888_v55  ;;  %v2013_v17 = vmul.f32 %v8491_v1, %v1884_v15  ;;  %v2015_v32 = vmul.f32 %v8492_v61, %v1886_v6 }
 0x2fe   : > { %v2179_v0 = vmul.f32 %v6934_v26, %v6934_v26  ;;  %v2177_v4 = vmul.f32 %v6937_v62, %v6937_v62  ;;  %v2173_v7 = vmul.f32 %v6940_v63, %v6940_v63  ;;  %v2175_v21 = vmul.f32 %v6943_v45, %v6943_v45 }
 0x2ff   : > { %v6958_v2 = vadd.f32 %v8493_v40, %v2019_v28  ;;  %v6961_v22 = vadd.f32 %v8494_v53, %v2017_v60  ;;  %v6964_v6 = vadd.f32 %v8495_v33, %v2013_v17  ;;  %v6967_v61 = vadd.f32 %v8496_v43, %v2015_v32 }
 0x300   : > { %v2209_v1 = vmul.f32 %v2177_v4, %v6937_v62  ;;  %v2211_v37 = vmul.f32 %v2179_v0, %v6934_v26  ;;  %v2205_v46 = vmul.f32 %v2173_v7, %v6940_v63  ;;  %v2207_v55 = vmul.f32 %v2175_v21, %v6943_v45 }
 0x301   : > { %v2178_v15 = vmul.f32 %v6961_v22, %v6961_v22  ;;  %v2180_v53 = vmul.f32 %v6958_v2, %v6958_v2  ;;  %v2174_v40 = vmul.f32 %v6964_v6, %v6964_v6  ;;  %v2176_v33 = vmul.f32 %v6967_v61, %v6967_v61 }
 0x302   : > { %v2241_v43 = vmul.f32 0.044715, %v2209_v1  ;;  %v2243_v28 = vmul.f32 0.044715, %v2211_v37  ;;  %v2237_v60 = vmul.f32 0.044715, %v2205_v46  ;;  %v1880_v17 = vmul.f32 %v6923_v49, %v1844_v10 }
 0x303   : > { %v2210_v32 = vmul.f32 %v2178_v15, %v6961_v22  ;;  %v2212_v0 = vmul.f32 %v2180_v53, %v6958_v2  ;;  %v2206_v4 = vmul.f32 %v2174_v40, %v6964_v6  ;;  %v2208_v7 = vmul.f32 %v2176_v33, %v6967_v61 }
 0x304   : > { %v2273_v21 = vadd.f32 %v2241_v43, %v6937_v62  ;;  %v2275_v19 = vadd.f32 %v2243_v28, %v6934_v26  ;;  %v2239_v1 = vmul.f32 0.044715, %v2207_v55  ;;  %v2269_v37 = vadd.f32 %v2237_v60, %v6940_v63 }
 0x305   : > { %v2242_v46 = vmul.f32 0.044715, %v2210_v32  ;;  %v2244_v51 = vmul.f32 0.044715, %v2212_v0  ;;  %v2238_v59 = vmul.f32 0.044715, %v2206_v4  ;;  %v1882_v10 = vmul.f32 %v6923_v49, %v1846_v13 }
 0x306   : > { %v2305_v15 = vmul.f32 0.7978846, %v2273_v21  ;;  %v2307_v53 = vmul.f32 0.7978846, %v2275_v19  ;;  %v2240_v40 = vmul.f32 0.044715, %v2208_v7  ;;  %v2271_v33 = vadd.f32 %v2239_v1, %v6943_v45 }
 0x307   : > { %v2274_v43 = vadd.f32 %v2242_v46, %v6961_v22  ;;  %v2276_v28 = vadd.f32 %v2244_v51, %v6958_v2  ;;  %v2270_v55 = vadd.f32 %v2238_v59, %v6964_v6  ;;  %v2301_v60 = vmul.f32 0.7978846, %v2269_v37  ;;  %v8497_v4 = vld [vmem:[#allocation51_spill] sm:$0xff]  ;;  %v8498_v21 = vld [vmem:[#allocation50_spill] sm:$0xff]  ;;  %v8499_v46 = vld [vmem:[#allocation53_spill] sm:$0xff] }
 0x308   : > { %4725 = vtanh.f32 %v2305_v15  ;;  %v2272_v32 = vadd.f32 %v2240_v40, %v6967_v61  ;;  %v2303_v0 = vmul.f32 0.7978846, %v2271_v33  ;;  %v2009_v14 = vmul.f32 %v8497_v4, %v1880_v17  ;;  %v8501_v15 = vld [vmem:[#allocation52_spill] sm:$0xff] }
 0x309   : > { %v2306_v25 = vmul.f32 0.7978846, %v2274_v43  ;;  %v2308_v13 = vmul.f32 0.7978846, %v2276_v28  ;;  %4727 = vtanh.f32 %v2307_v53  ;;  %v2302_v19 = vmul.f32 0.7978846, %v2270_v55 }
 0x30a   : > { %v2304_v7 = vmul.f32 0.7978846, %v2272_v32  ;;  %4729 = vtanh.f32 %v2301_v60  ;;  %v2011_v1 = vmul.f32 %v8498_v21, %v1882_v10  ;;  %v7004_v52 = vadd.f32 %v8499_v46, %v2009_v14  ;;  %v8503_v28 = vld [vmem:[#allocation54_spill] sm:$0xff] }
 0x30b   : > { %4731 = vtanh.f32 %v2306_v25  ;;  %v2008_v51 = vmul.f32 %v8497_v4, %v6912_v12  ;;  %v2010_v37 = vmul.f32 %v8498_v21, %v6915_v42  ;;  %v8500_v17 = vsub.f32 %v6734_v41, %v6837_v27 }
 0x30c   : > { %4733 = vtanh.f32 %v2308_v13  ;;  %v7015_v53 = vadd.f32 %v8501_v15, %v2011_v1  ;;  %v2170_v10 = vmul.f32 %v7004_v52, %v7004_v52  ;;  %v8502_v25 = vsub.f32 %v6747_v9, %v6837_v27  ;;  %v8504_v13 = vld [vmem:[#allocation55_spill] sm:$0xff] }
 0x30d   : > { %v1876_v59 = vmul.f32 %v6923_v49, %v8500_v17  ;;  %4735 = vtanh.f32 %v2302_v19  ;;  %v7024_v42 = vadd.f32 %v8499_v46, %v2008_v51  ;;  %v7027_v41 = vadd.f32 %v8501_v15, %v2010_v37 }
 0x30e   : > { %v1878_v12 = vmul.f32 %v6923_v49, %v8502_v25  ;;  %4737 = vtanh.f32 %v2304_v7  ;;  %v2172_v33 = vmul.f32 %v7015_v53, %v7015_v53  ;;  %v2202_v43 = vmul.f32 %v2170_v10, %v7004_v52 }
 0x30f   : > { %v2005_v40 = vmul.f32 %v6191_v56, %v1876_v59  ;;  %4739 = vtanh.f32 %v2303_v0  ;;  %v2169_v9 = vmul.f32 %v7024_v42, %v7024_v42  ;;  %v2171_v60 = vmul.f32 %v7027_v41, %v7027_v41 }
 0x310   : > { %v2007_v55 = vmul.f32 %v8503_v28, %v1878_v12  ;;  %v2204_v4 = vmul.f32 %v2172_v33, %v7015_v53  ;;  %v2234_v14 = vmul.f32 0.044715, %v2202_v43  ;;  %v2004_v7 = vmul.f32 %v6191_v56, %v6918_v16 }
 0x311   : > { %v7039_v32 = vadd.f32 %v6215_v30, %v2005_v40  ;;  %v2201_v0 = vmul.f32 %v2169_v9, %v7024_v42  ;;  %v2203_v21 = vmul.f32 %v2171_v60, %v7027_v41  ;;  %v2006_v46 = vmul.f32 %v8503_v28, %v6921_v39 }
 0x312   : > { %v7043_v19 = vadd.f32 %v8504_v13, %v2007_v55  ;;  %v2236_v51 = vmul.f32 0.044715, %v2204_v4  ;;  %v2266_v37 = vadd.f32 %v2234_v14, %v7004_v52  ;;  %v7057_v59 = vadd.f32 %v6215_v30, %v2004_v7 }
 0x313   : > { %v2166_v1 = vmul.f32 %v7039_v32, %v7039_v32  ;;  %v2233_v56 = vmul.f32 0.044715, %v2201_v0  ;;  %v2235_v16 = vmul.f32 0.044715, %v2203_v21  ;;  %v7061_v10 = vadd.f32 %v8504_v13, %v2006_v46 }
 0x314   : > { %v2168_v17 = vmul.f32 %v7043_v19, %v7043_v19  ;;  %v2268_v25 = vadd.f32 %v2236_v51, %v7015_v53  ;;  %v2298_v12 = vmul.f32 0.7978846, %v2266_v37  ;;  %v2165_v40 = vmul.f32 %v7057_v59, %v7057_v59 }
 0x315   : > { %v2198_v15 = vmul.f32 %v2166_v1, %v7039_v32  ;;  %v4726_v33 = vpop.eup %4725  ;;  %v2265_v43 = vadd.f32 %v2233_v56, %v7024_v42  ;;  %v2267_v30 = vadd.f32 %v2235_v16, %v7027_v41  ;;  %v2167_v55 = vmul.f32 %v7061_v10, %v7061_v10 }
 0x316   : > { %v2200_v39 = vmul.f32 %v2168_v17, %v7043_v19  ;;  %v4728_v9 = vpop.eup %4727  ;;  %v2369_v60 = vadd.f32 1.0, %v4726_v33  ;;  %v2300_v4 = vmul.f32 0.7978846, %v2268_v25  ;;  %4741 = vtanh.f32 %v2298_v12 }
 0x317   : > { %v2230_v28 = vmul.f32 0.044715, %v2198_v15  ;;  %v4730_v13 = vpop.eup %4729  ;;  %v2371_v7 = vadd.f32 1.0, %v4728_v9  ;;  %v2297_v0 = vmul.f32 0.7978846, %v2265_v43 }
 0x318   : > { %v2232_v14 = vmul.f32 0.044715, %v2200_v39  ;;  %v2299_v21 = vmul.f32 0.7978846, %v2267_v30  ;;  %v4732_v46 = vpop.eup %4731  ;;  %v2401_v51 = vmul.f32 0.5, %v2369_v60  ;;  %v2365_v37 = vadd.f32 1.0, %v4730_v13 }
 0x319   : > { %v2262_v1 = vadd.f32 %v2230_v28, %v7039_v32  ;;  %4743 = vtanh.f32 %v2300_v4  ;;  %v4734_v56 = vpop.eup %4733  ;;  %v2370_v16 = vadd.f32 1.0, %v4732_v46  ;;  %v2403_v15 = vmul.f32 0.5, %v2371_v7 }
 0x31a   : > { %v2264_v17 = vadd.f32 %v2232_v14, %v7043_v19  ;;  %4745 = vtanh.f32 %v2297_v0  ;;  %v4736_v25 = vpop.eup %4735  ;;  %v2372_v12 = vadd.f32 1.0, %v4734_v56  ;;  %v2433_v39 = vmul.f32 %v2401_v51, %v6937_v62 }
 0x31b   : > { %v2294_v33 = vmul.f32 0.7978846, %v2262_v1  ;;  %v2397_v9 = vmul.f32 0.5, %v2365_v37  ;;  %4747 = vtanh.f32 %v2299_v21  ;;  %v4738_v43 = vpop.eup %4737  ;;  %v2402_v30 = vmul.f32 0.5, %v2370_v16 }
 0x31c   : > { %v2435_v28 = vmul.f32 %v2403_v15, %v6934_v26  ;;  %v2366_v60 = vadd.f32 1.0, %v4736_v25  ;;  %v2296_v13 = vmul.f32 0.7978846, %v2264_v17  ;;  %v4740_v4 = vpop.eup %4739  ;;  %v2404_v11 = vmul.f32 0.5, %v2372_v12  ;;  %v8507_v25 = vld [vmem:[#allocation6_spill] sm:$0xff] }
 0x31d   : > { %v2368_v14 = vadd.f32 1.0, %v4738_v43  ;;  %v2429_v46 = vmul.f32 %v2397_v9, %v6940_v63  ;;  %4749 = vtanh.f32 %v2294_v33  ;;  %v2434_v7 = vmul.f32 %v2402_v30, %v6961_v22  ;;  %v8509_v9 = vld [vmem:[#allocation7_spill] sm:$0xff] }
 0x31e   : > { %v2468_v0 = vpack.c.bf16 %v2435_v28, %v2433_v39  ;;  %v2398_v1 = vmul.f32 0.5, %v2366_v60  ;;  %v2367_v56 = vadd.f32 1.0, %v4740_v4  ;;  %v2436_v62 = vmul.f32 %v2404_v11, %v6958_v2 }
 0x31f   : > { %v2400_v21 = vmul.f32 0.5, %v2368_v14  ;;  %4751 = vtanh.f32 %v2296_v13  ;;  %v2197_v51 = vmul.f32 %v2165_v40, %v7057_v59  ;;  %v2199_v17 = vmul.f32 %v2167_v55, %v7061_v10  ;;  %v8511_v13 = vld [vmem:[#allocation8_spill] sm:$0xff] }
 0x320   : > { %v2430_v26 = vmul.f32 %v2398_v1, %v6964_v6  ;;  %v2399_v37 = vmul.f32 0.5, %v2367_v56  ;;  %v8505_v63 = vsub.f32 %v6710_v18, %v6837_v27  ;;  %v2469_v22 = vpack.c.bf16 %v2436_v62, %v2434_v7  ;;  %v8512_v1 = vld [vmem:[#allocation9_spill] sm:$0xff] }
 0x321   : > { %v2432_v15 = vmul.f32 %v2400_v21, %v6967_v61  ;;  %v2229_v33 = vmul.f32 0.044715, %v2197_v51  ;;  %v8506_v11 = vsub.f32 %v6722_v34, %v6837_v27  ;;  %v2231_v6 = vmul.f32 0.044715, %v2199_v17 }
 0x322   : > { %v1872_v16 = vmul.f32 %v6923_v49, %v8505_v63  ;;  %v2431_v40 = vmul.f32 %v2399_v37, %v6943_v45  ;;  %v8508_v55 = vsub.f32 %v6701_v36, %v6833_v20  ;;  %2615 = vmatprep.subr.bf16.mxu0 %v2469_v22  ;;  %v8510_v34 = vsub.f32 %v6713_v50, %v6833_v20 }
 0x323   : > { %v1874_v2 = vmul.f32 %v6923_v49, %v8506_v11  ;;  %v2467_v39 = vpack.c.bf16 %v2432_v15, %v2430_v26  ;;  %v2261_v61 = vadd.f32 %v2229_v33, %v7057_v59  ;;  %v4742_v45 = vpop.eup %4741  ;;  %2616 = vmatpush1.bf16.msra.mxu0 %v2468_v0  ;;  %v2263_v60 = vadd.f32 %v2231_v6, %v7061_v10 }
 0x324   : > { %v2001_v12 = vmul.f32 %v8507_v25, %v1872_v16  ;;  %v1871_v18 = vmul.f32 %v6897_v38, %v8508_v55  ;;  %v1873_v30 = vmul.f32 %v6897_v38, %v8510_v34  ;;  %v2466_v28 = vpack.c.bf16 %v2431_v40, %v2429_v46 }
 0x325   : > { %v2003_v43 = vmul.f32 %v8509_v9, %v1874_v2  ;;  %2617 = vmatprep.subr.bf16.mxu0 %v2467_v39  ;;  %v2362_v14 = vadd.f32 1.0, %v4742_v45  ;;  %v2293_v7 = vmul.f32 0.7978846, %v2261_v61  ;;  %v2295_v21 = vmul.f32 0.7978846, %v2263_v60 }
 0x326   : > { %v7104_v36 = vadd.f32 %v8511_v13, %v2001_v12  ;;  %v2000_v4 = vmul.f32 %v8507_v25, %v1871_v18  ;;  %v2002_v50 = vmul.f32 %v8509_v9, %v1873_v30  ;;  %v4744_v62 = vpop.eup %4743  ;;  %v8513_v51 = vsub.f32 %v6683_v35, %v6837_v27 }
 0x327   : > { %v7108_v56 = vadd.f32 %v8512_v1, %v2003_v43  ;;  %v4746_v37 = vpop.eup %4745  ;;  %v2364_v17 = vadd.f32 1.0, %v4744_v62  ;;  %v2394_v63 = vmul.f32 0.5, %v2362_v14  ;;  %4753 = vtanh.f32 %v2293_v7  ;;  %2618 = vmatpush1.bf16.msra.mxu0 %v2466_v28 }
 0x328   : > { %v2162_v46 = vmul.f32 %v7104_v36, %v7104_v36  ;;  %v7114_v0 = vadd.f32 %v8511_v13, %v2000_v4  ;;  %v1868_v26 = vmul.f32 %v6923_v49, %v8513_v51  ;;  %v4748_v22 = vpop.eup %4747  ;;  %v2361_v15 = vadd.f32 1.0, %v4746_v37 }
 0x329   : > { %v2164_v16 = vmul.f32 %v7108_v56, %v7108_v56  ;;  %4755 = vtanh.f32 %v2295_v21  ;;  %v7124_v11 = vadd.f32 %v8512_v1, %v2002_v50  ;;  %v2396_v2 = vmul.f32 0.5, %v2364_v17 }
 0x32a   : > { %v2194_v33 = vmul.f32 %v2162_v46, %v7104_v36  ;;  %v2426_v35 = vmul.f32 %v2394_v63, %v7004_v52  ;;  %v2363_v40 = vadd.f32 1.0, %v4748_v22  ;;  %v4750_v25 = vpop.eup %4749  ;;  %v2393_v12 = vmul.f32 0.5, %v2361_v15 }
 0x32b   : > { %v2196_v6 = vmul.f32 %v2164_v16, %v7108_v56  ;;  %v2161_v18 = vmul.f32 %v7114_v0, %v7114_v0  ;;  %v2163_v39 = vmul.f32 %v7124_v11, %v7124_v11  ;;  %v2428_v61 = vmul.f32 %v2396_v2, %v7015_v53 }
 0x32c   : > { %v2226_v55 = vmul.f32 0.044715, %v2194_v33  ;;  %v2395_v9 = vmul.f32 0.5, %v2363_v40  ;;  %v2358_v43 = vadd.f32 1.0, %v4750_v25  ;;  %v4752_v30 = vpop.eup %4751  ;;  %v2425_v52 = vmul.f32 %v2393_v12, %v7024_v42 }
 0x32d   : > { %v2228_v34 = vmul.f32 0.044715, %v2196_v6  ;;  %v2193_v28 = vmul.f32 %v2161_v18, %v7114_v0  ;;  %v2195_v60 = vmul.f32 %v2163_v39, %v7124_v11  ;;  %v2465_v13 = vpack.c.bf16 %v2428_v61, %v2426_v35 }
 0x32e   : > { %v2258_v45 = vadd.f32 %v2226_v55, %v7104_v36  ;;  %v2427_v4 = vmul.f32 %v2395_v9, %v7027_v41  ;;  %v2360_v14 = vadd.f32 1.0, %v4752_v30  ;;  %v2390_v7 = vmul.f32 0.5, %v2358_v43 }
 0x32f   : > { %v2260_v1 = vadd.f32 %v2228_v34, %v7108_v56  ;;  %v2225_v50 = vmul.f32 0.044715, %v2193_v28  ;;  %v2227_v62 = vmul.f32 0.044715, %v2195_v60  ;;  %2619 = vmatprep.subr.bf16.mxu0 %v2465_v13  ;;  %v8514_v51 = vsub.f32 %v6696_v24, %v6837_v27  ;;  %v8520_v60 = vld [vmem:[#allocation11_spill] sm:$0xff] }
 0x330   : > { %v2290_v53 = vmul.f32 0.7978846, %v2258_v45  ;;  %v2464_v21 = vpack.c.bf16 %v2427_v4, %v2425_v52  ;;  %v2392_v46 = vmul.f32 0.5, %v2360_v14  ;;  %v2422_v42 = vmul.f32 %v2390_v7, %v7039_v32  ;;  %v8521_v7 = vld [vmem:[#allocation12_spill] sm:$0xff] }
 0x331   : > { %v1870_v37 = vmul.f32 %v6923_v49, %v8514_v51  ;;  %v2292_v17 = vmul.f32 0.7978846, %v2260_v1  ;;  %v2257_v41 = vadd.f32 %v2225_v50, %v7114_v0  ;;  %v2259_v63 = vadd.f32 %v2227_v62, %v7124_v11  ;;  %v8522_v62 = vld [vmem:[#allocation13_spill] sm:$0xff] }
 0x332   : > { %4757 = vtanh.f32 %v2290_v53  ;;  %2620 = vmatpush1.bf16.msra.mxu0 %v2464_v21  ;;  %v2424_v16 = vmul.f32 %v2392_v46, %v7043_v19  ;;  %v1997_v22 = vmul.f32 %v6325_v29, %v1868_v26  ;;  %v8515_v32 = vsub.f32 %v6674_v44, %v6833_v20 }
 0x333   : > { %v1999_v15 = vmul.f32 %v6320_v8, %v1870_v37  ;;  %4759 = vtanh.f32 %v2292_v17  ;;  %v2289_v33 = vmul.f32 0.7978846, %v2257_v41  ;;  %v2291_v2 = vmul.f32 0.7978846, %v2259_v63 }
 0x334   : > { %v1867_v24 = vmul.f32 %v6897_v38, %v8515_v32  ;;  %v8516_v35 = vsub.f32 %v6690_v54, %v6833_v20  ;;  %v2463_v6 = vpack.c.bf16 %v2424_v16, %v2422_v42  ;;  %v7158_v19 = vadd.f32 %v6368_v48, %v1997_v22  ;;  %v4754_v44 = vpop.eup %4753 }
 0x335   : > { %v7161_v26 = vadd.f32 %v6357_v58, %v1999_v15  ;;  %4761 = vtanh.f32 %v2289_v33  ;;  %v8517_v55 = vsub.f32 %v6657_v57, %v6837_v27  ;;  %v8518_v18 = vsub.f32 %v6667_v3, %v6837_v27  ;;  %v8519_v3 = vld [vmem:[#allocation10_spill] sm:$0xff] }
 0x336   : > { %v1869_v40 = vmul.f32 %v6897_v38, %v8516_v35  ;;  %v1996_v25 = vmul.f32 %v6325_v29, %v1867_v24  ;;  %v4756_v61 = vpop.eup %4755  ;;  %2621 = vmatprep.subr.bf16.mxu0 %v2463_v6  ;;  %v2357_v9 = vadd.f32 1.0, %v4754_v44  ;;  %4763 = vtanh.f32 %v2291_v2 }
 0x337   : > { %v1864_v54 = vmul.f32 %v6923_v49, %v8517_v55  ;;  %v1866_v39 = vmul.f32 %v6923_v49, %v8518_v18  ;;  %v2158_v29 = vmul.f32 %v7158_v19, %v7158_v19  ;;  %v2359_v43 = vadd.f32 1.0, %v4756_v61 }
 0x338   : > { %v1998_v12 = vmul.f32 %v6320_v8, %v1869_v40  ;;  %v2160_v8 = vmul.f32 %v7161_v26, %v7161_v26  ;;  %v7178_v57 = vadd.f32 %v6368_v48, %v1996_v25  ;;  %v2389_v52 = vmul.f32 0.5, %v2357_v9 }
 0x339   : > { %v1993_v30 = vmul.f32 %v8519_v3, %v1864_v54  ;;  %v2190_v45 = vmul.f32 %v2158_v29, %v7158_v19  ;;  %v1995_v13 = vmul.f32 %v8520_v60, %v1866_v39  ;;  %v2391_v4 = vmul.f32 0.5, %v2359_v43 }
 0x33a   : > { %v7181_v34 = vadd.f32 %v6357_v58, %v1998_v12  ;;  %v2192_v28 = vmul.f32 %v2160_v8, %v7161_v26  ;;  %v2157_v14 = vmul.f32 %v7178_v57, %v7178_v57  ;;  %v2421_v58 = vmul.f32 %v2389_v52, %v7057_v59 }
 0x33b   : > { %v7192_v1 = vadd.f32 %v8521_v7, %v1993_v30  ;;  %v2222_v53 = vmul.f32 0.044715, %v2190_v45  ;;  %v7196_v21 = vadd.f32 %v8522_v62, %v1995_v13  ;;  %v2423_v46 = vmul.f32 %v2391_v4, %v7061_v10 }
 0x33c   : > { %v2159_v48 = vmul.f32 %v7181_v34, %v7181_v34  ;;  %v2224_v50 = vmul.f32 0.044715, %v2192_v28  ;;  %v2189_v42 = vmul.f32 %v2157_v14, %v7178_v57  ;;  %v8523_v63 = vsub.f32 %v6651_v5, %v6833_v20 }
 0x33d   : > { %v2154_v37 = vmul.f32 %v7192_v1, %v7192_v1  ;;  %v2254_v17 = vadd.f32 %v2222_v53, %v7158_v19  ;;  %v2156_v59 = vmul.f32 %v7196_v21, %v7196_v21  ;;  %v2462_v10 = vpack.c.bf16 %v2423_v46, %v2421_v58 }
 0x33e   : > { %v2191_v51 = vmul.f32 %v2159_v48, %v7181_v34  ;;  %v2256_v41 = vadd.f32 %v2224_v50, %v7161_v26  ;;  %v1863_v16 = vmul.f32 %v6897_v38, %v8523_v63  ;;  %v2221_v22 = vmul.f32 0.044715, %v2189_v42  ;;  %v8528_v63 = vld [vmem:[#allocation15_spill] sm:$0xff] }
 0x33f   : > { %v2186_v32 = vmul.f32 %v2154_v37, %v7192_v1  ;;  %v4758_v24 = vpop.eup %4757  ;;  %v2286_v33 = vmul.f32 0.7978846, %v2254_v17  ;;  %v2188_v35 = vmul.f32 %v2156_v59, %v7196_v21  ;;  %v8524_v40 = vsub.f32 %v6662_v23, %v6833_v20  ;;  %2622 = vmatpush1.bf16.msra.mxu0 %v2462_v10  ;;  %v8527_v59 = vld [vmem:[#allocation14_spill] sm:$0xff]  ;;  %v2045_v10 = vpop.permute.xlu1 %2044 }
 0x340   : > { %v2223_v15 = vmul.f32 0.044715, %v2191_v51  ;;  %v2288_v2 = vmul.f32 0.7978846, %v2256_v41  ;;  %v2354_v25 = vadd.f32 1.0, %v4758_v24  ;;  %v2253_v5 = vadd.f32 %v2221_v22, %v7178_v57  ;;  %v4760_v55 = vpop.eup %4759  ;;  %v2040_v22 = vpop.permute.xlu0 %2039 }
 0x341   : > { %v1865_v6 = vmul.f32 %v6897_v38, %v8524_v40  ;;  %v2218_v12 = vmul.f32 0.044715, %v2186_v32  ;;  %4765 = vtanh.f32 %v2286_v33  ;;  %v2220_v54 = vmul.f32 0.044715, %v2188_v35 }
 0x342   : > { %v2255_v44 = vadd.f32 %v2223_v15, %v7181_v34  ;;  %v1992_v18 = vmul.f32 %v8519_v3, %v1863_v16  ;;  %v2356_v61 = vadd.f32 1.0, %v4760_v55  ;;  %v2386_v9 = vmul.f32 0.5, %v2354_v25  ;;  %v4762_v29 = vpop.eup %4761  ;;  %v8531_v15 = vld [vmem:[#allocation17_spill] sm:$0xff] }
 0x343   : > { %v1994_v39 = vmul.f32 %v8520_v60, %v1865_v6  ;;  %4767 = vtanh.f32 %v2288_v2  ;;  %v2285_v23 = vmul.f32 0.7978846, %v2253_v5  ;;  %v2250_v43 = vadd.f32 %v2218_v12, %v7192_v1  ;;  %v4764_v45 = vpop.eup %4763 }
 0x344   : > { %v2287_v8 = vmul.f32 0.7978846, %v2255_v44  ;;  %v2252_v30 = vadd.f32 %v2220_v54, %v7196_v21  ;;  %v7224_v52 = vadd.f32 %v8521_v7, %v1992_v18  ;;  %v2388_v28 = vmul.f32 0.5, %v2356_v61 }
 0x345   : > { %v2418_v13 = vmul.f32 %v2386_v9, %v7104_v36  ;;  %v2353_v3 = vadd.f32 1.0, %v4762_v29  ;;  %4769 = vtanh.f32 %v2285_v23  ;;  %v2355_v60 = vadd.f32 1.0, %v4764_v45 }
 0x346   : > { %4771 = vtanh.f32 %v2287_v8  ;;  %v2282_v4 = vmul.f32 0.7978846, %v2250_v43  ;;  %v2284_v14 = vmul.f32 0.7978846, %v2252_v30  ;;  %v2420_v48 = vmul.f32 %v2388_v28, %v7108_v56 }
 0x347   : > { %v2385_v58 = vmul.f32 0.5, %v2353_v3  ;;  %v7229_v53 = vadd.f32 %v8522_v62, %v1994_v39  ;;  %v2153_v7 = vmul.f32 %v7224_v52, %v7224_v52  ;;  %v2387_v50 = vmul.f32 0.5, %v2355_v60 }
 0x348   : > { %4773 = vtanh.f32 %v2282_v4  ;;  %v8525_v36 = vsub.f32 %v6654_v31, %v6837_v27  ;;  %v8526_v42 = vsub.f32 %v6645_v47, %v6837_v27  ;;  %v2461_v56 = vpack.c.bf16 %v2420_v48, %v2418_v13  ;;  %v8529_v27 = vld [vmem:[#allocation16_spill] sm:$0xff] }
 0x349   : > { %v2417_v37 = vmul.f32 %v2385_v58, %v7114_v0  ;;  %4775 = vtanh.f32 %v2284_v14  ;;  %v2155_v62 = vmul.f32 %v7229_v53, %v7229_v53  ;;  %v2419_v17 = vmul.f32 %v2387_v50, %v7124_v11 }
 0x34a   : > { %v1860_v46 = vmul.f32 %v6923_v49, %v8525_v36  ;;  %v1862_v51 = vmul.f32 %v6923_v49, %v8526_v42  ;;  %v2185_v41 = vmul.f32 %v2153_v7, %v7224_v52  ;;  %2623 = vmatprep.subr.bf16.mxu0 %v2461_v56  ;;  %v8530_v49 = vsub.f32 %v8529_v27, %v6833_v20 }
 0x34b   : > { %v2187_v47 = vmul.f32 %v2155_v62, %v7229_v53  ;;  %v8532_v32 = vsub.f32 %v8531_v15, %v6833_v20  ;;  %v2460_v24 = vpack.c.bf16 %v2419_v17, %v2417_v37 }
 0x34c   : > { %v1989_v31 = vmul.f32 %v8527_v59, %v1860_v46  ;;  %v1991_v16 = vmul.f32 %v8528_v63, %v1862_v51  ;;  %v1859_v0 = vmul.f32 %v6897_v38, %v8530_v49  ;;  %v2217_v33 = vmul.f32 0.044715, %v2185_v41 }
 0x34d   : > { %v1861_v11 = vmul.f32 %v6897_v38, %v8532_v32  ;;  %v2219_v40 = vmul.f32 0.044715, %v2187_v47  ;;  %2624 = vmatpush1.bf16.msra.mxu0 %v2460_v24 }
 0x34e   : > { %v7257_v2 = vadd.f32 %v2040_v22, %v1989_v31  ;;  %v7259_v35 = vadd.f32 %v2045_v10, %v1991_v16  ;;  %v1988_v6 = vmul.f32 %v8527_v59, %v1859_v0  ;;  %v2249_v5 = vadd.f32 %v2217_v33, %v7224_v52  ;;  %v4766_v38 = vpop.eup %4765 }
 0x34f   : > { %v1990_v25 = vmul.f32 %v8528_v63, %v1861_v11  ;;  %v2251_v12 = vadd.f32 %v2219_v40, %v7229_v53  ;;  %v2350_v39 = vadd.f32 1.0, %v4766_v38 }
 0x350   : > { %v2150_v44 = vmul.f32 %v7257_v2, %v7257_v2  ;;  %v2152_v20 = vmul.f32 %v7259_v35, %v7259_v35  ;;  %v7269_v55 = vadd.f32 %v2040_v22, %v1988_v6  ;;  %v4768_v18 = vpop.eup %4767  ;;  %v2281_v61 = vmul.f32 0.7978846, %v2249_v5 }
 0x351   : > { %v7271_v54 = vadd.f32 %v2045_v10, %v1990_v25  ;;  %v2352_v29 = vadd.f32 1.0, %v4768_v18  ;;  %v2283_v8 = vmul.f32 0.7978846, %v2251_v12  ;;  %v2382_v28 = vmul.f32 0.5, %v2350_v39 }
 0x352   : > { %v2182_v9 = vmul.f32 %v2150_v44, %v7257_v2  ;;  %v2184_v23 = vmul.f32 %v2152_v20, %v7259_v35  ;;  %v2149_v43 = vmul.f32 %v7269_v55, %v7269_v55  ;;  %v4770_v45 = vpop.eup %4769  ;;  %4777 = vtanh.f32 %v2281_v61 }
 0x353   : > { %v2151_v30 = vmul.f32 %v7271_v54, %v7271_v54  ;;  %v4772_v60 = vpop.eup %4771  ;;  %v2384_v4 = vmul.f32 0.5, %v2352_v29  ;;  %v2349_v14 = vadd.f32 1.0, %v4770_v45  ;;  %4779 = vtanh.f32 %v2283_v8 }
 0x354   : > { %v2214_v13 = vmul.f32 0.044715, %v2182_v9  ;;  %v2216_v3 = vmul.f32 0.044715, %v2184_v23  ;;  %v2181_v48 = vmul.f32 %v2149_v43, %v7269_v55  ;;  %v2414_v58 = vmul.f32 %v2382_v28, %v7158_v19 }
 0x355   : > { %v2351_v7 = vadd.f32 1.0, %v4772_v60  ;;  %v4774_v46 = vpop.eup %4773  ;;  %v2416_v42 = vmul.f32 %v2384_v4, %v7161_v26  ;;  %v2381_v51 = vmul.f32 0.5, %v2349_v14  ;;  %v2183_v56 = vmul.f32 %v2151_v30, %v7271_v54  ;;  %v4637_v60 = vld [vmem:[%s8287_s2 + $0x40] sm:$0xff]   ;;  %v4642_v14 = vld [vmem:[%s8287_s2 + $0x68] sm:$0xff]  }
 0x356   : > { %v2246_v50 = vadd.f32 %v2214_v13, %v7257_v2  ;;  %v2248_v36 = vadd.f32 %v2216_v3, %v7259_v35  ;;  %v2213_v37 = vmul.f32 0.044715, %v2181_v48  ;;  %v4776_v62 = vpop.eup %4775  ;;  %v2346_v41 = vadd.f32 1.0, %v4774_v46  ;;  %v4641_v4 = vld [vmem:[%s8287_s2 + $0x60] sm:$0xff]   ;;  %v4643_v48 = vld [vmem:[%s8287_s2 + $0x70] sm:$0xff]  }
 0x357   : > { %v2383_v17 = vmul.f32 0.5, %v2351_v7  ;;  %v2459_v63 = vpack.c.bf16 %v2416_v42, %v2414_v58  ;;  %v2413_v19 = vmul.f32 %v2381_v51, %v7178_v57  ;;  %v2348_v16 = vadd.f32 1.0, %v4776_v62  ;;  %v4644_v58 = vld [vmem:[%s8287_s2 + $0x78] sm:$0xff]  }
 0x358   : > { %v2278_v59 = vmul.f32 0.7978846, %v2246_v50  ;;  %v2280_v31 = vmul.f32 0.7978846, %v2248_v36  ;;  %v2215_v10 = vmul.f32 0.044715, %v2183_v56  ;;  %v2245_v26 = vadd.f32 %v2213_v37, %v7269_v55  ;;  %v2490_v37 = vpop.permute.xlu0 %2489 }
 0x359   : > { %v2415_v22 = vmul.f32 %v2383_v17, %v7181_v34  ;;  %v2378_v47 = vmul.f32 0.5, %v2346_v41  ;;  %2625 = vmatprep.subr.bf16.mxu0 %v2459_v63  ;;  %v2380_v27 = vmul.f32 0.5, %v2348_v16  ;;  %v2495_v17 = vpop.permute.xlu1 %2494 }
 0x35a   : > { %4781 = vtanh.f32 %v2278_v59  ;;  %v2247_v49 = vadd.f32 %v2215_v10, %v7271_v54  ;;  %v2277_v32 = vmul.f32 0.7978846, %v2245_v26 }
 0x35b   : > { %4783 = vtanh.f32 %v2280_v31  ;;  %v2458_v0 = vpack.c.bf16 %v2415_v22, %v2413_v19  ;;  %v2410_v15 = vmul.f32 %v2378_v47, %v7192_v1  ;;  %v2412_v11 = vmul.f32 %v2380_v27, %v7196_v21 }
 0x35c   : > { %v2279_v57 = vmul.f32 0.7978846, %v2247_v49  ;;  %4785 = vtanh.f32 %v2277_v32  ;;  %v2500_v31 = vpop.permute.xlu0 %2499 }
 0x35d   : > { %2626 = vmatpush1.bf16.msra.mxu0 %v2458_v0  ;;  %v2457_v24 = vpack.c.bf16 %v2412_v11, %v2410_v15  ;;  %v2505_v19 = vpop.permute.xlu1 %2504 }
 0x35e   : > { %4787 = vtanh.f32 %v2279_v57 }
 0x35f   : > { %v4778_v34 = vpop.eup %4777  ;;  %2627 = vmatprep.subr.bf16.mxu0 %v2457_v24 }
 0x360   : > { %v4780_v33 = vpop.eup %4779  ;;  %v2345_v40 = vadd.f32 1.0, %v4778_v34  ;;  %v2510_v22 = vpop.permute.xlu0 %2509 }
 0x361   : > { %v2347_v6 = vadd.f32 1.0, %v4780_v33  ;;  %v2515_v27 = vpop.permute.xlu1 %2514 }
 0x362   : > { %v2377_v25 = vmul.f32 0.5, %v2345_v40 }
 0x363   : > { %v2379_v5 = vmul.f32 0.5, %v2347_v6 }
 0x364   : > { %v2409_v44 = vmul.f32 %v2377_v25, %v7224_v52  ;;  %v2520_v34 = vpop.permute.xlu0 %2519 }
 0x365   : > { %v2411_v1 = vmul.f32 %v2379_v5, %v7229_v53 }
 0x367   : > { %v4782_v20 = vpop.eup %4781  ;;  %v2456_v21 = vpack.c.bf16 %v2411_v1, %v2409_v44 }
 0x368   : > { %v4784_v38 = vpop.eup %4783  ;;  %v2342_v12 = vadd.f32 1.0, %v4782_v20 }
 0x369   : > { %v2344_v18 = vadd.f32 1.0, %v4784_v38  ;;  %v4786_v61 = vpop.eup %4785  ;;  %2628 = vmatpush1.bf16.msra.mxu0 %v2456_v21  ;;  %v2525_v38 = vpop.permute.xlu1 %2524 }
 0x36a   : > { %v2374_v39 = vmul.f32 0.5, %v2342_v12  ;;  %v2341_v8 = vadd.f32 1.0, %v4786_v61 }
 0x36b   : > { %v2376_v9 = vmul.f32 0.5, %v2344_v18  ;;  %v4788_v23 = vpop.eup %4787 }
 0x36c   : > { %v2406_v29 = vmul.f32 %v2374_v39, %v7257_v2  ;;  %v2343_v30 = vadd.f32 1.0, %v4788_v23  ;;  %v2373_v45 = vmul.f32 0.5, %v2341_v8  ;;  %v8533_v2 = vmov 0  }
 0x36d   : > { %v2408_v43 = vmul.f32 %v2376_v9, %v7259_v35  ;;  %v4638_v35 = vld [vmem:[%s8287_s2 + $0x48] sm:$0xff]  }
 0x36e   : > { %v2375_v28 = vmul.f32 0.5, %v2343_v30  ;;  %v2405_v53 = vmul.f32 %v2373_v45, %v7269_v55  ;;  %v4639_v55 = vld [vmem:[%s8287_s2 + $0x50] sm:$0xff]  }
 0x36f   : > { %v2455_v52 = vpack.c.bf16 %v2408_v43, %v2406_v29 }
 0x370   : > { %v2407_v13 = vmul.f32 %v2375_v28, %v7271_v54  ;;  %v4640_v54 = vld [vmem:[%s8287_s2 + $0x58] sm:$0xff]  }
 0x371   : > { %2629 = vmatprep.subr.bf16.mxu0 %v2455_v52 }
 0x372   : > { %v2454_v3 = vpack.c.bf16 %v2407_v13, %v2405_v53  ;;  %v2530_v53 = vpop.permute.xlu0 %2529 }
 0x374   : > { %2630 = vmatpush1.bf16.msra.mxu0 %v2454_v3 }
 0x377   : > { %2648 = vmatmul.mubr.bf16.vlgmr.msra.gmra.mxu0 %v4637_v60 }
 0x378   : > { %2657 = vmatprep.mubr.bf16.mxu0 %v8533_v2 }
 0x37f   : > { %2658 = vmatmul.mubr.bf16.gmra.mxu0 %v4638_v35 }
 0x380   : > { %2667 = vmatprep.mubr.bf16.mxu0 %v8533_v2 }
 0x387   : > { %2668 = vmatmul.mubr.bf16.gmra.mxu0 %v4639_v55 }
 0x388   : > { %2677 = vmatprep.mubr.bf16.mxu0 %v8533_v2 }
 0x38f   : > { %2678 = vmatmul.mubr.bf16.gmra.mxu0 %v4640_v54 }
 0x390   : > { %2687 = vmatprep.mubr.bf16.mxu0 %v8533_v2 }
 0x397   : > { %2688 = vmatmul.mubr.bf16.gmra.mxu0 %v4641_v4 }
 0x398   : > { %2697 = vmatprep.mubr.bf16.mxu0 %v8533_v2 }
 0x39f   : > { %2698 = vmatmul.mubr.bf16.gmra.mxu0 %v4642_v14 }
 0x3a0   : > { %2707 = vmatprep.mubr.bf16.mxu0 %v8533_v2 }
 0x3a7   : > { %2708 = vmatmul.mubr.bf16.gmra.mxu0 %v4643_v48 }
 0x3a8   : > { %2717 = vmatprep.mubr.bf16.mxu0 %v8533_v2 }
 0x3af   : > { %2718 = vmatmul.mubr.bf16.gmra.mxu0 %v4644_v58 }
 0x3b0   : > { %3676 = vmatprep.mubr.bf16.mxu0 %v8533_v2 }
 0x437   : > { %v2649_v7 = vpop.f32.mrf.mxu0 }
 0x438   : > { %v7333_v15 = vadd.f32 %v2649_v7, %v2490_v37 }
 0x439   : > { %v2651_v50 = vpop.f32.mrf.mxu0 }
 0x43a   : > { %v7337_v11 = vadd.f32 %v2651_v50, %v2490_v37  ;;  %v2770_v44 = vmul.f32 %v7333_v15, %v7333_v15 }
 0x43b   : > { %v2653_v36 = vpop.f32.mrf.mxu0 }
 0x43c   : > { %v7329_v26 = vadd.f32 %v2653_v36, %v2495_v17  ;;  %v2771_v12 = vmul.f32 %v7337_v11, %v7337_v11  ;;  %v2535_v36 = vpop.permute.xlu1 %2534 }
 0x43d   : > { %v2655_v46 = vpop.f32.mrf.mxu0 }
 0x43e   : > { %v7331_v49 = vadd.f32 %v2655_v46, %v2495_v17  ;;  %v2772_v33 = vmul.f32 %v7329_v26, %v7329_v26  ;;  %v2728_v21 = vadd.f32 %v7329_v26, %v7333_v15 }
 0x43f   : > { %v2659_v42 = vpop.f32.mrf.mxu0 }
 0x440   : > { %v7335_v32 = vadd.f32 %v2659_v42, %v2500_v31  ;;  %v2773_v6 = vmul.f32 %v7331_v49, %v7331_v49  ;;  %v2802_v9 = vadd.f32 %v2772_v33, %v2770_v44  ;;  %v2749_v23 = vadd.f32 %v7331_v49, %v7337_v11 }
 0x441   : > { %v2661_v51 = vpop.f32.mrf.mxu0 }
 0x442   : > { %v7339_v57 = vadd.f32 %v2661_v51, %v2500_v31  ;;  %v2774_v20 = vmul.f32 %v7335_v32, %v7335_v32  ;;  %v2823_v43 = vadd.f32 %v2773_v6, %v2771_v12  ;;  %v2729_v30 = vadd.f32 %v2728_v21, %v7335_v32  ;;  %v2545_v12 = vpop.permute.xlu1 %2544 }
 0x443   : > { %v2663_v56 = vpop.f32.mrf.mxu0 }
 0x444   : > { %v7343_v40 = vadd.f32 %v2663_v56, %v2505_v19  ;;  %v2775_v18 = vmul.f32 %v7339_v57, %v7339_v57  ;;  %v2803_v13 = vadd.f32 %v2802_v9, %v2774_v20  ;;  %v2750_v35 = vadd.f32 %v2749_v23, %v7339_v57 }
 0x445   : > { %v2665_v62 = vpop.f32.mrf.mxu0 }
 0x446   : > { %v7347_v25 = vadd.f32 %v2665_v62, %v2505_v19  ;;  %v2776_v29 = vmul.f32 %v7343_v40, %v7343_v40  ;;  %v2824_v55 = vadd.f32 %v2823_v43, %v2775_v18  ;;  %v2730_v54 = vadd.f32 %v2729_v30, %v7343_v40 }
 0x447   : > { %v2669_v41 = vpop.f32.mrf.mxu0 }
 0x448   : > { %v7353_v1 = vadd.f32 %v2669_v41, %v2510_v22  ;;  %v2777_v45 = vmul.f32 %v7347_v25, %v7347_v25  ;;  %v2804_v48 = vadd.f32 %v2803_v13, %v2776_v29  ;;  %v2751_v46 = vadd.f32 %v2750_v35, %v7347_v25 }
 0x449   : > { %v2671_v59 = vpop.f32.mrf.mxu0 }
 0x44a   : > { %v7361_v39 = vadd.f32 %v2671_v59, %v2510_v22  ;;  %v2778_v3 = vmul.f32 %v7353_v1, %v7353_v1  ;;  %v2825_v42 = vadd.f32 %v2824_v55, %v2777_v45  ;;  %v2731_v51 = vadd.f32 %v2730_v54, %v7353_v1 }
 0x44b   : > { %v2673_v63 = vpop.f32.mrf.mxu0 }
 0x44c   : > { %v7367_v8 = vadd.f32 %v2673_v63, %v2515_v27  ;;  %v2779_v4 = vmul.f32 %v7361_v39, %v7361_v39  ;;  %v2805_v62 = vadd.f32 %v2804_v48, %v2778_v3  ;;  %v2752_v31 = vadd.f32 %v2751_v46, %v7361_v39 }
 0x44d   : > { %v2675_v16 = vpop.f32.mrf.mxu0 }
 0x44e   : > { %v7372_v52 = vadd.f32 %v2675_v16, %v2515_v27  ;;  %v2780_v58 = vmul.f32 %v7367_v8, %v7367_v8  ;;  %v2826_v63 = vadd.f32 %v2825_v42, %v2779_v4  ;;  %v2732_v19 = vadd.f32 %v2731_v51, %v7367_v8 }
 0x44f   : > { %v2679_v10 = vpop.f32.mrf.mxu0 }
 0x450   : > { %v7376_v60 = vadd.f32 %v2679_v10, %v2520_v34  ;;  %v2781_v56 = vmul.f32 %v7372_v52, %v7372_v52  ;;  %v2540_v10 = vpop.permute.xlu0 %2539  ;;  %v2806_v22 = vadd.f32 %v2805_v62, %v2780_v58 }
 0x451   : > { %v2681_v47 = vpop.f32.mrf.mxu0 }
 0x452   : > { %v7384_v7 = vadd.f32 %v2681_v47, %v2520_v34  ;;  %v2782_v17 = vmul.f32 %v7376_v60, %v7376_v60  ;;  %v2827_v34 = vadd.f32 %v2826_v63, %v2781_v56 }
 0x453   : > { %v2683_v0 = vpop.f32.mrf.mxu0 }
 0x454   : > { %v7386_v50 = vadd.f32 %v2683_v0, %v2525_v38  ;;  %v2783_v47 = vmul.f32 %v7384_v7, %v7384_v7  ;;  %v2807_v44 = vadd.f32 %v2806_v22, %v2782_v17  ;;  %v2550_v3 = vpop.permute.xlu0 %2549 }
 0x455   : > { %v2685_v24 = vpop.f32.mrf.mxu0 }
 0x456   : > { %v7394_v41 = vadd.f32 %v2685_v24, %v2525_v38  ;;  %v2784_v27 = vmul.f32 %v7386_v50, %v7386_v50  ;;  %v2753_v24 = vadd.f32 %v2752_v31, %v7372_v52  ;;  %v2828_v23 = vadd.f32 %v2827_v34, %v2783_v47 }
 0x457   : > { %v2689_v5 = vpop.f32.mrf.mxu0 }
 0x458   : > { %v7396_v59 = vadd.f32 %v2689_v5, %v2530_v53  ;;  %v2733_v5 = vadd.f32 %v2732_v19, %v7376_v60  ;;  %v2785_v20 = vmul.f32 %v7394_v41, %v7394_v41  ;;  %v2754_v21 = vadd.f32 %v2753_v24, %v7384_v7 }
 0x459   : > { %v2691_v61 = vpop.f32.mrf.mxu0  ;;  %v2808_v43 = vadd.f32 %v2807_v44, %v2784_v27 }
 0x45a   : > { %v7404_v0 = vadd.f32 %v2691_v61, %v2530_v53  ;;  %v2786_v38 = vmul.f32 %v7396_v59, %v7396_v59  ;;  %v2734_v29 = vadd.f32 %v2733_v5, %v7386_v50  ;;  %v2755_v35 = vadd.f32 %v2754_v21, %v7394_v41 }
 0x45b   : > { %v2693_v28 = vpop.f32.mrf.mxu0  ;;  %v2829_v55 = vadd.f32 %v2828_v23, %v2785_v20 }
 0x45c   : > { %v7407_v33 = vadd.f32 %v2693_v28, %v2535_v36  ;;  %v2787_v30 = vmul.f32 %v7404_v0, %v7404_v0  ;;  %v2735_v54 = vadd.f32 %v2734_v29, %v7396_v59  ;;  %v2809_v4 = vadd.f32 %v2808_v43, %v2786_v38  ;;  %v2560_v38 = vpop.permute.xlu0 %2559 }
 0x45d   : > { %v2695_v14 = vpop.f32.mrf.mxu0  ;;  %v2756_v42 = vadd.f32 %v2755_v35, %v7404_v0 }
 0x45e   : > { %v7415_v18 = vadd.f32 %v2695_v14, %v2535_v36  ;;  %v2788_v45 = vmul.f32 %v7407_v33, %v7407_v33  ;;  %v2830_v51 = vadd.f32 %v2829_v55, %v2787_v30  ;;  %v2736_v56 = vadd.f32 %v2735_v54, %v7407_v33 }
 0x45f   : > { %v2699_v37 = vpop.f32.mrf.mxu0 }
 0x460   : > { %v7417_v61 = vadd.f32 %v2699_v37, %v2540_v10  ;;  %v2789_v14 = vmul.f32 %v7415_v18, %v7415_v18  ;;  %v2555_v37 = vpop.permute.xlu1 %2554  ;;  %v2810_v62 = vadd.f32 %v2809_v4, %v2788_v45 }
 0x461   : > { %v2701_v16 = vpop.f32.mrf.mxu0 }
 0x462   : > { %v7424_v28 = vadd.f32 %v2701_v16, %v2540_v10  ;;  %v2790_v48 = vmul.f32 %v7417_v61, %v7417_v61  ;;  %v2757_v16 = vadd.f32 %v2756_v42, %v7415_v18  ;;  %v2737_v10 = vadd.f32 %v2736_v56, %v7417_v61 }
 0x463   : > { %v2703_v6 = vpop.f32.mrf.mxu0  ;;  %v2831_v47 = vadd.f32 %v2830_v51, %v2789_v14 }
 0x464   : > { %v7426_v53 = vadd.f32 %v2703_v6, %v2545_v12  ;;  %v2791_v17 = vmul.f32 %v7424_v28, %v7424_v28  ;;  %v2811_v27 = vadd.f32 %v2810_v62, %v2790_v48  ;;  %v2758_v5 = vadd.f32 %v2757_v16, %v7424_v28 }
 0x465   : > { %v2705_v9 = vpop.f32.mrf.mxu0 }
 0x466   : > { %v7434_v58 = vadd.f32 %v2705_v9, %v2545_v12  ;;  %v2792_v31 = vmul.f32 %v7426_v53, %v7426_v53  ;;  %v2738_v44 = vadd.f32 %v2737_v10, %v7426_v53  ;;  %v2832_v12 = vadd.f32 %v2831_v47, %v2791_v17 }
 0x467   : > { %v2709_v13 = vpop.f32.mrf.mxu0 }
 0x468   : > { %v7436_v36 = vadd.f32 %v2709_v13, %v2550_v3  ;;  %v2793_v24 = vmul.f32 %v7434_v58, %v7434_v58  ;;  %v2812_v21 = vadd.f32 %v2811_v27, %v2792_v31  ;;  %v2759_v43 = vadd.f32 %v2758_v5, %v7434_v58 }
 0x469   : > { %v2711_v46 = vpop.f32.mrf.mxu0 }
 0x46a   : > { %v7444_v63 = vadd.f32 %v2711_v46, %v2550_v3  ;;  %v2794_v34 = vmul.f32 %v7436_v36, %v7436_v36  ;;  %v2739_v30 = vadd.f32 %v2738_v44, %v7436_v36  ;;  %v2833_v13 = vadd.f32 %v2832_v12, %v2793_v24  ;;  %v2565_v46 = vpop.permute.xlu1 %2564 }
 0x46b   : > { %v2713_v19 = vpop.f32.mrf.mxu0 }
 0x46c   : > { %v7448_v22 = vadd.f32 %v2713_v19, %v2555_v37  ;;  %v2795_v9 = vmul.f32 %v7444_v63, %v7444_v63  ;;  %v2813_v3 = vadd.f32 %v2812_v21, %v2794_v34  ;;  %v2760_v54 = vadd.f32 %v2759_v43, %v7444_v63 }
 0x46d   : > { %v2715_v6 = vpop.f32.mrf.mxu0 }
 0x46e   : > { %v7456_v20 = vadd.f32 %v2715_v6, %v2555_v37  ;;  %v2796_v23 = vmul.f32 %v7448_v22, %v7448_v22  ;;  %v2740_v4 = vadd.f32 %v2739_v30, %v7448_v22  ;;  %v2834_v42 = vadd.f32 %v2833_v13, %v2795_v9 }
 0x46f   : > { %v2719_v29 = vpop.f32.mrf.mxu0 }
 0x470   : > { %v7464_v45 = vadd.f32 %v2719_v29, %v2560_v38  ;;  %v2797_v35 = vmul.f32 %v7456_v20, %v7456_v20  ;;  %v2814_v51 = vadd.f32 %v2813_v3, %v2796_v23  ;;  %v2761_v37 = vadd.f32 %v2760_v54, %v7456_v20 }
 0x471   : > { %v2721_v55 = vpop.f32.mrf.mxu0 }
 0x472   : > { %v2798_v14 = vmul.f32 %v7464_v45, %v7464_v45  ;;  %v7472_v48 = vadd.f32 %v2721_v55, %v2560_v38  ;;  %v2741_v62 = vadd.f32 %v2740_v4, %v7464_v45  ;;  %v2835_v19 = vadd.f32 %v2834_v42, %v2797_v35 }
 0x473   : > { %v2723_v56 = vpop.f32.mrf.mxu0 }
 0x474   : > { %v2799_v17 = vmul.f32 %v7472_v48, %v7472_v48  ;;  %v7478_v31 = vadd.f32 %v2723_v56, %v2565_v46  ;;  %v2815_v16 = vadd.f32 %v2814_v51, %v2798_v14  ;;  %v2762_v47 = vadd.f32 %v2761_v37, %v7472_v48 }
 0x475   : > { %v2725_v10 = vpop.f32.mrf.mxu0 }
 0x476   : > { %v2742_v27 = vadd.f32 %v2741_v62, %v7478_v31  ;;  %v2800_v24 = vmul.f32 %v7478_v31, %v7478_v31  ;;  %v7484_v34 = vadd.f32 %v2725_v10, %v2565_v46  ;;  %v2836_v6 = vadd.f32 %v2835_v19, %v2799_v17 }
 0x478   : > { %v2743_v5 = vrot.slane %v2742_v27, 4  ;;  %v2816_v44 = vadd.f32 %v2815_v16, %v2800_v24  ;;  %v2763_v38 = vadd.f32 %v2762_v47, %v7484_v34  ;;  %v2801_v12 = vmul.f32 %v7484_v34, %v7484_v34 }
 0x47a   : > { %v2744_v21 = vadd.f32 %v2743_v5, %v2742_v27  ;;  %v2817_v9 = vrot.slane %v2816_v44, 4  ;;  %v2764_v23 = vrot.slane %v2763_v38, 4  ;;  %v2837_v29 = vadd.f32 %v2836_v6, %v2801_v12  ;;  %v7491_v27 = vpop.permute.xlu0 %3009 }
 0x47c   : > { %v2745_v43 = vrot.slane %v2744_v21, 2  ;;  %v2818_v30 = vadd.f32 %v2817_v9, %v2816_v44  ;;  %v2765_v13 = vadd.f32 %v2764_v23, %v2763_v38  ;;  %v2838_v3 = vrot.slane %v2837_v29, 4  ;;  %v7495_v44 = vpop.permute.xlu1 %3014 }
 0x47e   : > { %v2746_v35 = vadd.f32 %v2745_v43, %v2744_v21  ;;  %v2819_v55 = vrot.slane %v2818_v30, 2  ;;  %v2766_v54 = vrot.slane %v2765_v13, 2  ;;  %v2839_v4 = vadd.f32 %v2838_v3, %v2837_v29  ;;  %v7501_v43 = vpop.permute.xlu0 %3138 }
 0x480   : > { %v2747_v14 = vrot.slane %v2746_v35, 1  ;;  %v2820_v46 = vadd.f32 %v2819_v55, %v2818_v30  ;;  %v2767_v42 = vadd.f32 %v2766_v54, %v2765_v13  ;;  %v2840_v51 = vrot.slane %v2839_v4, 2  ;;  %v7503_v30 = vpop.permute.xlu1 %3143 }
 0x482   : > { %v2748_v56 = vadd.f32 %v2747_v14, %v2746_v35  ;;  %v2821_v37 = vrot.slane %v2820_v46, 1  ;;  %v2768_v62 = vrot.slane %v2767_v42, 1  ;;  %v2841_v17 = vadd.f32 %v2840_v51, %v2839_v4  ;;  %v3000_v55 = vpop.permute.xlu0 %2999 }
 0x484   : > { %v2822_v19 = vadd.f32 %v2821_v37, %v2820_v46  ;;  %v7489_v16 = vmul.f32 0.0078125, %v2748_v56  ;;  %v2769_v10 = vadd.f32 %v2768_v62, %v2767_v42  ;;  %v2842_v47 = vrot.slane %v2841_v17, 1  ;;  %v3005_v14 = vpop.permute.xlu1 %3004 }
 0x486   : > { %v2846_v24 = vmul.f32 0.0078125, %v2822_v19  ;;  %v2848_v6 = vmul.f32 %v7489_v16, %v7489_v16  ;;  %v2843_v5 = vadd.f32 %v2842_v47, %v2841_v17  ;;  %v7497_v38 = vmul.f32 0.0078125, %v2769_v10  ;;  %v3129_v47 = vpop.permute.xlu0 %3128 }
 0x487   : > { %v2882_v54 = vsub.f32 %v7478_v31, %v7489_v16  ;;  %v2880_v4 = vsub.f32 %v7464_v45, %v7489_v16  ;;  %v2876_v46 = vsub.f32 %v7436_v36, %v7489_v16  ;;  %v2878_v42 = vsub.f32 %v7448_v22, %v7489_v16 }
 0x488   : > { %v2850_v12 = vsub.f32 %v2846_v24, %v2848_v6  ;;  %v2847_v21 = vmul.f32 0.0078125, %v2843_v5  ;;  %v2849_v9 = vmul.f32 %v7497_v38, %v7497_v38  ;;  %v2872_v51 = vsub.f32 %v7417_v61, %v7489_v16 }
 0x489   : > { %v2874_v56 = vsub.f32 %v7426_v53, %v7489_v16  ;;  %v2883_v37 = vsub.f32 %v7484_v34, %v7497_v38  ;;  %v2881_v31 = vsub.f32 %v7472_v48, %v7497_v38  ;;  %v2877_v45 = vsub.f32 %v7444_v63, %v7497_v38 }
 0x48a   : > { %v2884_v23 = vadd.f32 1e-05, %v2850_v12  ;;  %v2851_v29 = vsub.f32 %v2847_v21, %v2849_v9  ;;  %v2879_v36 = vsub.f32 %v7456_v20, %v7497_v38  ;;  %v2873_v22 = vsub.f32 %v7424_v28, %v7497_v38  ;;  %v3134_v21 = vpop.permute.xlu1 %3133  ;;  %v7595_v3 = vpop.permute.xlu0 %2989 }
 0x48b   : > { %v2875_v61 = vsub.f32 %v7434_v58, %v7497_v38  ;;  %v2869_v53 = vsub.f32 %v7404_v0, %v7497_v38  ;;  %v2871_v34 = vsub.f32 %v7415_v18, %v7497_v38  ;;  %v2868_v48 = vsub.f32 %v7396_v59, %v7489_v16 }
 0x48c   : > { %4789 = vrsqrt.f32 %v2884_v23  ;;  %v2885_v13 = vadd.f32 1e-05, %v2851_v29  ;;  %v2870_v63 = vsub.f32 %v7407_v33, %v7489_v16 }
 0x48e   : > { %4791 = vrsqrt.f32 %v2885_v13 }
 0x499   : > { %v7561_v12 = vpop.eup %4789 }
 0x49a   : > { %v2918_v6 = vmul.f32 %v7561_v12, %v2882_v54  ;;  %v2916_v24 = vmul.f32 %v7561_v12, %v2880_v4  ;;  %v2912_v5 = vmul.f32 %v7561_v12, %v2876_v46  ;;  %v2914_v33 = vmul.f32 %v7561_v12, %v2878_v42 }
 0x49b   : > { %v7576_v35 = vmul.f32 %v7561_v12, %v2872_v51  ;;  %v7579_v9 = vmul.f32 %v7561_v12, %v2874_v56  ;;  %v7582_v23 = vmul.f32 %v7561_v12, %v2868_v48  ;;  %v7585_v29 = vmul.f32 %v7561_v12, %v2870_v63  ;;  %v7587_v13 = vpop.eup %4791 }
 0x49c   : > { %v3047_v54 = vmul.f32 %v7495_v44, %v2918_v6  ;;  %v3045_v4 = vmul.f32 %v7491_v27, %v2916_v24  ;;  %v3041_v46 = vmul.f32 %v3000_v55, %v2912_v5  ;;  %v3043_v42 = vmul.f32 %v3005_v14, %v2914_v33  ;;  %v7607_v33 = vpop.permute.xlu1 %2994 }
 0x49d   : > { %v2919_v51 = vmul.f32 %v7587_v13, %v2883_v37  ;;  %v2917_v59 = vmul.f32 %v7587_v13, %v2881_v31  ;;  %v2913_v56 = vmul.f32 %v7587_v13, %v2877_v45  ;;  %v2915_v48 = vmul.f32 %v7587_v13, %v2879_v36 }
 0x49e   : > { %v7598_v63 = vadd.f32 %v7503_v30, %v3047_v54  ;;  %v7601_v10 = vadd.f32 %v7501_v43, %v3045_v4  ;;  %v7603_v6 = vadd.f32 %v3129_v47, %v3041_v46  ;;  %v7605_v24 = vadd.f32 %v3134_v21, %v3043_v42 }
 0x49f   : > { %v3048_v37 = vmul.f32 %v7495_v44, %v2919_v51  ;;  %v3046_v31 = vmul.f32 %v7491_v27, %v2917_v59  ;;  %v3042_v45 = vmul.f32 %v3000_v55, %v2913_v56  ;;  %v3044_v36 = vmul.f32 %v3005_v14, %v2915_v48 }
 0x4a0   : > { %v3208_v5 = vmul.f32 %v7598_v63, %v7598_v63  ;;  %v3206_v54 = vmul.f32 %v7601_v10, %v7601_v10  ;;  %v3202_v4 = vmul.f32 %v7603_v6, %v7603_v6  ;;  %v3204_v46 = vmul.f32 %v7605_v24, %v7605_v24 }
 0x4a1   : > { %v7620_v42 = vadd.f32 %v7503_v30, %v3048_v37  ;;  %v7623_v44 = vadd.f32 %v7501_v43, %v3046_v31  ;;  %v7625_v27 = vadd.f32 %v3129_v47, %v3042_v45  ;;  %v7627_v55 = vadd.f32 %v3134_v21, %v3044_v36  ;;  %v3119_v21 = vpop.permute.xlu0 %3118 }
 0x4a2   : > { %v3238_v14 = vmul.f32 %v3206_v54, %v7601_v10  ;;  %v3240_v59 = vmul.f32 %v3208_v5, %v7598_v63  ;;  %v3234_v51 = vmul.f32 %v3202_v4, %v7603_v6  ;;  %v3236_v56 = vmul.f32 %v3204_v46, %v7605_v24  ;;  %v3124_v5 = vpop.permute.xlu1 %3123 }
 0x4a3   : > { %v3207_v48 = vmul.f32 %v7623_v44, %v7623_v44  ;;  %v3209_v30 = vmul.f32 %v7620_v42, %v7620_v42  ;;  %v3203_v43 = vmul.f32 %v7625_v27, %v7625_v27  ;;  %v3205_v47 = vmul.f32 %v7627_v55, %v7627_v55 }
 0x4a4   : > { %v3270_v37 = vmul.f32 0.044715, %v3238_v14  ;;  %v3272_v31 = vmul.f32 0.044715, %v3240_v59  ;;  %v3266_v45 = vmul.f32 0.044715, %v3234_v51  ;;  %v2909_v36 = vmul.f32 %v7587_v13, %v2873_v22 }
 0x4a5   : > { %v3239_v54 = vmul.f32 %v3207_v48, %v7623_v44  ;;  %v3241_v4 = vmul.f32 %v3209_v30, %v7620_v42  ;;  %v3235_v46 = vmul.f32 %v3203_v43, %v7625_v27  ;;  %v3237_v19 = vmul.f32 %v3205_v47, %v7627_v55 }
 0x4a6   : > { %v3302_v17 = vadd.f32 %v3270_v37, %v7601_v10  ;;  %v3304_v14 = vadd.f32 %v3272_v31, %v7598_v63  ;;  %v3268_v59 = vmul.f32 0.044715, %v3236_v56  ;;  %v3298_v51 = vadd.f32 %v3266_v45, %v7603_v6 }
 0x4a7   : > { %v3271_v62 = vmul.f32 0.044715, %v3239_v54  ;;  %v3273_v28 = vmul.f32 0.044715, %v3241_v4  ;;  %v3267_v20 = vmul.f32 0.044715, %v3235_v46  ;;  %v2911_v22 = vmul.f32 %v7587_v13, %v2875_v61  ;;  %v2980_v54 = vpop.permute.xlu0 %2979  ;;  %v2985_v61 = vpop.permute.xlu1 %2984 }
 0x4a8   : > { %v3334_v48 = vmul.f32 0.7978846, %v3302_v17  ;;  %v3336_v30 = vmul.f32 0.7978846, %v3304_v14  ;;  %v3269_v43 = vmul.f32 0.044715, %v3237_v19  ;;  %v3300_v47 = vadd.f32 %v3268_v59, %v7605_v24 }
 0x4a9   : > { %v3303_v37 = vadd.f32 %v3271_v62, %v7623_v44  ;;  %v3305_v31 = vadd.f32 %v3273_v28, %v7620_v42  ;;  %v3299_v56 = vadd.f32 %v3267_v20, %v7625_v27  ;;  %v3330_v45 = vmul.f32 0.7978846, %v3298_v51 }
 0x4aa   : > { %4793 = vtanh.f32 %v3334_v48  ;;  %v3301_v4 = vadd.f32 %v3269_v43, %v7627_v55  ;;  %v3332_v46 = vmul.f32 0.7978846, %v3300_v47  ;;  %v3038_v58 = vmul.f32 %v7595_v3, %v2909_v36 }
 0x4ab   : > { %v3335_v17 = vmul.f32 0.7978846, %v3303_v37  ;;  %v3337_v14 = vmul.f32 0.7978846, %v3305_v31  ;;  %4795 = vtanh.f32 %v3336_v30  ;;  %v3331_v19 = vmul.f32 0.7978846, %v3299_v56  ;;  %v3109_v0 = vpop.permute.xlu0 %3108  ;;  %v3114_v47 = vpop.permute.xlu1 %3113 }
 0x4ac   : > { %v3333_v59 = vmul.f32 0.7978846, %v3301_v4  ;;  %4797 = vtanh.f32 %v3330_v45  ;;  %v3040_v62 = vmul.f32 %v7607_v33, %v2911_v22  ;;  %v7663_v28 = vadd.f32 %v3119_v21, %v3038_v58 }
 0x4ad   : > { %4799 = vtanh.f32 %v3335_v17  ;;  %v3037_v20 = vmul.f32 %v7595_v3, %v7576_v35  ;;  %v3039_v51 = vmul.f32 %v7607_v33, %v7579_v9  ;;  %v2905_v36 = vmul.f32 %v7587_v13, %v2869_v53 }
 0x4ae   : > { %4801 = vtanh.f32 %v3337_v14  ;;  %v7673_v48 = vadd.f32 %v3124_v5, %v3040_v62  ;;  %v3199_v22 = vmul.f32 %v7663_v28, %v7663_v28  ;;  %v2907_v30 = vmul.f32 %v7587_v13, %v2871_v34 }
 0x4af   : > { %4803 = vtanh.f32 %v3331_v19  ;;  %v7681_v3 = vadd.f32 %v3119_v21, %v3037_v20  ;;  %v7683_v35 = vadd.f32 %v3124_v5, %v3039_v51  ;;  %v3034_v9 = vmul.f32 %v2980_v54, %v2905_v36 }
 0x4b0   : > { %4805 = vtanh.f32 %v3333_v59  ;;  %v3201_v53 = vmul.f32 %v7673_v48, %v7673_v48  ;;  %v3231_v33 = vmul.f32 %v3199_v22, %v7663_v28  ;;  %v3036_v43 = vmul.f32 %v2985_v61, %v2907_v30 }
 0x4b1   : > { %4807 = vtanh.f32 %v3332_v46  ;;  %v3198_v18 = vmul.f32 %v7681_v3, %v7681_v3  ;;  %v3200_v34 = vmul.f32 %v7683_v35, %v7683_v35  ;;  %v7692_v21 = vadd.f32 %v3109_v0, %v3034_v9 }
 0x4b2   : > { %v3233_v5 = vmul.f32 %v3201_v53, %v7673_v48  ;;  %v3263_v37 = vmul.f32 0.044715, %v3231_v33  ;;  %v7695_v31 = vadd.f32 %v3114_v47, %v3036_v43  ;;  %v3033_v56 = vmul.f32 %v2980_v54, %v7582_v23 }
 0x4b3   : > { %v3230_v45 = vmul.f32 %v3198_v18, %v7681_v3  ;;  %v3232_v4 = vmul.f32 %v3200_v34, %v7683_v35  ;;  %v3195_v46 = vmul.f32 %v7692_v21, %v7692_v21  ;;  %v3035_v58 = vmul.f32 %v2985_v61, %v7585_v29 }
 0x4b4   : > { %v3265_v17 = vmul.f32 0.044715, %v3233_v5  ;;  %v3295_v14 = vadd.f32 %v3263_v37, %v7663_v28  ;;  %v3197_v19 = vmul.f32 %v7695_v31, %v7695_v31  ;;  %v7706_v59 = vadd.f32 %v3109_v0, %v3033_v56 }
 0x4b5   : > { %v3262_v62 = vmul.f32 0.044715, %v3230_v45  ;;  %v3264_v20 = vmul.f32 0.044715, %v3232_v4  ;;  %v3227_v23 = vmul.f32 %v3195_v46, %v7692_v21  ;;  %v7709_v54 = vadd.f32 %v3114_v47, %v3035_v58 }
 0x4b6   : > { %v3297_v51 = vadd.f32 %v3265_v17, %v7673_v48  ;;  %v3327_v36 = vmul.f32 0.7978846, %v3295_v14  ;;  %v3229_v22 = vmul.f32 %v3197_v19, %v7695_v31  ;;  %v3194_v29 = vmul.f32 %v7706_v59, %v7706_v59 }
 0x4b7   : > { %v4794_v61 = vpop.eup %4793  ;;  %v3294_v30 = vadd.f32 %v3262_v62, %v7681_v3  ;;  %v3296_v9 = vadd.f32 %v3264_v20, %v7683_v35  ;;  %v3259_v0 = vmul.f32 0.044715, %v3227_v23  ;;  %v3196_v53 = vmul.f32 %v7709_v54, %v7709_v54 }
 0x4b8   : > { %v4796_v33 = vpop.eup %4795  ;;  %v3398_v43 = vadd.f32 1.0, %v4794_v61  ;;  %v3329_v47 = vmul.f32 0.7978846, %v3297_v51  ;;  %4809 = vtanh.f32 %v3327_v36  ;;  %v3261_v18 = vmul.f32 0.044715, %v3229_v22  ;;  %v2970_v51 = vpop.permute.xlu0 %2969 }
 0x4b9   : > { %v4798_v34 = vpop.eup %4797  ;;  %v3400_v5 = vadd.f32 1.0, %v4796_v33  ;;  %v3326_v37 = vmul.f32 0.7978846, %v3294_v30  ;;  %v3328_v56 = vmul.f32 0.7978846, %v3296_v9  ;;  %v3291_v45 = vadd.f32 %v3259_v0, %v7692_v21  ;;  %v7722_v9 = vpop.permute.xlu1 %2974 }
 0x4ba   : > { %v4800_v4 = vpop.eup %4799  ;;  %v3430_v46 = vmul.f32 0.5, %v3398_v43  ;;  %v3394_v58 = vadd.f32 1.0, %v4798_v34  ;;  %4811 = vtanh.f32 %v3329_v47  ;;  %v3293_v17 = vadd.f32 %v3261_v18, %v7695_v31 }
 0x4bb   : > { %v4802_v14 = vpop.eup %4801  ;;  %v3399_v19 = vadd.f32 1.0, %v4800_v4  ;;  %v3432_v62 = vmul.f32 0.5, %v3400_v5  ;;  %4813 = vtanh.f32 %v3326_v37  ;;  %v3323_v20 = vmul.f32 0.7978846, %v3291_v45 }
 0x4bc   : > { %v4804_v23 = vpop.eup %4803  ;;  %v3401_v36 = vadd.f32 1.0, %v4802_v14  ;;  %v3462_v22 = vmul.f32 %v3430_v46, %v7601_v10  ;;  %v3426_v61 = vmul.f32 0.5, %v3394_v58  ;;  %4815 = vtanh.f32 %v3328_v56 }
 0x4bd   : > { %v4806_v30 = vpop.eup %4805  ;;  %v3431_v0 = vmul.f32 0.5, %v3399_v19  ;;  %v3464_v33 = vmul.f32 %v3432_v62, %v7598_v63  ;;  %v3395_v43 = vadd.f32 1.0, %v4804_v23  ;;  %v3325_v47 = vmul.f32 0.7978846, %v3293_v17 }
 0x4be   : > { %v4808_v18 = vpop.eup %4807  ;;  %v3433_v34 = vmul.f32 0.5, %v3401_v36  ;;  %v3397_v5 = vadd.f32 1.0, %v4806_v30  ;;  %v3458_v37 = vmul.f32 %v3426_v61, %v7603_v6  ;;  %4817 = vtanh.f32 %v3323_v20 }
 0x4bf   : > { %v3463_v45 = vmul.f32 %v3431_v0, %v7623_v44  ;;  %v3497_v4 = vpack.c.bf16 %v3464_v33, %v3462_v22  ;;  %v3427_v10 = vmul.f32 0.5, %v3395_v43  ;;  %v3396_v46 = vadd.f32 1.0, %v4808_v18  ;;  %v3099_v44 = vpop.permute.xlu0 %3098  ;;  %v3104_v22 = vpop.permute.xlu1 %3103 }
 0x4c0   : > { %v3465_v56 = vmul.f32 %v3433_v34, %v7620_v42  ;;  %v3429_v58 = vmul.f32 0.5, %v3397_v5  ;;  %4819 = vtanh.f32 %v3325_v47  ;;  %v3226_v14 = vmul.f32 %v3194_v29, %v7706_v59 }
 0x4c1   : > { %v3459_v63 = vmul.f32 %v3427_v10, %v7625_v27  ;;  %v3428_v17 = vmul.f32 0.5, %v3396_v46  ;;  %v3228_v19 = vmul.f32 %v3196_v53, %v7709_v54  ;;  %v8534_v6 = vsub.f32 %v7384_v7, %v7497_v38 }
 0x4c2   : > { %v3498_v20 = vpack.c.bf16 %v3465_v56, %v3463_v45  ;;  %v3461_v23 = vmul.f32 %v3429_v58, %v7627_v55  ;;  %v3258_v36 = vmul.f32 0.044715, %v3226_v14  ;;  %v8535_v42 = vsub.f32 %v7394_v41, %v7497_v38 }
 0x4c3   : > { %v2901_v62 = vmul.f32 %v7587_v13, %v8534_v6  ;;  %v3460_v27 = vmul.f32 %v3428_v17, %v7605_v24  ;;  %v3260_v61 = vmul.f32 0.044715, %v3228_v19  ;;  %v8536_v7 = vsub.f32 %v7376_v60, %v7489_v16 }
 0x4c4   : > { %v2903_v29 = vmul.f32 %v7587_v13, %v8535_v42  ;;  %3644 = vmatprep.subr.bf16.mxu0 %v3498_v20  ;;  %4568 = vmatprep.subr.bf16.mxu1 %v3498_v20  ;;  %v3496_v0 = vpack.c.bf16 %v3461_v23, %v3459_v63  ;;  %v3290_v55 = vadd.f32 %v3258_v36, %v7706_v59  ;;  %v7762_v63 = vpop.permute.xlu0 %2959 }
 0x4c5   : > { %v3030_v53 = vmul.f32 %v2970_v51, %v2901_v62  ;;  %v2900_v30 = vmul.f32 %v7561_v12, %v8536_v7  ;;  %v4810_v41 = vpop.eup %4809  ;;  %3645 = vmatpush1.bf16.msra.mxu0 %v3497_v4  ;;  %4576 = vmatpush1.bf16.msra.mxu1 %v3497_v4  ;;  %v3495_v43 = vpack.c.bf16 %v3460_v27, %v3458_v37  ;;  %v7766_v62 = vpop.permute.xlu1 %2964 }
 0x4c6   : > { %v3032_v33 = vmul.f32 %v7722_v9, %v2903_v29  ;;  %v3292_v24 = vadd.f32 %v3260_v61, %v7709_v54  ;;  %3646 = vmatprep.subr.bf16.mxu0 %v3496_v0  ;;  %4569 = vmatprep.subr.bf16.mxu1 %v3496_v0  ;;  %v3391_v60 = vadd.f32 1.0, %v4810_v41  ;;  %v3322_v18 = vmul.f32 0.7978846, %v3290_v55 }
 0x4c7   : > { %v7748_v47 = vadd.f32 %v3099_v44, %v3030_v53  ;;  %v8537_v5 = vsub.f32 %v7386_v50, %v7489_v16  ;;  %v4812_v10 = vpop.eup %4811  ;;  %v3029_v4 = vmul.f32 %v2970_v51, %v2900_v30  ;;  %v8538_v56 = vsub.f32 %v7361_v39, %v7497_v38 }
 0x4c8   : > { %v7750_v34 = vadd.f32 %v3104_v22, %v3032_v33  ;;  %v3324_v46 = vmul.f32 0.7978846, %v3292_v24  ;;  %v4814_v14 = vpop.eup %4813  ;;  %v3393_v17 = vadd.f32 1.0, %v4812_v10  ;;  %v3423_v19 = vmul.f32 0.5, %v3391_v60 }
 0x4c9   : > { %v2902_v45 = vmul.f32 %v7561_v12, %v8537_v5  ;;  %v3191_v37 = vmul.f32 %v7748_v47, %v7748_v47  ;;  %v2897_v58 = vmul.f32 %v7587_v13, %v8538_v56  ;;  %4821 = vtanh.f32 %v3322_v18  ;;  %v4816_v6 = vpop.eup %4815  ;;  %3647 = vmatpush1.bf16.msra.mxu0 %v3495_v43  ;;  %4577 = vmatpush1.bf16.msra.mxu1 %v3495_v43 }
 0x4ca   : > { %v3193_v50 = vmul.f32 %v7750_v34, %v7750_v34  ;;  %v3390_v51 = vadd.f32 1.0, %v4814_v14  ;;  %4823 = vtanh.f32 %v3324_v46  ;;  %v3425_v23 = vmul.f32 0.5, %v3393_v17 }
 0x4cb   : > { %v3223_v39 = vmul.f32 %v3191_v37, %v7748_v47  ;;  %v3031_v20 = vmul.f32 %v7722_v9, %v2902_v45  ;;  %v3455_v36 = vmul.f32 %v3423_v19, %v7663_v28  ;;  %v3392_v42 = vadd.f32 1.0, %v4816_v6  ;;  %v4818_v27 = vpop.eup %4817  ;;  %v3094_v45 = vpop.permute.xlu1 %3093 }
 0x4cc   : > { %v3225_v29 = vmul.f32 %v3193_v50, %v7750_v34  ;;  %v3422_v61 = vmul.f32 0.5, %v3390_v51  ;;  %v7772_v7 = vadd.f32 %v3099_v44, %v3029_v4  ;;  %v3457_v0 = vmul.f32 %v3425_v23, %v7673_v48  ;;  %v3089_v44 = vpop.permute.xlu0 %3088 }
 0x4cd   : > { %v3255_v53 = vmul.f32 0.044715, %v3223_v39  ;;  %v7774_v30 = vadd.f32 %v3104_v22, %v3031_v20  ;;  %v3424_v55 = vmul.f32 0.5, %v3392_v42  ;;  %v3387_v33 = vadd.f32 1.0, %v4818_v27  ;;  %v4820_v43 = vpop.eup %4819 }
 0x4ce   : > { %v3257_v41 = vmul.f32 0.044715, %v3225_v29  ;;  %v3454_v9 = vmul.f32 %v3422_v61, %v7681_v3  ;;  %v3190_v24 = vmul.f32 %v7772_v7, %v7772_v7  ;;  %v3494_v18 = vpack.c.bf16 %v3457_v0, %v3455_v36 }
 0x4cf   : > { %v3287_v28 = vadd.f32 %v3255_v53, %v7748_v47  ;;  %v3192_v60 = vmul.f32 %v7774_v30, %v7774_v30  ;;  %v3456_v22 = vmul.f32 %v3424_v55, %v7683_v35  ;;  %v3389_v5 = vadd.f32 1.0, %v4820_v43  ;;  %v2955_v0 = vpop.permute.xlu1 %2954 }
 0x4d0   : > { %v3419_v48 = vmul.f32 0.5, %v3387_v33  ;;  %v3289_v10 = vadd.f32 %v3257_v41, %v7750_v34  ;;  %v3222_v3 = vmul.f32 %v3190_v24, %v7772_v7  ;;  %3648 = vmatprep.subr.bf16.mxu0 %v3494_v18  ;;  %4570 = vmatprep.subr.bf16.mxu1 %v3494_v18  ;;  %v8539_v17 = vsub.f32 %v7372_v52, %v7497_v38  ;;  %v2950_v42 = vpop.permute.xlu0 %2949 }
 0x4d1   : > { %v3319_v46 = vmul.f32 0.7978846, %v3287_v28  ;;  %v3224_v37 = vmul.f32 %v3192_v60, %v7774_v30  ;;  %v3493_v4 = vpack.c.bf16 %v3456_v22, %v3454_v9  ;;  %v3421_v56 = vmul.f32 0.5, %v3389_v5 }
 0x4d2   : > { %v3451_v14 = vmul.f32 %v3419_v48, %v7692_v21  ;;  %v2899_v35 = vmul.f32 %v7587_v13, %v8539_v17  ;;  %v3321_v19 = vmul.f32 0.7978846, %v3289_v10  ;;  %v3254_v50 = vmul.f32 0.044715, %v3222_v3 }
 0x4d3   : > { %4825 = vtanh.f32 %v3319_v46  ;;  %v3256_v6 = vmul.f32 0.044715, %v3224_v37  ;;  %3649 = vmatpush1.bf16.msra.mxu0 %v3493_v4  ;;  %4578 = vmatpush1.bf16.msra.mxu1 %v3493_v4  ;;  %v3453_v51 = vmul.f32 %v3421_v56, %v7695_v31  ;;  %v3026_v39 = vmul.f32 %v7762_v63, %v2897_v58  ;;  %v3084_v17 = vpop.permute.xlu1 %3083 }
 0x4d4   : > { %v3028_v20 = vmul.f32 %v7766_v62, %v2899_v35  ;;  %4827 = vtanh.f32 %v3321_v19  ;;  %v3286_v21 = vadd.f32 %v3254_v50, %v7772_v7  ;;  %v8540_v52 = vsub.f32 %v7353_v1, %v7489_v16 }
 0x4d5   : > { %v3288_v23 = vadd.f32 %v3256_v6, %v7774_v30  ;;  %v3492_v29 = vpack.c.bf16 %v3453_v51, %v3451_v14  ;;  %v7801_v27 = vadd.f32 %v3089_v44, %v3026_v39  ;;  %v8541_v31 = vsub.f32 %v7367_v8, %v7489_v16 }
 0x4d6   : > { %v2896_v36 = vmul.f32 %v7561_v12, %v8540_v52  ;;  %v7803_v61 = vadd.f32 %v3094_v45, %v3028_v20  ;;  %v4822_v53 = vpop.eup %4821  ;;  %v3318_v55 = vmul.f32 0.7978846, %v3286_v21  ;;  %v8542_v1 = vsub.f32 %v7339_v57, %v7497_v38 }
 0x4d7   : > { %v2898_v58 = vmul.f32 %v7561_v12, %v8541_v31  ;;  %v3320_v33 = vmul.f32 0.7978846, %v3288_v23  ;;  %v4824_v9 = vpop.eup %4823  ;;  %3650 = vmatprep.subr.bf16.mxu0 %v3492_v29  ;;  %4571 = vmatprep.subr.bf16.mxu1 %v3492_v29  ;;  %v3386_v28 = vadd.f32 1.0, %v4822_v53  ;;  %v3187_v8 = vmul.f32 %v7801_v27, %v7801_v27 }
 0x4d8   : > { %v3025_v41 = vmul.f32 %v7762_v63, %v2896_v36  ;;  %v2893_v43 = vmul.f32 %v7587_v13, %v8542_v1  ;;  %v3189_v24 = vmul.f32 %v7803_v61, %v7803_v61  ;;  %v3388_v18 = vadd.f32 1.0, %v4824_v9 }
 0x4d9   : > { %v3027_v60 = vmul.f32 %v7766_v62, %v2898_v58  ;;  %4829 = vtanh.f32 %v3318_v55  ;;  %v8543_v57 = vsub.f32 %v7347_v25, %v7497_v38  ;;  %v3418_v5 = vmul.f32 0.5, %v3386_v28 }
 0x4da   : > { %v7819_v63 = vadd.f32 %v3089_v44, %v3025_v41  ;;  %4831 = vtanh.f32 %v3320_v33  ;;  %v3219_v48 = vmul.f32 %v3187_v8, %v7801_v27  ;;  %v3221_v10 = vmul.f32 %v3189_v24, %v7803_v61  ;;  %v3079_v44 = vpop.permute.xlu0 %3078 }
 0x4db   : > { %v2895_v22 = vmul.f32 %v7587_v13, %v8543_v57  ;;  %v3420_v46 = vmul.f32 0.5, %v3388_v18  ;;  %v7827_v3 = vadd.f32 %v3094_v45, %v3027_v60  ;;  %v3022_v37 = vmul.f32 %v2950_v42, %v2893_v43 }
 0x4dc   : > { %v3186_v62 = vmul.f32 %v7819_v63, %v7819_v63  ;;  %v3450_v4 = vmul.f32 %v3418_v5, %v7706_v59  ;;  %v3251_v56 = vmul.f32 0.044715, %v3219_v48  ;;  %v3253_v25 = vmul.f32 0.044715, %v3221_v10 }
 0x4dd   : > { %v3024_v14 = vmul.f32 %v2955_v0, %v2895_v22  ;;  %v3452_v35 = vmul.f32 %v3420_v46, %v7709_v54  ;;  %v3188_v19 = vmul.f32 %v7827_v3, %v7827_v3  ;;  %v7836_v45 = vadd.f32 %v3079_v44, %v3022_v37 }
 0x4de   : > { %v3218_v50 = vmul.f32 %v3186_v62, %v7819_v63  ;;  %v3283_v6 = vadd.f32 %v3251_v56, %v7801_v27  ;;  %v3285_v51 = vadd.f32 %v3253_v25, %v7803_v61  ;;  %v8544_v59 = vsub.f32 %v7335_v32, %v7489_v16 }
 0x4df   : > { %v7840_v39 = vadd.f32 %v3084_v17, %v3024_v14  ;;  %v3491_v21 = vpack.c.bf16 %v3452_v35, %v3450_v4  ;;  %v3220_v54 = vmul.f32 %v3188_v19, %v7827_v3  ;;  %v3183_v52 = vmul.f32 %v7836_v45, %v7836_v45  ;;  %v2940_v4 = vpop.permute.xlu0 %2939  ;;  %v2945_v14 = vpop.permute.xlu1 %2944 }
 0x4e0   : > { %v2892_v20 = vmul.f32 %v7561_v12, %v8544_v59  ;;  %v3250_v23 = vmul.f32 0.044715, %v3218_v50  ;;  %v4826_v36 = vpop.eup %4825  ;;  %v3315_v29 = vmul.f32 0.7978846, %v3283_v6  ;;  %v3317_v31 = vmul.f32 0.7978846, %v3285_v51 }
 0x4e1   : > { %v3185_v58 = vmul.f32 %v7840_v39, %v7840_v39  ;;  %v8545_v53 = vsub.f32 %v7343_v40, %v7489_v16  ;;  %3651 = vmatpush1.bf16.msra.mxu0 %v3491_v21  ;;  %4579 = vmatpush1.bf16.msra.mxu1 %v3491_v21  ;;  %v3383_v55 = vadd.f32 1.0, %v4826_v36  ;;  %v3252_v33 = vmul.f32 0.044715, %v3220_v54  ;;  %v4828_v43 = vpop.eup %4827 }
 0x4e2   : > { %v3282_v41 = vadd.f32 %v3250_v23, %v7819_v63  ;;  %v3215_v1 = vmul.f32 %v3183_v52, %v7836_v45  ;;  %4833 = vtanh.f32 %v3315_v29  ;;  %v3021_v28 = vmul.f32 %v2950_v42, %v2892_v20 }
 0x4e3   : > { %v2894_v32 = vmul.f32 %v7561_v12, %v8545_v53  ;;  %v3217_v9 = vmul.f32 %v3185_v58, %v7840_v39  ;;  %v3385_v24 = vadd.f32 1.0, %v4828_v43  ;;  %v3415_v60 = vmul.f32 0.5, %v3383_v55  ;;  %v3069_v53 = vpop.permute.xlu0 %3068 }
 0x4e4   : > { %4835 = vtanh.f32 %v3317_v31  ;;  %v3284_v40 = vadd.f32 %v3252_v33, %v7827_v3  ;;  %v3314_v18 = vmul.f32 0.7978846, %v3282_v41  ;;  %v3247_v57 = vmul.f32 0.044715, %v3215_v1 }
 0x4e5   : > { %v3023_v8 = vmul.f32 %v2955_v0, %v2894_v32  ;;  %v3249_v22 = vmul.f32 0.044715, %v3217_v9  ;;  %v7859_v5 = vadd.f32 %v3079_v44, %v3021_v28  ;;  %v3417_v48 = vmul.f32 0.5, %v3385_v24 }
 0x4e6   : > { %v3447_v10 = vmul.f32 %v3415_v60, %v7748_v47  ;;  %v3316_v46 = vmul.f32 0.7978846, %v3284_v40  ;;  %v4830_v37 = vpop.eup %4829  ;;  %4837 = vtanh.f32 %v3314_v18  ;;  %v3279_v42 = vadd.f32 %v3247_v57, %v7836_v45 }
 0x4e7   : > { %v7862_v62 = vadd.f32 %v3084_v17, %v3023_v8  ;;  %v3281_v0 = vadd.f32 %v3249_v22, %v7840_v39  ;;  %v3182_v56 = vmul.f32 %v7859_v5, %v7859_v5  ;;  %v4832_v25 = vpop.eup %4831  ;;  %v3449_v44 = vmul.f32 %v3417_v48, %v7750_v34 }
 0x4e8   : > { %v3382_v35 = vadd.f32 1.0, %v4830_v37  ;;  %4839 = vtanh.f32 %v3316_v46  ;;  %v3384_v17 = vadd.f32 1.0, %v4832_v25  ;;  %v3311_v19 = vmul.f32 0.7978846, %v3279_v42 }
 0x4e9   : > { %v3184_v47 = vmul.f32 %v7862_v62, %v7862_v62  ;;  %v3313_v50 = vmul.f32 0.7978846, %v3281_v0  ;;  %v3214_v6 = vmul.f32 %v3182_v56, %v7859_v5  ;;  %v3490_v51 = vpack.c.bf16 %v3449_v44, %v3447_v10 }
 0x4ea   : > { %v3414_v59 = vmul.f32 0.5, %v3382_v35  ;;  %v8546_v21 = vsub.f32 %v7337_v11, %v7497_v38  ;;  %v3416_v34 = vmul.f32 0.5, %v3384_v17  ;;  %4841 = vtanh.f32 %v3311_v19 }
 0x4eb   : > { %v3216_v20 = vmul.f32 %v3184_v47, %v7862_v62  ;;  %v3246_v23 = vmul.f32 0.044715, %v3214_v6  ;;  %v8547_v52 = vsub.f32 %v7331_v49, %v7497_v38  ;;  %3652 = vmatprep.subr.bf16.mxu0 %v3490_v51  ;;  %4572 = vmatprep.subr.bf16.mxu1 %v3490_v51  ;;  %4843 = vtanh.f32 %v3313_v50  ;;  %v3074_v38 = vpop.permute.xlu1 %3073 }
 0x4ec   : > { %v2889_v54 = vmul.f32 %v7587_v13, %v8546_v21  ;;  %v3446_v29 = vmul.f32 %v3414_v59, %v7772_v7  ;;  %v3448_v11 = vmul.f32 %v3416_v34, %v7774_v30  ;;  %v8548_v33 = vsub.f32 %v7333_v15, %v7489_v16 }
 0x4ed   : > { %v2891_v36 = vmul.f32 %v7587_v13, %v8547_v52  ;;  %v3248_v31 = vmul.f32 0.044715, %v3216_v20  ;;  %v3278_v32 = vadd.f32 %v3246_v23, %v7859_v5  ;;  %v8549_v7 = vsub.f32 %v7329_v26, %v7489_v16 }
 0x4ee   : > { %v3018_v58 = vmul.f32 %v2940_v4, %v2889_v54  ;;  %v2888_v49 = vmul.f32 %v7561_v12, %v8548_v33  ;;  %v3489_v43 = vpack.c.bf16 %v3448_v11, %v3446_v29 }
 0x4ef   : > { %v3020_v55 = vmul.f32 %v2945_v14, %v2891_v36  ;;  %v3280_v13 = vadd.f32 %v3248_v31, %v7862_v62  ;;  %v2890_v1 = vmul.f32 %v7561_v12, %v8549_v7  ;;  %v3310_v30 = vmul.f32 0.7978846, %v3278_v32  ;;  %v4834_v8 = vpop.eup %4833 }
 0x4f0   : > { %v7889_v41 = vadd.f32 %v3069_v53, %v3018_v58  ;;  %v3017_v28 = vmul.f32 %v2940_v4, %v2888_v49  ;;  %3653 = vmatpush1.bf16.msra.mxu0 %v3489_v43  ;;  %4580 = vmatpush1.bf16.msra.mxu1 %v3489_v43  ;;  %v3379_v18 = vadd.f32 1.0, %v4834_v8 }
 0x4f1   : > { %v7895_v9 = vadd.f32 %v3074_v38, %v3020_v55  ;;  %v3312_v24 = vmul.f32 0.7978846, %v3280_v13  ;;  %v3019_v60 = vmul.f32 %v2945_v14, %v2890_v1  ;;  %v4836_v40 = vpop.eup %4835  ;;  %4845 = vtanh.f32 %v3310_v30 }
 0x4f2   : > { %v3179_v15 = vmul.f32 %v7889_v41, %v7889_v41  ;;  %v7901_v16 = vadd.f32 %v3069_v53, %v3017_v28  ;;  %v3381_v12 = vadd.f32 1.0, %v4836_v40  ;;  %v3411_v48 = vmul.f32 0.5, %v3379_v18 }
 0x4f3   : > { %v3181_v26 = vmul.f32 %v7895_v9, %v7895_v9  ;;  %4847 = vtanh.f32 %v3312_v24  ;;  %v7904_v22 = vadd.f32 %v3074_v38, %v3019_v60  ;;  %v4838_v37 = vpop.eup %4837 }
 0x4f4   : > { %v3211_v57 = vmul.f32 %v3179_v15, %v7889_v41  ;;  %v3178_v46 = vmul.f32 %v7901_v16, %v7901_v16  ;;  %v3413_v4 = vmul.f32 0.5, %v3381_v12  ;;  %v3443_v25 = vmul.f32 %v3411_v48, %v7801_v27 }
 0x4f5   : > { %v3213_v10 = vmul.f32 %v3181_v26, %v7895_v9  ;;  %v3180_v0 = vmul.f32 %v7904_v22, %v7904_v22  ;;  %v4840_v56 = vpop.eup %4839  ;;  %v3378_v14 = vadd.f32 1.0, %v4838_v37 }
 0x4f6   : > { %v3243_v42 = vmul.f32 0.044715, %v3211_v57  ;;  %v3210_v35 = vmul.f32 %v3178_v46, %v7901_v16  ;;  %v3445_v47 = vmul.f32 %v3413_v4, %v7803_v61  ;;  %v3380_v17 = vadd.f32 1.0, %v4840_v56 }
 0x4f7   : > { %v3245_v44 = vmul.f32 0.044715, %v3213_v10  ;;  %v3212_v50 = vmul.f32 %v3180_v0, %v7904_v22  ;;  %v3410_v6 = vmul.f32 0.5, %v3378_v14  ;;  %v4842_v20 = vpop.eup %4841  ;;  %v4650_v14 = vld [vmem:[%s8287_s2 + $0xa8] sm:$0xff]  }
 0x4f8   : > { %v3275_v19 = vadd.f32 %v3243_v42, %v7889_v41  ;;  %v3242_v59 = vmul.f32 0.044715, %v3210_v35  ;;  %v3488_v21 = vpack.c.bf16 %v3445_v47, %v3443_v25  ;;  %v3412_v54 = vmul.f32 0.5, %v3380_v17  ;;  %v4844_v23 = vpop.eup %4843  ;;  %v4645_v25 = vld [vmem:[%s8287_s2 + $0x80] sm:$0xff]   ;;  %v4652_v35 = vld [vmem:[%s8287_s2 + $0xb8] sm:$0xff]   ;;  %v3524_v47 = vpop.permute.xlu1 %3523 }
 0x4f9   : > { %v3277_v51 = vadd.f32 %v3245_v44, %v7895_v9  ;;  %v3244_v27 = vmul.f32 0.044715, %v3212_v50  ;;  %v3442_v52 = vmul.f32 %v3410_v6, %v7819_v63  ;;  %v3375_v36 = vadd.f32 1.0, %v4842_v20  ;;  %v4651_v44 = vld [vmem:[%s8287_s2 + $0xb0] sm:$0xff]   ;;  %v3519_v17 = vpop.permute.xlu0 %3518 }
 0x4fa   : > { %v3307_v34 = vmul.f32 0.7978846, %v3275_v19  ;;  %v3274_v61 = vadd.f32 %v3242_v59, %v7901_v16  ;;  %3654 = vmatprep.subr.bf16.mxu0 %v3488_v21  ;;  %4573 = vmatprep.subr.bf16.mxu1 %v3488_v21  ;;  %v3444_v31 = vmul.f32 %v3412_v54, %v7827_v3  ;;  %v3377_v58 = vadd.f32 1.0, %v4844_v23 }
 0x4fb   : > { %v3309_v29 = vmul.f32 0.7978846, %v3277_v51  ;;  %v3276_v53 = vadd.f32 %v3244_v27, %v7904_v22  ;;  %v3407_v11 = vmul.f32 0.5, %v3375_v36 }
 0x4fc   : > { %4849 = vtanh.f32 %v3307_v34  ;;  %v3306_v32 = vmul.f32 0.7978846, %v3274_v61  ;;  %v3487_v55 = vpack.c.bf16 %v3444_v31, %v3442_v52  ;;  %v3409_v33 = vmul.f32 0.5, %v3377_v58  ;;  %v3534_v19 = vpop.permute.xlu1 %3533 }
 0x4fd   : > { %4851 = vtanh.f32 %v3309_v29  ;;  %v3308_v49 = vmul.f32 0.7978846, %v3276_v53  ;;  %v3439_v63 = vmul.f32 %v3407_v11, %v7836_v45  ;;  %v3529_v50 = vpop.permute.xlu0 %3528 }
 0x4fe   : > { %4853 = vtanh.f32 %v3306_v32  ;;  %v4846_v38 = vpop.eup %4845  ;;  %3655 = vmatpush1.bf16.msra.mxu0 %v3487_v55  ;;  %4581 = vmatpush1.bf16.msra.mxu1 %v3487_v55  ;;  %v3441_v13 = vmul.f32 %v3409_v33, %v7840_v39 }
 0x4ff   : > { %4855 = vtanh.f32 %v3308_v49  ;;  %v3374_v7 = vadd.f32 1.0, %v4846_v38 }
 0x500   : > { %v4848_v3 = vpop.eup %4847  ;;  %v3486_v1 = vpack.c.bf16 %v3441_v13, %v3439_v63  ;;  %v7959_v6 = vpop.permute.xlu1 %3543 }
 0x501   : > { %v3376_v43 = vadd.f32 1.0, %v4848_v3  ;;  %v3406_v30 = vmul.f32 0.5, %v3374_v7  ;;  %v3539_v51 = vpop.permute.xlu0 %3538 }
 0x502   : > { %3656 = vmatprep.subr.bf16.mxu0 %v3486_v1  ;;  %4574 = vmatprep.subr.bf16.mxu1 %v3486_v1 }
 0x503   : > { %v3408_v28 = vmul.f32 0.5, %v3376_v43  ;;  %v3438_v8 = vmul.f32 %v3406_v30, %v7859_v5 }
 0x504   : > { %v7961_v59 = vpop.permute.xlu1 %3553 }
 0x505   : > { %v3440_v24 = vmul.f32 %v3408_v28, %v7862_v62  ;;  %8550 = vst [vmem:[#allocation19_spill] sm:$0xff] %v7961_v59  ;;  %v7963_v20 = vpop.permute.xlu0 %3548 }
 0x507   : > { %v3485_v45 = vpack.c.bf16 %v3440_v24, %v3438_v8 }
 0x508   : > { %v7965_v21 = vpop.permute.xlu1 %3563 }
 0x509   : > { %v4850_v15 = vpop.eup %4849  ;;  %3657 = vmatpush1.bf16.msra.mxu0 %v3485_v45  ;;  %4582 = vmatpush1.bf16.msra.mxu1 %v3485_v45  ;;  %v7967_v54 = vpop.permute.xlu0 %3558 }
 0x50a   : > { %v4852_v60 = vpop.eup %4851  ;;  %v3371_v40 = vadd.f32 1.0, %v4850_v15 }
 0x50b   : > { %v3373_v39 = vadd.f32 1.0, %v4852_v60  ;;  %v4854_v18 = vpop.eup %4853 }
 0x50c   : > { %v3403_v26 = vmul.f32 0.5, %v3371_v40  ;;  %v4856_v12 = vpop.eup %4855  ;;  %v3370_v48 = vadd.f32 1.0, %v4854_v18 }
 0x50d   : > { %v3405_v57 = vmul.f32 0.5, %v3373_v39  ;;  %v3372_v46 = vadd.f32 1.0, %v4856_v12  ;;  %v7971_v34 = vpop.permute.xlu0 %3568 }
 0x50e   : > { %v3435_v10 = vmul.f32 %v3403_v26, %v7889_v41  ;;  %v3402_v5 = vmul.f32 0.5, %v3370_v48  ;;  %v4646_v41 = vld [vmem:[%s8287_s2 + $0x88] sm:$0xff]  }
 0x50f   : > { %v3437_v37 = vmul.f32 %v3405_v57, %v7895_v9  ;;  %v3404_v4 = vmul.f32 0.5, %v3372_v46  ;;  %v4647_v9 = vld [vmem:[%s8287_s2 + $0x90] sm:$0xff]  }
 0x510   : > { %v3434_v42 = vmul.f32 %v3402_v5, %v7901_v16  ;;  %v4648_v16 = vld [vmem:[%s8287_s2 + $0x98] sm:$0xff]  }
 0x511   : > { %v3484_v62 = vpack.c.bf16 %v3437_v37, %v3435_v10  ;;  %v3436_v0 = vmul.f32 %v3404_v4, %v7904_v22  ;;  %v4649_v22 = vld [vmem:[%s8287_s2 + $0xa0] sm:$0xff]   ;;  %v7975_v23 = vpop.permute.xlu0 %3578 }
 0x513   : > { %3658 = vmatprep.subr.bf16.mxu0 %v3484_v62  ;;  %4575 = vmatprep.subr.bf16.mxu1 %v3484_v62  ;;  %v3483_v56 = vpack.c.bf16 %v3436_v0, %v3434_v42 }
 0x515   : > { %3659 = vmatpush1.bf16.msra.mxu0 %v3483_v56  ;;  %4583 = vmatpush1.bf16.msra.mxu1 %v3483_v56  ;;  %v7979_v36 = vpop.permute.xlu0 %3588 }
 0x518   : > { %3677 = vmatmul.mubr.bf16.vlgmr.msra.gmra.mxu0 %v4645_v25  ;;  %3687 = vmatmul.mubr.bf16.vlgmr.msra.gmra.mxu1 %v4646_v41 }
 0x519   : > { %3696 = vmatprep.mubr.bf16.mxu1 %v8533_v2  ;;  %v7983_v61 = vpop.permute.xlu0 %3831 }
 0x51d   : > { %v7987_v58 = vpop.permute.xlu0 %3841 }
 0x520   : > { %3697 = vmatmul.mubr.bf16.gmra.mxu1 %v4647_v9 }
 0x521   : > { %3706 = vmatprep.mubr.bf16.mxu1 %v8533_v2  ;;  %v7991_v11 = vpop.permute.xlu0 %3851 }
 0x525   : > { %v7995_v55 = vpop.permute.xlu0 %3896 }
 0x528   : > { %3707 = vmatmul.mubr.bf16.gmra.mxu1 %v4648_v16 }
 0x529   : > { %3716 = vmatprep.mubr.bf16.mxu1 %v8533_v2  ;;  %v7999_v3 = vpop.permute.xlu0 %3993 }
 0x52d   : > { %v8003_v8 = vpop.permute.xlu0 %4058 }
 0x530   : > { %3717 = vmatmul.mubr.bf16.gmra.mxu1 %v4649_v22 }
 0x531   : > { %3726 = vmatprep.mubr.bf16.mxu1 %v8533_v2  ;;  %v8013_v57 = vpop.permute.xlu0 %3906 }
 0x538   : > { %3727 = vmatmul.mubr.bf16.gmra.mxu1 %v4650_v14 }
 0x539   : > { %3736 = vmatprep.mubr.bf16.mxu1 %v8533_v2 }
 0x540   : > { %3737 = vmatmul.mubr.bf16.gmra.mxu1 %v4651_v44 }
 0x541   : > { %3746 = vmatprep.mubr.bf16.mxu1 %v8533_v2  ;;  %v7969_v2 = vpop.permute.xlu1 %3573 }
 0x545   : > { %v7973_v27 = vpop.permute.xlu1 %3583 }
 0x548   : > { %3747 = vmatmul.mubr.bf16.gmra.mxu1 %v4652_v35 }
 0x549   : > { %v7977_v52 = vpop.permute.xlu1 %3593 }
 0x54a   : > { %8551 = vst [vmem:[#allocation18_spill] sm:$0xff] %v7977_v52 }
 0x54d   : > { %v7981_v29 = vpop.permute.xlu1 %3836 }
 0x551   : > { %v7985_v31 = vpop.permute.xlu1 %3846 }
 0x555   : > { %v7989_v53 = vpop.permute.xlu1 %3856 }
 0x556   : > { %8552 = vst [vmem:[#allocation21_spill] sm:$0xff] %v7989_v53 }
 0x559   : > { %v7993_v32 = vpop.permute.xlu1 %3901 }
 0x55d   : > { %v7997_v38 = vpop.permute.xlu1 %3998 }
 0x561   : > { %v8001_v28 = vpop.permute.xlu1 %4063 }
 0x565   : > { %v8009_v18 = vpop.permute.xlu1 %4003 }
 0x5d8   : > { %v3688_v33 = vpop.f32.mrf.mxu1  ;;  %v3678_v13 = vpop.f32.mrf.mxu0 }
 0x5d9   : > { %v8005_v60 = vadd.f32 %v3678_v13, %v3519_v17  ;;  %v8007_v40 = vadd.f32 %v3688_v33, %v3529_v50 }
 0x5da   : > { %v3690_v49 = vpop.f32.mrf.mxu1  ;;  %v3680_v43 = vpop.f32.mrf.mxu0 }
 0x5db   : > { %v8011_v26 = vadd.f32 %v3680_v43, %v3519_v17  ;;  %v8015_v48 = vadd.f32 %v3690_v49, %v3529_v50  ;;  %v8018_v46 = vadd.f32 0.5, %v8005_v60  ;;  %v8026_v62 = vadd.f32 0.5, %v8007_v40  ;;  %v8050_v17 = vpop.permute.xlu1 %3911 }
 0x5dc   : > { %v3692_v63 = vpop.f32.mrf.mxu1  ;;  %v3682_v45 = vpop.f32.mrf.mxu0 }
 0x5dd   : > { %v8020_v37 = vadd.f32 %v3682_v45, %v3524_v47  ;;  %v8022_v5 = vadd.f32 %v3692_v63, %v3534_v19  ;;  %v8032_v25 = vadd.f32 0.5, %v8011_v26  ;;  %v8040_v22 = vadd.f32 0.5, %v8015_v48  ;;  %v8060_v63 = vpop.permute.xlu0 %4068 }
 0x5de   : > { %v3694_v7 = vpop.f32.mrf.mxu1  ;;  %v3684_v12 = vpop.f32.mrf.mxu0 }
 0x5df   : > { %v8029_v0 = vadd.f32 %v3684_v12, %v3524_v47  ;;  %v8035_v9 = vadd.f32 %v3694_v7, %v3534_v19  ;;  %v8053_v50 = vadd.f32 0.5, %v8020_v37  ;;  %v8057_v33 = vadd.f32 0.5, %v8022_v5  ;;  %v8100_v52 = vpop.permute.xlu1 %4073 }
 0x5e0   : > { %v3698_v1 = vpop.f32.mrf.mxu1 }
 0x5e1   : > { %v8037_v16 = vadd.f32 %v3698_v1, %v3539_v51 }
 0x5e2   : > { %v3700_v30 = vpop.f32.mrf.mxu1 }
 0x5e3   : > { %v8043_v44 = vadd.f32 %v3700_v30, %v3539_v51  ;;  %v8063_v51 = vadd.f32 0.5, %v8029_v0  ;;  %v8073_v30 = vadd.f32 0.5, %v8035_v9  ;;  %v8077_v45 = vadd.f32 0.5, %v8037_v16 }
 0x5e4   : > { %v3702_v24 = vpop.f32.mrf.mxu1 }
 0x5e5   : > { %8553 = vst [vmem:[#allocation20_spill] sm:$0xff] %v8043_v44  ;;  %v8046_v35 = vadd.f32 %v3702_v24, %v7959_v6  ;;  %v8082_v14 = vadd.f32 0.5, %v8043_v44 }
 0x5e6   : > { %v3704_v15 = vpop.f32.mrf.mxu1 }
 0x5e7   : > { %8554 = vst [vmem:[#allocation23_spill] sm:$0xff] %v8046_v35  ;;  %v8067_v7 = vadd.f32 %v3704_v15, %v7959_v6  ;;  %8558 = vst [vmem:[#allocation26_spill] sm:$0xff] %v8082_v14  ;;  %v8086_v15 = vadd.f32 0.5, %v8046_v35 }
 0x5e8   : > { %v3708_v39 = vpop.f32.mrf.mxu1 }
 0x5e9   : > { %8556 = vst [vmem:[#allocation25_spill] sm:$0xff] %v8067_v7  ;;  %v8070_v1 = vadd.f32 %v3708_v39, %v7963_v20  ;;  %8559 = vst [vmem:[#allocation27_spill] sm:$0xff] %v8086_v15  ;;  %v8094_v49 = vadd.f32 0.5, %v8067_v7 }
 0x5ea   : > { %v3710_v10 = vpop.f32.mrf.mxu1 }
 0x5eb   : > { %8557 = vst [vmem:[#allocation24_spill] sm:$0xff] %v8070_v1  ;;  %v8089_v42 = vadd.f32 %v3710_v10, %v7963_v20  ;;  %8561 = vst [vmem:[#allocation28_spill] sm:$0xff] %v8094_v49  ;;  %v8098_v6 = vadd.f32 0.5, %v8070_v1 }
 0x5ec   : > { %v3712_v56 = vpop.f32.mrf.mxu1 }
 0x5ed   : > { %8560 = vst [vmem:[#allocation29_spill] sm:$0xff] %v8089_v42  ;;  %8562 = vst [vmem:[#allocation31_spill] sm:$0xff] %v8098_v6  ;;  %v8103_v20 = vadd.f32 %v3712_v56, %v7961_v59  ;;  %v8114_v56 = vadd.f32 0.5, %v8089_v42 }
 0x5ee   : > { %v8048_v47 = vpop.f32.mrf.mxu1 }
 0x5ef   : > { %8555 = vst [vmem:[#allocation22_spill] sm:$0xff] %v8048_v47  ;;  %8563 = vst [vmem:[#allocation30_spill] sm:$0xff] %v8103_v20  ;;  %v8123_v59 = vadd.f32 0.5, %v8103_v20 }
 0x5f0   : > { %v3718_v43 = vpop.f32.mrf.mxu1  ;;  %8564 = vst [vmem:[#allocation33_spill] sm:$0xff] %v8114_v56  ;;  %v8126_v56 = vpop.permute.xlu1 %4013 }
 0x5f1   : > { %v3719_v12 = vadd.f32 %v3718_v43, %v7967_v54  ;;  %8565 = vst [vmem:[#allocation32_spill] sm:$0xff] %v8123_v59  ;;  %v8566_v59 = vsub.f32 0.5, %v8005_v60 }
 0x5f2   : > { %v3720_v39 = vpop.f32.mrf.mxu1 }
 0x5f3   : > { %v3773_v24 = vadd.f32 0.5, %v3719_v12  ;;  %v3805_v13 = vsub.f32 0.5, %v3719_v12  ;;  %v3721_v41 = vadd.f32 %v3720_v39, %v7967_v54  ;;  %v8108_v39 = vpop.permute.xlu0 %4008 }
 0x5f4   : > { %v3722_v4 = vpop.f32.mrf.mxu1 }
 0x5f5   : > { %v3869_v10 = vmul.f32 %v7983_v61, %v3773_v24  ;;  %v3934_v54 = vmul.f32 %v7995_v55, %v3805_v13  ;;  %v4031_v12 = vmul.f32 %v7999_v3, %v3773_v24  ;;  %v4096_v43 = vmul.f32 %v8003_v8, %v3805_v13 }
 0x5f6   : > { %v3774_v19 = vadd.f32 0.5, %v3721_v41  ;;  %v3806_v7 = vsub.f32 0.5, %v3721_v41  ;;  %v3723_v49 = vadd.f32 %v3722_v4, %v7965_v21  ;;  %v3724_v6 = vpop.f32.mrf.mxu1 }
 0x5f7   : > { %v3950_v15 = vadd.f32 %v3934_v54, %v3869_v10  ;;  %v3725_v44 = vadd.f32 %v3724_v6, %v7965_v21  ;;  %v4112_v54 = vadd.f32 %v4096_v43, %v4031_v12 }
 0x5f8   : > { %v3870_v14 = vmul.f32 %v7983_v61, %v3774_v19  ;;  %v3935_v24 = vmul.f32 %v7995_v55, %v3806_v7  ;;  %v4032_v47 = vmul.f32 %v7999_v3, %v3774_v19  ;;  %v4097_v13 = vmul.f32 %v8003_v8, %v3806_v7  ;;  %v3728_v41 = vpop.f32.mrf.mxu1  ;;  %v8132_v7 = vpop.permute.xlu0 %3916 }
 0x5f9   : > { %v3775_v35 = vadd.f32 0.5, %v3723_v49  ;;  %v3807_v1 = vsub.f32 0.5, %v3723_v49  ;;  %v3776_v21 = vadd.f32 0.5, %v3725_v44  ;;  %v3808_v6 = vsub.f32 0.5, %v3725_v44 }
 0x5fa   : > { %v3730_v61 = vpop.f32.mrf.mxu1  ;;  %v3966_v55 = vmul.f32 %v3950_v15, %v8018_v46  ;;  %v3951_v4 = vadd.f32 %v3935_v24, %v3870_v14  ;;  %v4113_v49 = vadd.f32 %v4097_v13, %v4032_v47  ;;  %v4128_v42 = vmul.f32 %v4112_v54, %v8566_v59  ;;  %v8147_v59 = vpop.permute.xlu1 %3921 }
 0x5fb   : > { %v3871_v3 = vmul.f32 %v7981_v29, %v3775_v35  ;;  %v3936_v8 = vmul.f32 %v7993_v32, %v3807_v1  ;;  %v4033_v19 = vmul.f32 %v7997_v38, %v3775_v35  ;;  %v4098_v10 = vmul.f32 %v8001_v28, %v3807_v1 }
 0x5fc   : > { %v3872_v43 = vmul.f32 %v7981_v29, %v3776_v21  ;;  %v3732_v44 = vpop.f32.mrf.mxu1  ;;  %v3937_v20 = vmul.f32 %v7993_v32, %v3808_v6  ;;  %v4034_v46 = vmul.f32 %v7997_v38, %v3776_v21  ;;  %v4099_v15 = vmul.f32 %v8001_v28, %v3808_v6  ;;  %v8153_v54 = vpop.permute.xlu0 %4078 }
 0x5fd   : > { %v3952_v12 = vadd.f32 %v3936_v8, %v3871_v3  ;;  %v4114_v35 = vadd.f32 %v4098_v10, %v4033_v19  ;;  %v3729_v53 = vadd.f32 %v3728_v41, %v7971_v34  ;;  %v3731_v14 = vadd.f32 %v3730_v61, %v7971_v34 }
 0x5fe   : > { %v3734_v47 = vpop.f32.mrf.mxu1  ;;  %v3953_v29 = vadd.f32 %v3937_v20, %v3872_v43  ;;  %v4115_v24 = vadd.f32 %v4099_v15, %v4034_v46  ;;  %v3733_v13 = vadd.f32 %v3732_v44, %v7969_v2  ;;  %v8567_v32 = vsub.f32 0.5, %v8020_v37 }
 0x5ff   : > { %v3968_v1 = vmul.f32 %v3952_v12, %v8053_v50  ;;  %v3777_v21 = vadd.f32 0.5, %v3729_v53  ;;  %v3809_v28 = vsub.f32 0.5, %v3729_v53  ;;  %v3778_v6 = vadd.f32 0.5, %v3731_v14 }
 0x600   : > { %v4130_v38 = vmul.f32 %v4114_v35, %v8567_v32  ;;  %v3738_v60 = vpop.f32.mrf.mxu1  ;;  %v3967_v41 = vmul.f32 %v3951_v4, %v8032_v25  ;;  %v8568_v34 = vsub.f32 0.5, %v8011_v26  ;;  %v3969_v50 = vmul.f32 %v3953_v29, %v8063_v51 }
 0x601   : > { %v3810_v20 = vsub.f32 0.5, %v3731_v14  ;;  %v3873_v61 = vmul.f32 %v7987_v58, %v3777_v21  ;;  %v3938_v37 = vmul.f32 %v8013_v57, %v3809_v28  ;;  %v4035_v53 = vmul.f32 %v8009_v18, %v3777_v21 }
 0x602   : > { %v4129_v10 = vmul.f32 %v4113_v49, %v8568_v34  ;;  %v3779_v3 = vadd.f32 0.5, %v3733_v13  ;;  %v3740_v8 = vpop.f32.mrf.mxu1  ;;  %v8569_v19 = vsub.f32 0.5, %v8029_v0  ;;  %v4100_v25 = vmul.f32 %v8060_v63, %v3809_v28 }
 0x603   : > { %v3874_v26 = vmul.f32 %v7987_v58, %v3778_v6  ;;  %v3939_v51 = vmul.f32 %v8013_v57, %v3810_v20  ;;  %v4146_v4 = vadd.f32 %v4130_v38, %v3968_v1  ;;  %v3954_v49 = vadd.f32 %v3938_v37, %v3873_v61  ;;  %v8167_v58 = vpop.permute.xlu1 %4083 }
 0x604   : > { %v4131_v43 = vmul.f32 %v4115_v24, %v8569_v19  ;;  %v4036_v44 = vmul.f32 %v8009_v18, %v3778_v6  ;;  %v4101_v12 = vmul.f32 %v8060_v63, %v3810_v20  ;;  %v4144_v46 = vadd.f32 %v4128_v42, %v3966_v55  ;;  %v3742_v21 = vpop.f32.mrf.mxu1  ;;  %v8174_v55 = vpop.permute.xlu0 %4018 }
 0x605   : > { %v4116_v15 = vadd.f32 %v4100_v25, %v4035_v53  ;;  %v3955_v35 = vadd.f32 %v3939_v51, %v3874_v26  ;;  %v3811_v14 = vsub.f32 0.5, %v3733_v13  ;;  %v4145_v29 = vadd.f32 %v4129_v10, %v3967_v41 }
 0x606   : > { %v4117_v32 = vadd.f32 %v4101_v12, %v4036_v44  ;;  %v3875_v0 = vmul.f32 %v7985_v31, %v3779_v3  ;;  %v4037_v24 = vmul.f32 %v8108_v39, %v3779_v3  ;;  %v3970_v57 = vmul.f32 %v3954_v49, %v8026_v62  ;;  %v3744_v3 = vpop.f32.mrf.mxu1 }
 0x607   : > { %v8570_v1 = vsub.f32 0.5, %v8007_v40  ;;  %v3940_v63 = vmul.f32 %v8050_v17, %v3811_v14  ;;  %v4102_v42 = vmul.f32 %v8100_v52, %v3811_v14  ;;  %v4160_v13 = vadd.f32 %v4146_v4, %v4144_v46  ;;  %v8189_v26 = vpop.permute.xlu1 %3926 }
 0x608   : > { %v4147_v38 = vadd.f32 %v4131_v43, %v3969_v50  ;;  %v3735_v28 = vadd.f32 %v3734_v47, %v7969_v2  ;;  %v3739_v6 = vadd.f32 %v3738_v60, %v7975_v23  ;;  %v3971_v41 = vmul.f32 %v3955_v35, %v8040_v22 }
 0x609   : > { %v4132_v18 = vmul.f32 %v4116_v15, %v8570_v1  ;;  %v8571_v34 = vsub.f32 0.5, %v8015_v48  ;;  %v3956_v10 = vadd.f32 %v3940_v63, %v3875_v0  ;;  %v4118_v40 = vadd.f32 %v4102_v42, %v4037_v24 }
 0x60a   : > { %v3780_v20 = vadd.f32 0.5, %v3735_v28  ;;  %v3812_v61 = vsub.f32 0.5, %v3735_v28  ;;  %v3781_v37 = vadd.f32 0.5, %v3739_v6  ;;  %v3741_v53 = vadd.f32 %v3740_v8, %v7975_v23 }
 0x60b   : > { %v4133_v62 = vmul.f32 %v4117_v32, %v8571_v34  ;;  %v4148_v19 = vadd.f32 %v4132_v18, %v3970_v57  ;;  %v3972_v50 = vmul.f32 %v3956_v10, %v8057_v33  ;;  %v8572_v2 = vsub.f32 0.5, %v8022_v5  ;;  %v8194_v5 = vpop.permute.xlu0 %3861  ;;  %v8575_v10 = vld [vmem:[#allocation21_spill] sm:$0xff] }
 0x60c   : > { %v3813_v60 = vsub.f32 0.5, %v3739_v6  ;;  %v3876_v22 = vmul.f32 %v7985_v31, %v3780_v20  ;;  %v3941_v48 = vmul.f32 %v8050_v17, %v3812_v61  ;;  %v4038_v43 = vmul.f32 %v8108_v39, %v3780_v20  ;;  %v3748_v39 = vpop.f32.mrf.mxu1  ;;  %v8577_v20 = vld [vmem:[#allocation22_spill] sm:$0xff] }
 0x60d   : > { %v4134_v47 = vmul.f32 %v4118_v40, %v8572_v2  ;;  %v3743_v25 = vadd.f32 %v3742_v21, %v7973_v27  ;;  %v4149_v51 = vadd.f32 %v4133_v62, %v3971_v41  ;;  %v4103_v23 = vmul.f32 %v8100_v52, %v3812_v61  ;;  %v8576_v40 = vld [vmem:[#allocation19_spill] sm:$0xff] }
 0x60e   : > { %v3877_v8 = vmul.f32 %v7991_v11, %v3781_v37  ;;  %v3942_v33 = vmul.f32 %v8132_v7, %v3813_v60  ;;  %v3957_v4 = vadd.f32 %v3941_v48, %v3876_v22  ;;  %v4039_v31 = vmul.f32 %v8126_v56, %v3781_v37  ;;  %v3750_v6 = vpop.f32.mrf.mxu1  ;;  %v8578_v22 = vld [vmem:[#allocation26_spill] sm:$0xff] }
 0x60f   : > { %v4104_v17 = vmul.f32 %v8153_v54, %v3813_v60  ;;  %v3782_v49 = vadd.f32 0.5, %v3741_v53  ;;  %v4150_v44 = vadd.f32 %v4134_v47, %v3972_v50  ;;  %v4119_v12 = vadd.f32 %v4103_v23, %v4038_v43  ;;  %v4024_v62 = vpop.permute.xlu0 %4023  ;;  %v8579_v43 = vld [vmem:[#allocation20_spill] sm:$0xff] }
 0x610   : > { %v3958_v46 = vadd.f32 %v3942_v33, %v3877_v8  ;;  %v3814_v15 = vsub.f32 0.5, %v3741_v53  ;;  %v3973_v35 = vmul.f32 %v3957_v4, %v8073_v30  ;;  %v8573_v0 = vsub.f32 0.5, %v8035_v9 }
 0x611   : > { %v4120_v52 = vadd.f32 %v4104_v17, %v4039_v31  ;;  %v3878_v14 = vmul.f32 %v7991_v11, %v3782_v49  ;;  %v4040_v32 = vmul.f32 %v8126_v56, %v3782_v49  ;;  %v8574_v18 = vsub.f32 0.5, %v8037_v16  ;;  %v4089_v11 = vpop.permute.xlu1 %4088 }
 0x612   : > { %v4135_v24 = vmul.f32 %v4119_v12, %v8573_v0  ;;  %v3974_v21 = vmul.f32 %v3958_v46, %v8077_v45  ;;  %v3943_v57 = vmul.f32 %v8132_v7, %v3814_v15  ;;  %v4105_v1 = vmul.f32 %v8153_v54, %v3814_v15 }
 0x613   : > { %v4136_v63 = vmul.f32 %v4120_v52, %v8574_v18  ;;  %v3783_v42 = vadd.f32 0.5, %v3743_v25  ;;  %v3815_v28 = vsub.f32 0.5, %v3743_v25  ;;  %v3745_v30 = vadd.f32 %v3744_v3, %v7973_v27  ;;  %v8581_v52 = vld [vmem:[#allocation27_spill] sm:$0xff] }
 0x614   : > { %v4173_v41 = vadd.f32 %v4147_v38, %v4145_v29  ;;  %v4161_v56 = vadd.f32 %v4160_v13, %v4148_v19  ;;  %v3959_v34 = vadd.f32 %v3943_v57, %v3878_v14  ;;  %v3749_v9 = vadd.f32 %v3748_v39, %v7979_v36  ;;  %v3752_v19 = vpop.f32.mrf.mxu1  ;;  %v3867_v39 = vpop.permute.xlu0 %3866 }
 0x615   : > { %v4121_v45 = vadd.f32 %v4105_v1, %v4040_v32  ;;  %v3879_v7 = vmul.f32 %v8575_v10, %v3783_v42  ;;  %v3944_v54 = vmul.f32 %v8147_v59, %v3815_v28  ;;  %v4041_v16 = vmul.f32 %v8174_v55, %v3783_v42  ;;  %v3932_v33 = vpop.permute.xlu1 %3931  ;;  %v8582_v32 = vld [vmem:[#allocation23_spill] sm:$0xff] }
 0x616   : > { %v8215_v61 = vadd.f32 %v8577_v20, %v8576_v40  ;;  %v4174_v27 = vadd.f32 %v4173_v41, %v4149_v51  ;;  %v4151_v37 = vadd.f32 %v4135_v24, %v3973_v35  ;;  %v4106_v29 = vmul.f32 %v8167_v58, %v3815_v28  ;;  %v3754_v35 = vpop.f32.mrf.mxu1  ;;  %v8585_v41 = vld [vmem:[#allocation31_spill] sm:$0xff] }
 0x617   : > { %v4162_v13 = vadd.f32 %v4161_v56, %v4150_v44  ;;  %v4152_v38 = vadd.f32 %v4136_v63, %v3974_v21  ;;  %v3784_v53 = vadd.f32 0.5, %v3745_v30  ;;  %v3816_v3 = vsub.f32 0.5, %v3745_v30  ;;  %v8584_v21 = vld [vmem:[#allocation18_spill] sm:$0xff] }
 0x618   : > { %v3960_v50 = vadd.f32 %v3944_v54, %v3879_v7  ;;  %v4122_v2 = vadd.f32 %v4106_v29, %v4041_v16  ;;  %v3785_v47 = vadd.f32 0.5, %v3749_v9  ;;  %v3817_v60 = vsub.f32 0.5, %v3749_v9  ;;  %v4029_v20 = vpop.permute.xlu0 %4028 }
 0x619   : > { %v3975_v48 = vmul.f32 %v3959_v34, %v8578_v22  ;;  %v8580_v25 = vsub.f32 0.5, %v8579_v43  ;;  %v3880_v8 = vmul.f32 %v8575_v10, %v3784_v53  ;;  %v3945_v51 = vmul.f32 %v8147_v59, %v3816_v3  ;;  %v8586_v34 = vld [vmem:[#allocation24_spill] sm:$0xff]  ;;  %v4094_v40 = vpop.permute.xlu1 %4093 }
 0x61a   : > { %v4175_v4 = vadd.f32 %v4174_v27, %v4151_v37  ;;  %v4042_v31 = vmul.f32 %v8174_v55, %v3784_v53  ;;  %v4107_v17 = vmul.f32 %v8167_v58, %v3816_v3  ;;  %v3881_v49 = vmul.f32 %v8194_v5, %v3785_v47  ;;  %v8588_v27 = vld [vmem:[#allocation28_spill] sm:$0xff]  ;;  %v8589_v53 = vld [vmem:[#allocation25_spill] sm:$0xff] }
 0x61b   : > { %v4137_v23 = vmul.f32 %v4121_v45, %v8580_v25  ;;  %v4163_v44 = vadd.f32 %v4162_v13, %v4152_v38  ;;  %v3946_v12 = vmul.f32 %v8189_v26, %v3817_v60  ;;  %v4043_v46 = vmul.f32 %v4024_v62, %v3785_v47 }
 0x61c   : > { %v4108_v15 = vmul.f32 %v4089_v11, %v3817_v60  ;;  %v3976_v14 = vmul.f32 %v3960_v50, %v8581_v52  ;;  %v8583_v0 = vsub.f32 0.5, %v8582_v32  ;;  %v3751_v24 = vadd.f32 %v3750_v6, %v7979_v36 }
 0x61d   : > { %v3753_v55 = vadd.f32 %v3752_v19, %v8584_v21  ;;  %v4153_v57 = vadd.f32 %v4137_v23, %v3975_v48  ;;  %v3961_v58 = vadd.f32 %v3945_v51, %v3880_v8  ;;  %v3962_v1 = vadd.f32 %v3946_v12, %v3881_v49  ;;  %v8592_v8 = vld [vmem:[#allocation29_spill] sm:$0xff] }
 0x61e   : > { %v4138_v59 = vmul.f32 %v4122_v2, %v8583_v0  ;;  %v4124_v18 = vadd.f32 %v4108_v15, %v4043_v46  ;;  %v4123_v63 = vadd.f32 %v4107_v17, %v4042_v31  ;;  %v3786_v42 = vadd.f32 0.5, %v3751_v24  ;;  %v8594_v31 = vld [vmem:[#allocation32_spill] sm:$0xff]  ;;  %v8595_v15 = vld [vmem:[#allocation30_spill] sm:$0xff] }
 0x61f   : > { %v3818_v28 = vsub.f32 0.5, %v3751_v24  ;;  %v3755_v30 = vadd.f32 %v3754_v35, %v8584_v21  ;;  %v3978_v56 = vmul.f32 %v3962_v1, %v8585_v41  ;;  %v8587_v9 = vsub.f32 0.5, %v8586_v34 }
 0x620   : > { %v3787_v10 = vadd.f32 0.5, %v3753_v55  ;;  %v3819_v7 = vsub.f32 0.5, %v3753_v55  ;;  %v4154_v54 = vadd.f32 %v4138_v59, %v3976_v14  ;;  %v3882_v36 = vmul.f32 %v8194_v5, %v3786_v42 }
 0x621   : > { %v4140_v45 = vmul.f32 %v4124_v18, %v8587_v9  ;;  %v3947_v6 = vmul.f32 %v8189_v26, %v3818_v28  ;;  %v4044_v16 = vmul.f32 %v4024_v62, %v3786_v42  ;;  %v3977_v37 = vmul.f32 %v3961_v58, %v8588_v27  ;;  %v8591_v26 = vld [vmem:[#allocation33_spill] sm:$0xff] }
 0x622   : > { %v4109_v29 = vmul.f32 %v4089_v11, %v3818_v28  ;;  %v3883_v13 = vmul.f32 %v3867_v39, %v3787_v10  ;;  %v3948_v38 = vmul.f32 %v3932_v33, %v3819_v7  ;;  %v8590_v3 = vsub.f32 0.5, %v8589_v53 }
 0x623   : > { %v3963_v50 = vadd.f32 %v3947_v6, %v3882_v36  ;;  %v4045_v2 = vmul.f32 %v4029_v20, %v3787_v10  ;;  %v4110_v47 = vmul.f32 %v4094_v40, %v3819_v7  ;;  %v4156_v60 = vadd.f32 %v4140_v45, %v3978_v56 }
 0x624   : > { %v4139_v19 = vmul.f32 %v4123_v63, %v8590_v3  ;;  %v4125_v22 = vadd.f32 %v4109_v29, %v4044_v16  ;;  %v3964_v48 = vadd.f32 %v3948_v38, %v3883_v13  ;;  %v3788_v5 = vadd.f32 0.5, %v3755_v30 }
 0x625   : > { %v4164_v43 = vadd.f32 %v4163_v44, %v4154_v54  ;;  %v3979_v62 = vmul.f32 %v3963_v50, %v8591_v26  ;;  %v4126_v25 = vadd.f32 %v4110_v47, %v4045_v2  ;;  %v3820_v23 = vsub.f32 0.5, %v3755_v30 }
 0x626   : > { %v8593_v51 = vsub.f32 0.5, %v8592_v8  ;;  %v3980_v17 = vmul.f32 %v3964_v48, %v8594_v31  ;;  %v3884_v49 = vmul.f32 %v3867_v39, %v3788_v5  ;;  %v4046_v12 = vmul.f32 %v4029_v20, %v3788_v5  ;;  %v8597_v20 = vld [vmem:[#allocation5_spill] sm:$0xff] }
 0x627   : > { %v4155_v46 = vadd.f32 %v4139_v19, %v3977_v37  ;;  %v8596_v35 = vsub.f32 0.5, %v8595_v15  ;;  %v3949_v14 = vmul.f32 %v3932_v33, %v3820_v23  ;;  %v4111_v32 = vmul.f32 %v4094_v40, %v3820_v23 }
 0x628   : > { %v4141_v11 = vmul.f32 %v4125_v22, %v8593_v51  ;;  %v3772_v0 = vadd.f32 0.5, %v8215_v61  ;;  %v3804_v44 = vsub.f32 0.5, %v8215_v61  ;;  %v4176_v59 = vadd.f32 %v4175_v4, %v4153_v57 }
 0x629   : > { %v4142_v52 = vmul.f32 %v4126_v25, %v8596_v35  ;;  %v4165_v24 = vadd.f32 %v4164_v43, %v4156_v60  ;;  %v3965_v58 = vadd.f32 %v3949_v14, %v3884_v49  ;;  %v4127_v1 = vadd.f32 %v4111_v32, %v4046_v12 }
 0x62a   : > { %v4157_v21 = vadd.f32 %v4141_v11, %v3979_v62  ;;  %v4177_v18 = vadd.f32 %v4176_v59, %v4155_v46  ;;  %v4922_v57 = vmov 1966171168   ;;  %v8598_v13 = vlaneseq }
 0x62b   : > { %v4158_v55 = vadd.f32 %v4142_v52, %v3980_v17  ;;  %v3981_v63 = vmul.f32 %v3965_v58, %v3772_v0  ;;  %v4143_v42 = vmul.f32 %v4127_v1, %v3804_v44  ;;  %v4190_v45 = vunpack.c.l.s4 %v4922_v57 }
 0x62c   : > { %v4178_v28 = vadd.f32 %v4177_v18, %v4157_v21  ;;  %vm4206_vm1 = vcmp.lt.s32.totalorder %v8598_v13, 256 }
 0x62d   : > { %v4166_v39 = vadd.f32 %v4165_v24, %v4158_v55  ;;  %v4159_v41 = vadd.f32 %v4143_v42, %v3981_v63  ;;  %v4191_v36 = vunpack.c.0.s8 %v4190_v45 }
 0x62f   : > { %v4167_v30 = vrot.slane %v4166_v39, 4  ;;  %v4179_v56 = vadd.f32 %v4178_v28, %v4159_v41  ;;  %v4194_v27 = vsub.s32 %v4191_v36, %v8597_v20 }
 0x631   : > { %v4168_v33 = vadd.f32 %v4167_v30, %v4166_v39  ;;  %v4180_v9 = vrot.slane %v4179_v56, 4 }
 0x633   : > { %v4169_v34 = vrot.slane %v4168_v33, 2  ;;  %v4181_v61 = vadd.f32 %v4180_v9, %v4179_v56 }
 0x635   : > { %v4170_v4 = vadd.f32 %v4169_v34, %v4168_v33  ;;  %v4182_v10 = vrot.slane %v4181_v61, 2 }
 0x637   : > { %v4171_v7 = vrot.slane %v4170_v4, 1  ;;  %v4183_v54 = vadd.f32 %v4182_v10, %v4181_v61 }
 0x639   : > { %v4184_v6 = vrot.slane %v4183_v54, 1  ;;  %v4172_v16 = vadd.f32 %v4171_v7, %v4170_v4 }
 0x63b   : > { %v4185_v40 = vadd.f32 %v4184_v6, %v4183_v54 }
 0x63d   : > { %v4188_v37 = vcombine.low %v4172_v16, %v4185_v40 }
 0x63f   : > { %v4195_v29 = vrot.slane %v4188_v37, %v4194_v27 }
 0x641   : > { %v4202_v38 = vrot.slane %v4195_v29, %v4194_v27 }
 0x643   : > { %4208 = vst.msk [vmem:[%s218_s13] sm:$0x3] %vm4206_vm1, %v4202_v38 }
 0x644   : > { %4870 = shalt.err (!%p4867_p3)
}
 0x645   : > { %s4871_s6 = scalar_lea.hbm %s4222_s17, 32  ;;  %s4875_s9 = scalar_lea.hbm %s8290_s5, 64 }
 0x646   : > { %p4872_p4 = scmp.ne.s32.totalorder %s4222_s17, %s4871_s6  ;;  %p4876_p9 = scmp.lt.s32.totalorder %s4222_s17, %s8290_s5 }
 0x647   : > { %p4877_p10 = scmp.lt.s32.totalorder %s4875_s9, %s4871_s6 }
 0x648   : > { %p4873_p7 = pnand %p4872_p4, %p4992_p5 }
 0x649   : > { %p4878_p11 = por %p4877_p10, %p4876_p9 }
 0x64a   : > { %p4874_p8 = pneg %p4873_p7 }
 0x64c   : > { %p4879_p12 = pnand %p4878_p11, %p4874_p8 }
 0x64e   : > { %4882 = shalt.err (!%p4879_p12)
}
 0x64f   : > { %4584 = dma.vmem_to_hbm [thread:$0]  (%p4992_p5), %s4225_s14, 32, %s4222_s17, %s4210_s23  }
 0x650 PF: > { %p4590_p13 = scmp.ge.s32.totalorder %s4917_s21, 2  ;;  %s4236_s12 = sand.u32 1, %s4905_s18  }
 0x651   : > { %s4237_s13 = scalar_lea.sflag [#allocation3], %s4236_s12 }
 0x652   : > { %p4587_p0 = pnand %p4590_p13, %p4996_p6 }
 0x654   : > { %p4588_p1 = pneg %p4587_p0 }
 0x656   : > { %4900 = dma.done.wait (%p4588_p1), %s4237_s13, 32  }
 0x657   : > { %4902 = vsyncadd (%p4588_p1), %s4237_s13, 4294967264  ;;  %p15_p2 = scmp.ge.s32.totalorder %s4979_s24, 4   ;;  %s8599_s18 = smov %s4909_s19 }
 0x658   : > { %s8600_s19 = smov %s4913_s20  ;;  %s8601_s20 = smov %s4990_s27 }
 0x659   : > { %s8602_s21 = smov %s4979_s24  ;;  %17 = sbr.rel (!%p15_p2) target bundleno = 3 (0x3), region = 89 }
 0x65e   :  { %4242 = vsyncpa [#allocation3], 1 }
 0x65f   :  { %4244 = vsyncpa [#allocation3 + $0x1], 1 }

</bundles_post_ra>
